<compile_context>
chip_gen: v7x
topology: tpu7x:2x2x1
jax: 0.10.0
libtpu: 0.0.40
codegen_flags: <defaults>
</compile_context>

<pallas_src>
import functools

import jax
import jax.numpy as jnp
from jax.experimental import pallas as pl
from jax.experimental.pallas import tpu as pltpu


def _round_up(x, m):
    return (x + m - 1) // m * m


# ---------------------------------------------------------------------------
# Layout helpers (plain JAX, cheap data movement only).
#
# "padded-flat" layout: each image is zero-padded by 1 pixel on every side
# (Hp, Wp) = (H+2, W+2), flattened to Lp = Hp*Wp on the lane axis, channels on
# sublanes -> (B, C, Lp).  A conv-kernel *input* additionally carries Wp+1
# zeros on each flat end ("ext") so all 9 tap reads are in-bounds static lane
# slices: tap (dy, dx) of output position q reads ext index q + dy*Wp + dx.
# ---------------------------------------------------------------------------

def _make_mask(h, w):
    """1.0 at interior positions of the padded grid, 0.0 at padding."""
    m = jnp.zeros((h + 2, w + 2), jnp.float32)
    m = m.at[1:h + 1, 1:w + 1].set(1.0)
    return m.reshape(1, (h + 2) * (w + 2))


def _prep_ext(x_bchw):
    """(B, C, H, W) -> ext padded-flat (B, C, (H+2)*(W+2) + 2*(W+3))."""
    b, c, h, w = x_bchw.shape
    wp = w + 2
    xp = jnp.pad(x_bchw, ((0, 0), (0, 0), (1, 1), (1, 1)))
    flat = xp.reshape(b, c, (h + 2) * wp)
    return jnp.pad(flat, ((0, 0), (0, 0), (wp + 1, wp + 1)))


def _ext(y_flat, wp):
    """Masked padded-flat conv output -> next conv's ext input (lane pad only)."""
    return jnp.pad(y_flat, ((0, 0), (0, 0), (wp + 1, wp + 1)))


def _interior(y_flat, h, w):
    b, c, _ = y_flat.shape
    return y_flat.reshape(b, c, h + 2, w + 2)[:, :, 1:h + 1, 1:w + 1]


def _maxpool2x2(x_bchw):
    # TODO(synk): fuse into the preceding conv epilogue at real resolutions.
    b, c, h, w = x_bchw.shape
    return x_bchw.reshape(b, c, h // 2, 2, w // 2, 2).max(axis=(3, 5))


def _taps(w_oihw):
    """PyTorch (Cout, Cin, 3, 3) -> (9, Cout, Cin) bf16, tap index = dy*3+dx."""
    cout, cin, kh, kw = w_oihw.shape
    return jnp.transpose(w_oihw, (2, 3, 0, 1)).reshape(
        kh * kw, cout, cin).astype(jnp.bfloat16)


def _interp_matrix(n_in, n_out):
    """1-D bilinear interpolation matrix, align_corners=True."""
    if n_in == 1:
        return jnp.ones((n_out, 1), jnp.float32)
    src = jnp.arange(n_out, dtype=jnp.float32) * (n_in - 1) / (n_out - 1)
    i0 = jnp.clip(jnp.floor(src).astype(jnp.int32), 0, n_in - 2)
    frac = src - i0.astype(jnp.float32)
    m = jnp.zeros((n_out, n_in), jnp.float32)
    rows = jnp.arange(n_out)
    m = m.at[rows, i0].add(1.0 - frac)
    m = m.at[rows, i0 + 1].add(frac)
    return m


# ----------------------------- Pallas kernels ------------------------------

def _conv3x3_kernel(x_ref, w_ref, b_ref, m_ref, o_ref, *, wp, lp, cin, relu):
    """3x3 conv, padding=1: 9 in-kernel taps -> (Cout, Lp), bias, ReLU, mask."""
    acc = None
    for dy in range(3):
        for dx in range(3):
            off = dy * wp + dx
            xs = x_ref[0, :, off:off + lp]                 # (Cin, Lp)
            wt = w_ref[dy * 3 + dx]                        # (Cout, Cin)
            if cin == 1:                                   # outer product on VPU
                contrib = wt.astype(jnp.float32) * xs.astype(jnp.float32)
            else:
                contrib = jnp.dot(wt, xs, preferred_element_type=jnp.float32)
            acc = contrib if acc is None else acc + contrib
    y = acc + b_ref[...]
    if relu:
        y = jnp.maximum(y, 0.0)
    # zero the padding positions so the output is valid input for the next conv
    o_ref[0] = (y * m_ref[...]).astype(o_ref.dtype)


def conv3x3(x_ext, w9, b, mask, wp, *, relu=True, out_dtype=jnp.bfloat16):
    bsz, cin, lpe = x_ext.shape
    _, cout, _ = w9.shape
    lp = mask.shape[-1]
    kern = functools.partial(_conv3x3_kernel, wp=wp, lp=lp, cin=cin, relu=relu)
    return pl.pallas_call(
        kern,
        out_shape=jax.ShapeDtypeStruct((bsz, cout, lp), out_dtype),
        grid=(bsz,),
        in_specs=[
            pl.BlockSpec((1, cin, lpe), lambda i: (i, 0, 0)),
            pl.BlockSpec((9, cout, cin), lambda i: (0, 0, 0)),
            pl.BlockSpec((cout, 1), lambda i: (0, 0)),
            pl.BlockSpec((1, lp), lambda i: (0, 0)),
        ],
        out_specs=pl.BlockSpec((1, cout, lp), lambda i: (i, 0, 0)),
        compiler_params=pltpu.CompilerParams(
            dimension_semantics=("parallel",)),
    )(x_ext, w9, b.reshape(cout, 1).astype(jnp.float32), mask)


def _head_kernel(x_ref, w1_ref, b1_ref, w2_ref, b2_ref,
                 lg_ref, rd_ref, pb_ref, *, wp, lp, n_det, des_off, n_des):
    """Fused det1/des1 3x3 conv + block-diagonal det2/des2 1x1 + softmax."""
    cmid = w1_ref.shape[1]
    acc = jnp.zeros((cmid, lp), jnp.float32)
    for dy in range(3):
        for dx in range(3):
            off = dy * wp + dx
            xs = x_ref[0, :, off:off + lp]                 # (16, Lp)
            acc = acc + jnp.dot(w1_ref[dy * 3 + dx], xs,
                                preferred_element_type=jnp.float32)
    h1 = jnp.maximum(acc + b1_ref[...], 0.0).astype(jnp.bfloat16)  # stays in VMEM
    y2 = jnp.dot(w2_ref[...], h1,
                 preferred_element_type=jnp.float32) + b2_ref[...]  # (Ctot, Lp)

    # channel softmax over the detector rows only (exact divide)
    row = jax.lax.broadcasted_iota(jnp.int32, y2.shape, 0)
    det = row < n_det
    z = jnp.where(det, y2, -jnp.inf)
    zmax = jnp.max(z, axis=0, keepdims=True)
    e = jnp.where(det, jnp.exp(z - zmax), 0.0)
    p = e / jnp.sum(e, axis=0, keepdims=True)

    lg_ref[0] = y2[:n_det]
    rd_ref[0] = y2[des_off:des_off + n_des]
    pb_ref[0] = p[:n_det - 1]                              # dustbin dropped here


def head_fused(x_ext, w1_9, b1, w2_blk, b2_blk, wp, *, n_det, n_des, des_off):
    bsz, cin, lpe = x_ext.shape
    lp = lpe - 2 * (wp + 1)
    cmid = w1_9.shape[1]
    ctot = w2_blk.shape[0]
    kern = functools.partial(_head_kernel, wp=wp, lp=lp, n_det=n_det,
                             des_off=des_off, n_des=n_des)
    return pl.pallas_call(
        kern,
        out_shape=(jax.ShapeDtypeStruct((bsz, n_det, lp), jnp.float32),
                   jax.ShapeDtypeStruct((bsz, n_des, lp), jnp.float32),
                   jax.ShapeDtypeStruct((bsz, n_det - 1, lp), jnp.float32)),
        grid=(bsz,),
        in_specs=[
            pl.BlockSpec((1, cin, lpe), lambda i: (i, 0, 0)),
            pl.BlockSpec((9, cmid, cin), lambda i: (0, 0, 0)),
            pl.BlockSpec((cmid, 1), lambda i: (0, 0)),
            pl.BlockSpec((ctot, cmid), lambda i: (0, 0)),
            pl.BlockSpec((ctot, 1), lambda i: (0, 0)),
        ],
        out_specs=(pl.BlockSpec((1, n_det, lp), lambda i: (i, 0, 0)),
                   pl.BlockSpec((1, n_des, lp), lambda i: (i, 0, 0)),
                   pl.BlockSpec((1, n_det - 1, lp), lambda i: (i, 0, 0))),
        compiler_params=pltpu.CompilerParams(
            dimension_semantics=("parallel",)),
    )(x_ext, w1_9, b1.reshape(cmid, 1).astype(jnp.float32),
      w2_blk, b2_blk.reshape(ctot, 1).astype(jnp.float32))


def _upsample_l2_kernel(x_ref, ah_ref, awt_ref, o_ref, up_ref):
    """Separable bilinear upsample (both passes) + channel L2-norm, per batch."""
    c = x_ref.shape[1]
    # TODO(synk): per-channel unrolled loop is fine for C=16; block it for real C.
    for ci in range(c):
        t = jnp.dot(x_ref[0, ci], awt_ref[...],
                    preferred_element_type=jnp.float32)          # (Hc8, Wout)
        up_ref[ci] = jnp.dot(ah_ref[...], t,
                             preferred_element_type=jnp.float32)  # (Hout, Wout)
    up = up_ref[...]                                              # (C, Hout, Wout)
    ssum = jnp.sum(up * up, axis=0, keepdims=True)
    inv = jax.lax.rsqrt(jnp.maximum(ssum, 1e-24))   # == x / max(||x||_2, 1e-12)
    o_ref[0] = (up * inv).astype(o_ref.dtype)


def upsample_l2(raw_desc_bchw, r):
    b, c, hc, wc = raw_desc_bchw.shape
    hout, wout = hc * r, wc * r
    hc8, wc8 = _round_up(hc, 8), _round_up(wc, 8)
    ah = jnp.pad(_interp_matrix(hc, hout), ((0, 0), (0, hc8 - hc)))      # (Hout, Hc8)
    awt = jnp.pad(_interp_matrix(wc, wout).T, ((0, wc8 - wc), (0, 0)))   # (Wc8, Wout)
    x = jnp.pad(raw_desc_bchw.astype(jnp.float32),
                ((0, 0), (0, 0), (0, hc8 - hc), (0, wc8 - wc)))
    return pl.pallas_call(
        _upsample_l2_kernel,
        out_shape=jax.ShapeDtypeStruct((b, c, hout, wout), jnp.float32),
        grid=(b,),
        in_specs=[pl.BlockSpec((1, c, hc8, wc8), lambda i: (i, 0, 0, 0)),
                  pl.BlockSpec((hout, hc8), lambda i: (0, 0)),
                  pl.BlockSpec((wc8, wout), lambda i: (0, 0))],
        out_specs=pl.BlockSpec((1, c, hout, wout), lambda i: (i, 0, 0, 0)),
        scratch_shapes=[pltpu.VMEM((c, hout, wout), jnp.float32)],
        compiler_params=pltpu.CompilerParams(
            dimension_semantics=("parallel",)),
    )(x, ah, awt)


# ------------------------------ model ---------------------------------------

def init_params(key):
    def conv_init(k, cout, cin, ksz):
        kw_, kb_ = jax.random.split(k)
        fan_in = cin * ksz * ksz
        w = jax.random.normal(kw_, (cout, cin, ksz, ksz), jnp.float32) / jnp.sqrt(
            jnp.float32(fan_in))
        b = jax.random.normal(kb_, (cout,), jnp.float32) * 0.01
        return (w, b)

    ks = jax.random.split(key, 8)
    return {
        'conv1a': conv_init(ks[0], 8, 1, 3),
        'conv1b': conv_init(ks[1], 8, 8, 3),
        'conv2a': conv_init(ks[2], 16, 8, 3),
        'conv2b': conv_init(ks[3], 16, 16, 3),
        'det1':   conv_init(ks[4], 32, 16, 3),
        'det2':   conv_init(ks[5], 17, 32, 1),   # grid_size^2 + 1 dustbin
        'des1':   conv_init(ks[6], 32, 16, 3),
        'des2':   conv_init(ks[7], 16, 32, 1),   # descriptor_size
    }


def superpoint_forward(params, x_nchw, cfg):
    r = cfg['grid_size']
    n_det = r * r + 1
    n_des = cfg['descriptor_size']
    bsz, _, h, w = x_nchw.shape

    # --- VGG backbone (bf16 activations, channels on sublanes / spatial on lanes)
    wp1 = w + 2
    mask1 = _make_mask(h, w)
    x = _prep_ext(x_nchw.astype(jnp.bfloat16))
    y = conv3x3(x, _taps(params['conv1a'][0]), params['conv1a'][1], mask1, wp1)
    y = conv3x3(_ext(y, wp1), _taps(params['conv1b'][0]), params['conv1b'][1],
                mask1, wp1)
    y = _maxpool2x2(_interior(y, h, w))

    h2, w2 = h // 2, w // 2
    wp2 = w2 + 2
    mask2 = _make_mask(h2, w2)
    y = conv3x3(_prep_ext(y), _taps(params['conv2a'][0]), params['conv2a'][1],
                mask2, wp2)
    y = conv3x3(_ext(y, wp2), _taps(params['conv2b'][0]), params['conv2b'][1],
                mask2, wp2)
    y = _maxpool2x2(_interior(y, h2, w2))              # (B, 16, Hc, Wc)

    hc, wc = h2 // 2, w2 // 2
    wpc = wc + 2

    # --- heads: det1+des1 3x3 conv, block-diagonal det2+des2 1x1, softmax,
    #            all fused into a single kernel (h1 never leaves VMEM) ---
    w1 = jnp.concatenate([params['det1'][0], params['des1'][0]], axis=0)  # (64,16,3,3)
    b1 = jnp.concatenate([params['det1'][1], params['des1'][1]])
    cmid_half = params['det2'][0].shape[1]             # 32
    des_off = _round_up(n_det, 8)                      # 24 (8-aligned desc rows)
    ctot = des_off + n_des                             # 40
    w2_blk = jnp.zeros((ctot, 2 * cmid_half), jnp.float32)
    w2_blk = w2_blk.at[:n_det, :cmid_half].set(
        params['det2'][0].reshape(n_det, cmid_half))
    w2_blk = w2_blk.at[des_off:, cmid_half:].set(
        params['des2'][0].reshape(n_des, cmid_half))
    b2_blk = jnp.zeros((ctot,), jnp.float32)
    b2_blk = b2_blk.at[:n_det].set(params['det2'][1])
    b2_blk = b2_blk.at[des_off:].set(params['des2'][1])

    logits_f, raw_f, probs_f = head_fused(
        _prep_ext(y), _taps(w1), b1, w2_blk.astype(jnp.bfloat16), b2_blk, wpc,
        n_det=n_det, n_des=n_des, des_off=des_off)

    logits = _interior(logits_f, hc, wc)               # (B, 17, Hc, Wc)
    raw_desc = _interior(raw_f, hc, wc)                # (B, 16, Hc, Wc)
    probs_i = _interior(probs_f, hc, wc)               # (B, 16, Hc, Wc)

    # --- probs: DepthToSpace (dustbin already dropped in-kernel) ---
    probs = probs_i.reshape(bsz, r, r, hc, wc)
    probs = jnp.transpose(probs, (0, 3, 1, 4, 2)).reshape(bsz, hc * r, wc * r)
    # (torch .squeeze() only removes singleton dims; batch is preserved for B>1)

    # --- desc: fused separable bilinear upsample + channel L2 normalize ---
    desc = upsample_l2(raw_desc, r)                    # (B, 16, H, W) f32

    return {'logits': logits, 'probs': probs, 'raw_desc': raw_desc, 'desc': desc}


if __name__ == "__main__":
    cfg = {'grid_size': 4, 'descriptor_size': 16}
    key = jax.random.PRNGKey(0)
    kp, kx = jax.random.split(key)
    params = init_params(kp)
    x = jax.random.normal(kx, (2, 1, 16, 16), jnp.float32)   # NCHW, grayscale

    fwd = jax.jit(functools.partial(superpoint_forward, cfg=cfg))
    out = fwd(params, x)
    jax.block_until_ready(out)

    assert out['logits'].shape == (2, 17, 4, 4)
    assert out['probs'].shape == (2, 16, 16)
    assert out['raw_desc'].shape == (2, 16, 4, 4)
    assert out['desc'].shape == (2, 16, 16, 16)
    assert bool(jnp.all(jnp.isfinite(out['desc'])))
    assert bool(jnp.all(jnp.isfinite(out['probs'])))
    print("KERNEL_OK")
</pallas_src>

<mosaic_0001>
module attributes {stable_mosaic.version = 11 : i64} {
  func.func private @main(%arg0: i32) attributes {dimension_semantics = [#tpu.dimension_semantics<core_parallel>], iteration_bounds = array<i64: 2>, tpu.core_type = #tpu.core_type<sc_scalar_subcore>, window_params = []} {
    return
  }
}

module attributes {stable_mosaic.version = 11 : i64} {
  func.func private @main(%arg0: i32) attributes {dimension_semantics = [#tpu.dimension_semantics<core_parallel>], iteration_bounds = array<i64: 2>, tpu.core_type = #tpu.core_type<sc_scalar_subcore>, window_params = []} {
    return
  }
}

module attributes {stable_mosaic.version = 11 : i64} {
  func.func @_conv3x3_kernel(%arg0: i32, %arg1: memref<1x1x362xbf16, #tpu.memory_space<vmem>>, %arg2: memref<9x8x1xbf16, #tpu.memory_space<vmem>>, %arg3: memref<8x1xf32, #tpu.memory_space<vmem>>, %arg4: memref<1x324xf32, #tpu.memory_space<vmem>>, %arg5: memref<1x8x324xbf16, #tpu.memory_space<vmem>>) attributes {dimension_semantics = [#tpu.dimension_semantics<parallel>], iteration_bounds = array<i64: 2>, scalar_prefetch = 0 : i64, scratch_operands = 0 : i64, tpu.core_type = #tpu.core_type<tc>, window_params = [{transform_indices = @transform_0, window_bounds = array<i64: 1, 1, 362>}, {pipeline_mode = #tpu.pipeline_mode<synchronous>, transform_indices = @transform_1, window_bounds = array<i64: 9, 8, 1>}, {pipeline_mode = #tpu.pipeline_mode<synchronous>, transform_indices = @transform_2, window_bounds = array<i64: 8, 1>}, {pipeline_mode = #tpu.pipeline_mode<synchronous>, transform_indices = @transform_3, window_bounds = array<i64: 1, 324>}, {transform_indices = @transform_4, window_bounds = array<i64: 1, 8, 324>}]} {
    %c0 = arith.constant 0 : index
    %c0_0 = arith.constant 0 : index
    %c0_1 = arith.constant 0 : index
    %0 = vector.load %arg1[%c0, %c0_0, %c0_1] : memref<1x1x362xbf16, #tpu.memory_space<vmem>>, vector<1x1x324xbf16>
    %1 = vector.shape_cast %0 : vector<1x1x324xbf16> to vector<1x324xbf16>
    %c0_2 = arith.constant 0 : index
    %c0_3 = arith.constant 0 : index
    %c0_4 = arith.constant 0 : index
    %2 = vector.load %arg2[%c0_2, %c0_3, %c0_4] : memref<9x8x1xbf16, #tpu.memory_space<vmem>>, vector<1x8x1xbf16>
    %3 = vector.shape_cast %2 : vector<1x8x1xbf16> to vector<8x1xbf16>
    %4 = arith.extf %3 : vector<8x1xbf16> to vector<8x1xf32>
    %5 = arith.extf %1 : vector<1x324xbf16> to vector<1x324xf32>
    %6 = vector.broadcast %4 : vector<8x1xf32> to vector<8x324xf32>
    %7 = vector.broadcast %5 : vector<1x324xf32> to vector<8x324xf32>
    %8 = arith.mulf %6, %7 : vector<8x324xf32>
    %c0_5 = arith.constant 0 : index
    %c0_6 = arith.constant 0 : index
    %c1 = arith.constant 1 : index
    %9 = vector.load %arg1[%c0_5, %c0_6, %c1] : memref<1x1x362xbf16, #tpu.memory_space<vmem>>, vector<1x1x324xbf16>
    %10 = vector.shape_cast %9 : vector<1x1x324xbf16> to vector<1x324xbf16>
    %c1_7 = arith.constant 1 : index
    %c0_8 = arith.constant 0 : index
    %c0_9 = arith.constant 0 : index
    %11 = vector.load %arg2[%c1_7, %c0_8, %c0_9] : memref<9x8x1xbf16, #tpu.memory_space<vmem>>, vector<1x8x1xbf16>
    %12 = vector.shape_cast %11 : vector<1x8x1xbf16> to vector<8x1xbf16>
    %13 = arith.extf %12 : vector<8x1xbf16> to vector<8x1xf32>
    %14 = arith.extf %10 : vector<1x324xbf16> to vector<1x324xf32>
    %15 = vector.broadcast %13 : vector<8x1xf32> to vector<8x324xf32>
    %16 = vector.broadcast %14 : vector<1x324xf32> to vector<8x324xf32>
    %17 = arith.mulf %15, %16 : vector<8x324xf32>
    %18 = arith.addf %8, %17 : vector<8x324xf32>
    %c0_10 = arith.constant 0 : index
    %c0_11 = arith.constant 0 : index
    %c2 = arith.constant 2 : index
    %19 = vector.load %arg1[%c0_10, %c0_11, %c2] : memref<1x1x362xbf16, #tpu.memory_space<vmem>>, vector<1x1x324xbf16>
    %20 = vector.shape_cast %19 : vector<1x1x324xbf16> to vector<1x324xbf16>
    %c2_12 = arith.constant 2 : index
    %c0_13 = arith.constant 0 : index
    %c0_14 = arith.constant 0 : index
    %21 = vector.load %arg2[%c2_12, %c0_13, %c0_14] : memref<9x8x1xbf16, #tpu.memory_space<vmem>>, vector<1x8x1xbf16>
    %22 = vector.shape_cast %21 : vector<1x8x1xbf16> to vector<8x1xbf16>
    %23 = arith.extf %22 : vector<8x1xbf16> to vector<8x1xf32>
    %24 = arith.extf %20 : vector<1x324xbf16> to vector<1x324xf32>
    %25 = vector.broadcast %23 : vector<8x1xf32> to vector<8x324xf32>
    %26 = vector.broadcast %24 : vector<1x324xf32> to vector<8x324xf32>
    %27 = arith.mulf %25, %26 : vector<8x324xf32>
    %28 = arith.addf %18, %27 : vector<8x324xf32>
    %c0_15 = arith.constant 0 : index
    %c0_16 = arith.constant 0 : index
    %c18 = arith.constant 18 : index
    %29 = vector.load %arg1[%c0_15, %c0_16, %c18] : memref<1x1x362xbf16, #tpu.memory_space<vmem>>, vector<1x1x324xbf16>
    %30 = vector.shape_cast %29 : vector<1x1x324xbf16> to vector<1x324xbf16>
    %c3 = arith.constant 3 : index
    %c0_17 = arith.constant 0 : index
    %c0_18 = arith.constant 0 : index
    %31 = vector.load %arg2[%c3, %c0_17, %c0_18] : memref<9x8x1xbf16, #tpu.memory_space<vmem>>, vector<1x8x1xbf16>
    %32 = vector.shape_cast %31 : vector<1x8x1xbf16> to vector<8x1xbf16>
    %33 = arith.extf %32 : vector<8x1xbf16> to vector<8x1xf32>
    %34 = arith.extf %30 : vector<1x324xbf16> to vector<1x324xf32>
    %35 = vector.broadcast %33 : vector<8x1xf32> to vector<8x324xf32>
    %36 = vector.broadcast %34 : vector<1x324xf32> to vector<8x324xf32>
    %37 = arith.mulf %35, %36 : vector<8x324xf32>
    %38 = arith.addf %28, %37 : vector<8x324xf32>
    %c0_19 = arith.constant 0 : index
    %c0_20 = arith.constant 0 : index
    %c19 = arith.constant 19 : index
    %39 = vector.load %arg1[%c0_19, %c0_20, %c19] : memref<1x1x362xbf16, #tpu.memory_space<vmem>>, vector<1x1x324xbf16>
    %40 = vector.shape_cast %39 : vector<1x1x324xbf16> to vector<1x324xbf16>
    %c4 = arith.constant 4 : index
    %c0_21 = arith.constant 0 : index
    %c0_22 = arith.constant 0 : index
    %41 = vector.load %arg2[%c4, %c0_21, %c0_22] : memref<9x8x1xbf16, #tpu.memory_space<vmem>>, vector<1x8x1xbf16>
    %42 = vector.shape_cast %41 : vector<1x8x1xbf16> to vector<8x1xbf16>
    %43 = arith.extf %42 : vector<8x1xbf16> to vector<8x1xf32>
    %44 = arith.extf %40 : vector<1x324xbf16> to vector<1x324xf32>
    %45 = vector.broadcast %43 : vector<8x1xf32> to vector<8x324xf32>
    %46 = vector.broadcast %44 : vector<1x324xf32> to vector<8x324xf32>
    %47 = arith.mulf %45, %46 : vector<8x324xf32>
    %48 = arith.addf %38, %47 : vector<8x324xf32>
    %c0_23 = arith.constant 0 : index
    %c0_24 = arith.constant 0 : index
    %c20 = arith.constant 20 : index
    %49 = vector.load %arg1[%c0_23, %c0_24, %c20] : memref<1x1x362xbf16, #tpu.memory_space<vmem>>, vector<1x1x324xbf16>
    %50 = vector.shape_cast %49 : vector<1x1x324xbf16> to vector<1x324xbf16>
    %c5 = arith.constant 5 : index
    %c0_25 = arith.constant 0 : index
    %c0_26 = arith.constant 0 : index
    %51 = vector.load %arg2[%c5, %c0_25, %c0_26] : memref<9x8x1xbf16, #tpu.memory_space<vmem>>, vector<1x8x1xbf16>
    %52 = vector.shape_cast %51 : vector<1x8x1xbf16> to vector<8x1xbf16>
    %53 = arith.extf %52 : vector<8x1xbf16> to vector<8x1xf32>
    %54 = arith.extf %50 : vector<1x324xbf16> to vector<1x324xf32>
    %55 = vector.broadcast %53 : vector<8x1xf32> to vector<8x324xf32>
    %56 = vector.broadcast %54 : vector<1x324xf32> to vector<8x324xf32>
    %57 = arith.mulf %55, %56 : vector<8x324xf32>
    %58 = arith.addf %48, %57 : vector<8x324xf32>
    %c0_27 = arith.constant 0 : index
    %c0_28 = arith.constant 0 : index
    %c36 = arith.constant 36 : index
    %59 = vector.load %arg1[%c0_27, %c0_28, %c36] : memref<1x1x362xbf16, #tpu.memory_space<vmem>>, vector<1x1x324xbf16>
    %60 = vector.shape_cast %59 : vector<1x1x324xbf16> to vector<1x324xbf16>
    %c6 = arith.constant 6 : index
    %c0_29 = arith.constant 0 : index
    %c0_30 = arith.constant 0 : index
    %61 = vector.load %arg2[%c6, %c0_29, %c0_30] : memref<9x8x1xbf16, #tpu.memory_space<vmem>>, vector<1x8x1xbf16>
    %62 = vector.shape_cast %61 : vector<1x8x1xbf16> to vector<8x1xbf16>
    %63 = arith.extf %62 : vector<8x1xbf16> to vector<8x1xf32>
    %64 = arith.extf %60 : vector<1x324xbf16> to vector<1x324xf32>
    %65 = vector.broadcast %63 : vector<8x1xf32> to vector<8x324xf32>
    %66 = vector.broadcast %64 : vector<1x324xf32> to vector<8x324xf32>
    %67 = arith.mulf %65, %66 : vector<8x324xf32>
    %68 = arith.addf %58, %67 : vector<8x324xf32>
    %c0_31 = arith.constant 0 : index
    %c0_32 = arith.constant 0 : index
    %c37 = arith.constant 37 : index
    %69 = vector.load %arg1[%c0_31, %c0_32, %c37] : memref<1x1x362xbf16, #tpu.memory_space<vmem>>, vector<1x1x324xbf16>
    %70 = vector.shape_cast %69 : vector<1x1x324xbf16> to vector<1x324xbf16>
    %c7 = arith.constant 7 : index
    %c0_33 = arith.constant 0 : index
    %c0_34 = arith.constant 0 : index
    %71 = vector.load %arg2[%c7, %c0_33, %c0_34] : memref<9x8x1xbf16, #tpu.memory_space<vmem>>, vector<1x8x1xbf16>
    %72 = vector.shape_cast %71 : vector<1x8x1xbf16> to vector<8x1xbf16>
    %73 = arith.extf %72 : vector<8x1xbf16> to vector<8x1xf32>
    %74 = arith.extf %70 : vector<1x324xbf16> to vector<1x324xf32>
    %75 = vector.broadcast %73 : vector<8x1xf32> to vector<8x324xf32>
    %76 = vector.broadcast %74 : vector<1x324xf32> to vector<8x324xf32>
    %77 = arith.mulf %75, %76 : vector<8x324xf32>
    %78 = arith.addf %68, %77 : vector<8x324xf32>
    %c0_35 = arith.constant 0 : index
    %c0_36 = arith.constant 0 : index
    %c38 = arith.constant 38 : index
    %79 = vector.load %arg1[%c0_35, %c0_36, %c38] : memref<1x1x362xbf16, #tpu.memory_space<vmem>>, vector<1x1x324xbf16>
    %80 = vector.shape_cast %79 : vector<1x1x324xbf16> to vector<1x324xbf16>
    %c8 = arith.constant 8 : index
    %c0_37 = arith.constant 0 : index
    %c0_38 = arith.constant 0 : index
    %81 = vector.load %arg2[%c8, %c0_37, %c0_38] : memref<9x8x1xbf16, #tpu.memory_space<vmem>>, vector<1x8x1xbf16>
    %82 = vector.shape_cast %81 : vector<1x8x1xbf16> to vector<8x1xbf16>
    %83 = arith.extf %82 : vector<8x1xbf16> to vector<8x1xf32>
    %84 = arith.extf %80 : vector<1x324xbf16> to vector<1x324xf32>
    %85 = vector.broadcast %83 : vector<8x1xf32> to vector<8x324xf32>
    %86 = vector.broadcast %84 : vector<1x324xf32> to vector<8x324xf32>
    %87 = arith.mulf %85, %86 : vector<8x324xf32>
    %88 = arith.addf %78, %87 : vector<8x324xf32>
    %c0_39 = arith.constant 0 : index
    %c0_40 = arith.constant 0 : index
    %89 = vector.load %arg3[%c0_39, %c0_40] : memref<8x1xf32, #tpu.memory_space<vmem>>, vector<8x1xf32>
    %90 = vector.broadcast %89 : vector<8x1xf32> to vector<8x324xf32>
    %91 = arith.addf %88, %90 : vector<8x324xf32>
    %cst = arith.constant 0.000000e+00 : f32
    %92 = vector.broadcast %cst : f32 to vector<8x324xf32>
    %93 = arith.maximumf %91, %92 : vector<8x324xf32>
    %c0_41 = arith.constant 0 : index
    %c0_42 = arith.constant 0 : index
    %94 = vector.load %arg4[%c0_41, %c0_42] : memref<1x324xf32, #tpu.memory_space<vmem>>, vector<1x324xf32>
    %95 = vector.broadcast %94 : vector<1x324xf32> to vector<8x324xf32>
    %96 = arith.mulf %93, %95 : vector<8x324xf32>
    %97 = arith.truncf %96 : vector<8x324xf32> to vector<8x324xbf16>
    %c0_43 = arith.constant 0 : index
    %c0_44 = arith.constant 0 : index
    %c0_45 = arith.constant 0 : index
    %98 = vector.load %arg5[%c0_43, %c0_44, %c0_45] : memref<1x8x324xbf16, #tpu.memory_space<vmem>>, vector<1x8x324xbf16>
    %99 = vector.shape_cast %98 : vector<1x8x324xbf16> to vector<8x324xbf16>
    %100 = vector.shape_cast %97 : vector<8x324xbf16> to vector<1x8x324xbf16>
    tpu.vector_store %arg5[%c0_43, %c0_44, %c0_45], %100 {strides = array<i32>} : memref<1x8x324xbf16, #tpu.memory_space<vmem>>, vector<1x8x324xbf16>,
    return
  }
  func.func @transform_0(%arg0: i32) -> (i32, i32, i32) {
    %c0_i32 = arith.constant 0 : i32
    %c0_i32_0 = arith.constant 0 : i32
    %c0_i32_1 = arith.constant 0 : i32
    return %arg0, %c0_i32, %c0_i32_0 : i32, i32, i32
  }
  func.func @transform_1(%arg0: i32) -> (i32, i32, i32) {
    %c0_i32 = arith.constant 0 : i32
    %c0_i32_0 = arith.constant 0 : i32
    %c0_i32_1 = arith.constant 0 : i32
    %c0_i32_2 = arith.constant 0 : i32
    return %c0_i32, %c0_i32_0, %c0_i32_1 : i32, i32, i32
  }
  func.func @transform_2(%arg0: i32) -> (i32, i32) {
    %c0_i32 = arith.constant 0 : i32
    %c0_i32_0 = arith.constant 0 : i32
    %c0_i32_1 = arith.constant 0 : i32
    return %c0_i32, %c0_i32_0 : i32, i32
  }
  func.func @transform_3(%arg0: i32) -> (i32, i32) {
    %c0_i32 = arith.constant 0 : i32
    %c0_i32_0 = arith.constant 0 : i32
    %c0_i32_1 = arith.constant 0 : i32
    return %c0_i32, %c0_i32_0 : i32, i32
  }
  func.func @transform_4(%arg0: i32) -> (i32, i32, i32) {
    %c0_i32 = arith.constant 0 : i32
    %c0_i32_0 = arith.constant 0 : i32
    %c0_i32_1 = arith.constant 0 : i32
    return %arg0, %c0_i32, %c0_i32_0 : i32, i32, i32
  }
}

module attributes {stable_mosaic.version = 11 : i64} {
  func.func @_conv3x3_kernel(%arg0: i32, %arg1: memref<1x8x362xbf16, #tpu.memory_space<vmem>>, %arg2: memref<9x8x8xbf16, #tpu.memory_space<vmem>>, %arg3: memref<8x1xf32, #tpu.memory_space<vmem>>, %arg4: memref<1x324xf32, #tpu.memory_space<vmem>>, %arg5: memref<1x8x324xbf16, #tpu.memory_space<vmem>>) attributes {dimension_semantics = [#tpu.dimension_semantics<parallel>], iteration_bounds = array<i64: 2>, scalar_prefetch = 0 : i64, scratch_operands = 0 : i64, tpu.core_type = #tpu.core_type<tc>, window_params = [{transform_indices = @transform_0, window_bounds = array<i64: 1, 8, 362>}, {pipeline_mode = #tpu.pipeline_mode<synchronous>, transform_indices = @transform_1, window_bounds = array<i64: 9, 8, 8>}, {pipeline_mode = #tpu.pipeline_mode<synchronous>, transform_indices = @transform_2, window_bounds = array<i64: 8, 1>}, {pipeline_mode = #tpu.pipeline_mode<synchronous>, transform_indices = @transform_3, window_bounds = array<i64: 1, 324>}, {transform_indices = @transform_4, window_bounds = array<i64: 1, 8, 324>}]} {
    %c0 = arith.constant 0 : index
    %c0_0 = arith.constant 0 : index
    %c0_1 = arith.constant 0 : index
    %0 = vector.load %arg1[%c0, %c0_0, %c0_1] : memref<1x8x362xbf16, #tpu.memory_space<vmem>>, vector<1x8x324xbf16>
    %1 = vector.shape_cast %0 : vector<1x8x324xbf16> to vector<8x324xbf16>
    %c0_2 = arith.constant 0 : index
    %c0_3 = arith.constant 0 : index
    %c0_4 = arith.constant 0 : index
    %2 = vector.load %arg2[%c0_2, %c0_3, %c0_4] : memref<9x8x8xbf16, #tpu.memory_space<vmem>>, vector<1x8x8xbf16>
    %3 = vector.shape_cast %2 : vector<1x8x8xbf16> to vector<8x8xbf16>
    %cst = arith.constant dense<0.000000e+00> : vector<8x324xf32>
    %4 = tpu.matmul %3, %1, %cst {dimension_numbers = #tpu.dot_dimension_numbers<[1], [0], [0], [1], [0, 0, 1, 1], [], []>} : vector<8x8xbf16>, vector<8x324xbf16>, vector<8x324xf32> -> vector<8x324xf32>
    %c0_5 = arith.constant 0 : index
    %c0_6 = arith.constant 0 : index
    %c1 = arith.constant 1 : index
    %5 = vector.load %arg1[%c0_5, %c0_6, %c1] : memref<1x8x362xbf16, #tpu.memory_space<vmem>>, vector<1x8x324xbf16>
    %6 = vector.shape_cast %5 : vector<1x8x324xbf16> to vector<8x324xbf16>
    %c1_7 = arith.constant 1 : index
    %c0_8 = arith.constant 0 : index
    %c0_9 = arith.constant 0 : index
    %7 = vector.load %arg2[%c1_7, %c0_8, %c0_9] : memref<9x8x8xbf16, #tpu.memory_space<vmem>>, vector<1x8x8xbf16>
    %8 = vector.shape_cast %7 : vector<1x8x8xbf16> to vector<8x8xbf16>
    %cst_10 = arith.constant dense<0.000000e+00> : vector<8x324xf32>
    %9 = tpu.matmul %8, %6, %cst_10 {dimension_numbers = #tpu.dot_dimension_numbers<[1], [0], [0], [1], [0, 0, 1, 1], [], []>} : vector<8x8xbf16>, vector<8x324xbf16>, vector<8x324xf32> -> vector<8x324xf32>
    %10 = arith.addf %4, %9 : vector<8x324xf32>
    %c0_11 = arith.constant 0 : index
    %c0_12 = arith.constant 0 : index
    %c2 = arith.constant 2 : index
    %11 = vector.load %arg1[%c0_11, %c0_12, %c2] : memref<1x8x362xbf16, #tpu.memory_space<vmem>>, vector<1x8x324xbf16>
    %12 = vector.shape_cast %11 : vector<1x8x324xbf16> to vector<8x324xbf16>
    %c2_13 = arith.constant 2 : index
    %c0_14 = arith.constant 0 : index
    %c0_15 = arith.constant 0 : index
    %13 = vector.load %arg2[%c2_13, %c0_14, %c0_15] : memref<9x8x8xbf16, #tpu.memory_space<vmem>>, vector<1x8x8xbf16>
    %14 = vector.shape_cast %13 : vector<1x8x8xbf16> to vector<8x8xbf16>
    %cst_16 = arith.constant dense<0.000000e+00> : vector<8x324xf32>
    %15 = tpu.matmul %14, %12, %cst_16 {dimension_numbers = #tpu.dot_dimension_numbers<[1], [0], [0], [1], [0, 0, 1, 1], [], []>} : vector<8x8xbf16>, vector<8x324xbf16>, vector<8x324xf32> -> vector<8x324xf32>
    %16 = arith.addf %10, %15 : vector<8x324xf32>
    %c0_17 = arith.constant 0 : index
    %c0_18 = arith.constant 0 : index
    %c18 = arith.constant 18 : index
    %17 = vector.load %arg1[%c0_17, %c0_18, %c18] : memref<1x8x362xbf16, #tpu.memory_space<vmem>>, vector<1x8x324xbf16>
    %18 = vector.shape_cast %17 : vector<1x8x324xbf16> to vector<8x324xbf16>
    %c3 = arith.constant 3 : index
    %c0_19 = arith.constant 0 : index
    %c0_20 = arith.constant 0 : index
    %19 = vector.load %arg2[%c3, %c0_19, %c0_20] : memref<9x8x8xbf16, #tpu.memory_space<vmem>>, vector<1x8x8xbf16>
    %20 = vector.shape_cast %19 : vector<1x8x8xbf16> to vector<8x8xbf16>
    %cst_21 = arith.constant dense<0.000000e+00> : vector<8x324xf32>
    %21 = tpu.matmul %20, %18, %cst_21 {dimension_numbers = #tpu.dot_dimension_numbers<[1], [0], [0], [1], [0, 0, 1, 1], [], []>} : vector<8x8xbf16>, vector<8x324xbf16>, vector<8x324xf32> -> vector<8x324xf32>
    %22 = arith.addf %16, %21 : vector<8x324xf32>
    %c0_22 = arith.constant 0 : index
    %c0_23 = arith.constant 0 : index
    %c19 = arith.constant 19 : index
    %23 = vector.load %arg1[%c0_22, %c0_23, %c19] : memref<1x8x362xbf16, #tpu.memory_space<vmem>>, vector<1x8x324xbf16>
    %24 = vector.shape_cast %23 : vector<1x8x324xbf16> to vector<8x324xbf16>
    %c4 = arith.constant 4 : index
    %c0_24 = arith.constant 0 : index
    %c0_25 = arith.constant 0 : index
    %25 = vector.load %arg2[%c4, %c0_24, %c0_25] : memref<9x8x8xbf16, #tpu.memory_space<vmem>>, vector<1x8x8xbf16>
    %26 = vector.shape_cast %25 : vector<1x8x8xbf16> to vector<8x8xbf16>
    %cst_26 = arith.constant dense<0.000000e+00> : vector<8x324xf32>
    %27 = tpu.matmul %26, %24, %cst_26 {dimension_numbers = #tpu.dot_dimension_numbers<[1], [0], [0], [1], [0, 0, 1, 1], [], []>} : vector<8x8xbf16>, vector<8x324xbf16>, vector<8x324xf32> -> vector<8x324xf32>
    %28 = arith.addf %22, %27 : vector<8x324xf32>
    %c0_27 = arith.constant 0 : index
    %c0_28 = arith.constant 0 : index
    %c20 = arith.constant 20 : index
    %29 = vector.load %arg1[%c0_27, %c0_28, %c20] : memref<1x8x362xbf16, #tpu.memory_space<vmem>>, vector<1x8x324xbf16>
    %30 = vector.shape_cast %29 : vector<1x8x324xbf16> to vector<8x324xbf16>
    %c5 = arith.constant 5 : index
    %c0_29 = arith.constant 0 : index
    %c0_30 = arith.constant 0 : index
    %31 = vector.load %arg2[%c5, %c0_29, %c0_30] : memref<9x8x8xbf16, #tpu.memory_space<vmem>>, vector<1x8x8xbf16>
    %32 = vector.shape_cast %31 : vector<1x8x8xbf16> to vector<8x8xbf16>
    %cst_31 = arith.constant dense<0.000000e+00> : vector<8x324xf32>
    %33 = tpu.matmul %32, %30, %cst_31 {dimension_numbers = #tpu.dot_dimension_numbers<[1], [0], [0], [1], [0, 0, 1, 1], [], []>} : vector<8x8xbf16>, vector<8x324xbf16>, vector<8x324xf32> -> vector<8x324xf32>
    %34 = arith.addf %28, %33 : vector<8x324xf32>
    %c0_32 = arith.constant 0 : index
    %c0_33 = arith.constant 0 : index
    %c36 = arith.constant 36 : index
    %35 = vector.load %arg1[%c0_32, %c0_33, %c36] : memref<1x8x362xbf16, #tpu.memory_space<vmem>>, vector<1x8x324xbf16>
    %36 = vector.shape_cast %35 : vector<1x8x324xbf16> to vector<8x324xbf16>
    %c6 = arith.constant 6 : index
    %c0_34 = arith.constant 0 : index
    %c0_35 = arith.constant 0 : index
    %37 = vector.load %arg2[%c6, %c0_34, %c0_35] : memref<9x8x8xbf16, #tpu.memory_space<vmem>>, vector<1x8x8xbf16>
    %38 = vector.shape_cast %37 : vector<1x8x8xbf16> to vector<8x8xbf16>
    %cst_36 = arith.constant dense<0.000000e+00> : vector<8x324xf32>
    %39 = tpu.matmul %38, %36, %cst_36 {dimension_numbers = #tpu.dot_dimension_numbers<[1], [0], [0], [1], [0, 0, 1, 1], [], []>} : vector<8x8xbf16>, vector<8x324xbf16>, vector<8x324xf32> -> vector<8x324xf32>
    %40 = arith.addf %34, %39 : vector<8x324xf32>
    %c0_37 = arith.constant 0 : index
    %c0_38 = arith.constant 0 : index
    %c37 = arith.constant 37 : index
    %41 = vector.load %arg1[%c0_37, %c0_38, %c37] : memref<1x8x362xbf16, #tpu.memory_space<vmem>>, vector<1x8x324xbf16>
    %42 = vector.shape_cast %41 : vector<1x8x324xbf16> to vector<8x324xbf16>
    %c7 = arith.constant 7 : index
    %c0_39 = arith.constant 0 : index
    %c0_40 = arith.constant 0 : index
    %43 = vector.load %arg2[%c7, %c0_39, %c0_40] : memref<9x8x8xbf16, #tpu.memory_space<vmem>>, vector<1x8x8xbf16>
    %44 = vector.shape_cast %43 : vector<1x8x8xbf16> to vector<8x8xbf16>
    %cst_41 = arith.constant dense<0.000000e+00> : vector<8x324xf32>
    %45 = tpu.matmul %44, %42, %cst_41 {dimension_numbers = #tpu.dot_dimension_numbers<[1], [0], [0], [1], [0, 0, 1, 1], [], []>} : vector<8x8xbf16>, vector<8x324xbf16>, vector<8x324xf32> -> vector<8x324xf32>
    %46 = arith.addf %40, %45 : vector<8x324xf32>
    %c0_42 = arith.constant 0 : index
    %c0_43 = arith.constant 0 : index
    %c38 = arith.constant 38 : index
    %47 = vector.load %arg1[%c0_42, %c0_43, %c38] : memref<1x8x362xbf16, #tpu.memory_space<vmem>>, vector<1x8x324xbf16>
    %48 = vector.shape_cast %47 : vector<1x8x324xbf16> to vector<8x324xbf16>
    %c8 = arith.constant 8 : index
    %c0_44 = arith.constant 0 : index
    %c0_45 = arith.constant 0 : index
    %49 = vector.load %arg2[%c8, %c0_44, %c0_45] : memref<9x8x8xbf16, #tpu.memory_space<vmem>>, vector<1x8x8xbf16>
    %50 = vector.shape_cast %49 : vector<1x8x8xbf16> to vector<8x8xbf16>
    %cst_46 = arith.constant dense<0.000000e+00> : vector<8x324xf32>
    %51 = tpu.matmul %50, %48, %cst_46 {dimension_numbers = #tpu.dot_dimension_numbers<[1], [0], [0], [1], [0, 0, 1, 1], [], []>} : vector<8x8xbf16>, vector<8x324xbf16>, vector<8x324xf32> -> vector<8x324xf32>
    %52 = arith.addf %46, %51 : vector<8x324xf32>
    %c0_47 = arith.constant 0 : index
    %c0_48 = arith.constant 0 : index
    %53 = vector.load %arg3[%c0_47, %c0_48] : memref<8x1xf32, #tpu.memory_space<vmem>>, vector<8x1xf32>
    %54 = vector.broadcast %53 : vector<8x1xf32> to vector<8x324xf32>
    %55 = arith.addf %52, %54 : vector<8x324xf32>
    %cst_49 = arith.constant 0.000000e+00 : f32
    %56 = vector.broadcast %cst_49 : f32 to vector<8x324xf32>
    %57 = arith.maximumf %55, %56 : vector<8x324xf32>
    %c0_50 = arith.constant 0 : index
    %c0_51 = arith.constant 0 : index
    %58 = vector.load %arg4[%c0_50, %c0_51] : memref<1x324xf32, #tpu.memory_space<vmem>>, vector<1x324xf32>
    %59 = vector.broadcast %58 : vector<1x324xf32> to vector<8x324xf32>
    %60 = arith.mulf %57, %59 : vector<8x324xf32>
    %61 = arith.truncf %60 : vector<8x324xf32> to vector<8x324xbf16>
    %c0_52 = arith.constant 0 : index
    %c0_53 = arith.constant 0 : index
    %c0_54 = arith.constant 0 : index
    %62 = vector.load %arg5[%c0_52, %c0_53, %c0_54] : memref<1x8x324xbf16, #tpu.memory_space<vmem>>, vector<1x8x324xbf16>
    %63 = vector.shape_cast %62 : vector<1x8x324xbf16> to vector<8x324xbf16>
    %64 = vector.shape_cast %61 : vector<8x324xbf16> to vector<1x8x324xbf16>
    tpu.vector_store %arg5[%c0_52, %c0_53, %c0_54], %64 {strides = array<i32>} : memref<1x8x324xbf16, #tpu.memory_space<vmem>>, vector<1x8x324xbf16>,
    return
  }
  func.func @transform_0(%arg0: i32) -> (i32, i32, i32) {
    %c0_i32 = arith.constant 0 : i32
    %c0_i32_0 = arith.constant 0 : i32
    %c0_i32_1 = arith.constant 0 : i32
    return %arg0, %c0_i32, %c0_i32_0 : i32, i32, i32
  }
  func.func @transform_1(%arg0: i32) -> (i32, i32, i32) {
    %c0_i32 = arith.constant 0 : i32
    %c0_i32_0 = arith.constant 0 : i32
    %c0_i32_1 = arith.constant 0 : i32
    %c0_i32_2 = arith.constant 0 : i32
    return %c0_i32, %c0_i32_0, %c0_i32_1 : i32, i32, i32
  }
  func.func @transform_2(%arg0: i32) -> (i32, i32) {
    %c0_i32 = arith.constant 0 : i32
    %c0_i32_0 = arith.constant 0 : i32
    %c0_i32_1 = arith.constant 0 : i32
    return %c0_i32, %c0_i32_0 : i32, i32
  }
  func.func @transform_3(%arg0: i32) -> (i32, i32) {
    %c0_i32 = arith.constant 0 : i32
    %c0_i32_0 = arith.constant 0 : i32
    %c0_i32_1 = arith.constant 0 : i32
    return %c0_i32, %c0_i32_0 : i32, i32
  }
  func.func @transform_4(%arg0: i32) -> (i32, i32, i32) {
    %c0_i32 = arith.constant 0 : i32
    %c0_i32_0 = arith.constant 0 : i32
    %c0_i32_1 = arith.constant 0 : i32
    return %arg0, %c0_i32, %c0_i32_0 : i32, i32, i32
  }
}

module attributes {stable_mosaic.version = 11 : i64} {
  func.func @_conv3x3_kernel(%arg0: i32, %arg1: memref<1x8x122xbf16, #tpu.memory_space<vmem>>, %arg2: memref<9x16x8xbf16, #tpu.memory_space<vmem>>, %arg3: memref<16x1xf32, #tpu.memory_space<vmem>>, %arg4: memref<1x100xf32, #tpu.memory_space<vmem>>, %arg5: memref<1x16x100xbf16, #tpu.memory_space<vmem>>) attributes {dimension_semantics = [#tpu.dimension_semantics<parallel>], iteration_bounds = array<i64: 2>, scalar_prefetch = 0 : i64, scratch_operands = 0 : i64, tpu.core_type = #tpu.core_type<tc>, window_params = [{transform_indices = @transform_0, window_bounds = array<i64: 1, 8, 122>}, {pipeline_mode = #tpu.pipeline_mode<synchronous>, transform_indices = @transform_1, window_bounds = array<i64: 9, 16, 8>}, {pipeline_mode = #tpu.pipeline_mode<synchronous>, transform_indices = @transform_2, window_bounds = array<i64: 16, 1>}, {pipeline_mode = #tpu.pipeline_mode<synchronous>, transform_indices = @transform_3, window_bounds = array<i64: 1, 100>}, {transform_indices = @transform_4, window_bounds = array<i64: 1, 16, 100>}]} {
    %c0 = arith.constant 0 : index
    %c0_0 = arith.constant 0 : index
    %c0_1 = arith.constant 0 : index
    %0 = vector.load %arg1[%c0, %c0_0, %c0_1] : memref<1x8x122xbf16, #tpu.memory_space<vmem>>, vector<1x8x100xbf16>
    %1 = vector.shape_cast %0 : vector<1x8x100xbf16> to vector<8x100xbf16>
    %c0_2 = arith.constant 0 : index
    %c0_3 = arith.constant 0 : index
    %c0_4 = arith.constant 0 : index
    %2 = vector.load %arg2[%c0_2, %c0_3, %c0_4] : memref<9x16x8xbf16, #tpu.memory_space<vmem>>, vector<1x16x8xbf16>
    %3 = vector.shape_cast %2 : vector<1x16x8xbf16> to vector<16x8xbf16>
    %cst = arith.constant dense<0.000000e+00> : vector<16x100xf32>
    %4 = tpu.matmul %3, %1, %cst {dimension_numbers = #tpu.dot_dimension_numbers<[1], [0], [0], [1], [0, 0, 1, 1], [], []>} : vector<16x8xbf16>, vector<8x100xbf16>, vector<16x100xf32> -> vector<16x100xf32>
    %c0_5 = arith.constant 0 : index
    %c0_6 = arith.constant 0 : index
    %c1 = arith.constant 1 : index
    %5 = vector.load %arg1[%c0_5, %c0_6, %c1] : memref<1x8x122xbf16, #tpu.memory_space<vmem>>, vector<1x8x100xbf16>
    %6 = vector.shape_cast %5 : vector<1x8x100xbf16> to vector<8x100xbf16>
    %c1_7 = arith.constant 1 : index
    %c0_8 = arith.constant 0 : index
    %c0_9 = arith.constant 0 : index
    %7 = vector.load %arg2[%c1_7, %c0_8, %c0_9] : memref<9x16x8xbf16, #tpu.memory_space<vmem>>, vector<1x16x8xbf16>
    %8 = vector.shape_cast %7 : vector<1x16x8xbf16> to vector<16x8xbf16>
    %cst_10 = arith.constant dense<0.000000e+00> : vector<16x100xf32>
    %9 = tpu.matmul %8, %6, %cst_10 {dimension_numbers = #tpu.dot_dimension_numbers<[1], [0], [0], [1], [0, 0, 1, 1], [], []>} : vector<16x8xbf16>, vector<8x100xbf16>, vector<16x100xf32> -> vector<16x100xf32>
    %10 = arith.addf %4, %9 : vector<16x100xf32>
    %c0_11 = arith.constant 0 : index
    %c0_12 = arith.constant 0 : index
    %c2 = arith.constant 2 : index
    %11 = vector.load %arg1[%c0_11, %c0_12, %c2] : memref<1x8x122xbf16, #tpu.memory_space<vmem>>, vector<1x8x100xbf16>
    %12 = vector.shape_cast %11 : vector<1x8x100xbf16> to vector<8x100xbf16>
    %c2_13 = arith.constant 2 : index
    %c0_14 = arith.constant 0 : index
    %c0_15 = arith.constant 0 : index
    %13 = vector.load %arg2[%c2_13, %c0_14, %c0_15] : memref<9x16x8xbf16, #tpu.memory_space<vmem>>, vector<1x16x8xbf16>
    %14 = vector.shape_cast %13 : vector<1x16x8xbf16> to vector<16x8xbf16>
    %cst_16 = arith.constant dense<0.000000e+00> : vector<16x100xf32>
    %15 = tpu.matmul %14, %12, %cst_16 {dimension_numbers = #tpu.dot_dimension_numbers<[1], [0], [0], [1], [0, 0, 1, 1], [], []>} : vector<16x8xbf16>, vector<8x100xbf16>, vector<16x100xf32> -> vector<16x100xf32>
    %16 = arith.addf %10, %15 : vector<16x100xf32>
    %c0_17 = arith.constant 0 : index
    %c0_18 = arith.constant 0 : index
    %c10 = arith.constant 10 : index
    %17 = vector.load %arg1[%c0_17, %c0_18, %c10] : memref<1x8x122xbf16, #tpu.memory_space<vmem>>, vector<1x8x100xbf16>
    %18 = vector.shape_cast %17 : vector<1x8x100xbf16> to vector<8x100xbf16>
    %c3 = arith.constant 3 : index
    %c0_19 = arith.constant 0 : index
    %c0_20 = arith.constant 0 : index
    %19 = vector.load %arg2[%c3, %c0_19, %c0_20] : memref<9x16x8xbf16, #tpu.memory_space<vmem>>, vector<1x16x8xbf16>
    %20 = vector.shape_cast %19 : vector<1x16x8xbf16> to vector<16x8xbf16>
    %cst_21 = arith.constant dense<0.000000e+00> : vector<16x100xf32>
    %21 = tpu.matmul %20, %18, %cst_21 {dimension_numbers = #tpu.dot_dimension_numbers<[1], [0], [0], [1], [0, 0, 1, 1], [], []>} : vector<16x8xbf16>, vector<8x100xbf16>, vector<16x100xf32> -> vector<16x100xf32>
    %22 = arith.addf %16, %21 : vector<16x100xf32>
    %c0_22 = arith.constant 0 : index
    %c0_23 = arith.constant 0 : index
    %c11 = arith.constant 11 : index
    %23 = vector.load %arg1[%c0_22, %c0_23, %c11] : memref<1x8x122xbf16, #tpu.memory_space<vmem>>, vector<1x8x100xbf16>
    %24 = vector.shape_cast %23 : vector<1x8x100xbf16> to vector<8x100xbf16>
    %c4 = arith.constant 4 : index
    %c0_24 = arith.constant 0 : index
    %c0_25 = arith.constant 0 : index
    %25 = vector.load %arg2[%c4, %c0_24, %c0_25] : memref<9x16x8xbf16, #tpu.memory_space<vmem>>, vector<1x16x8xbf16>
    %26 = vector.shape_cast %25 : vector<1x16x8xbf16> to vector<16x8xbf16>
    %cst_26 = arith.constant dense<0.000000e+00> : vector<16x100xf32>
    %27 = tpu.matmul %26, %24, %cst_26 {dimension_numbers = #tpu.dot_dimension_numbers<[1], [0], [0], [1], [0, 0, 1, 1], [], []>} : vector<16x8xbf16>, vector<8x100xbf16>, vector<16x100xf32> -> vector<16x100xf32>
    %28 = arith.addf %22, %27 : vector<16x100xf32>
    %c0_27 = arith.constant 0 : index
    %c0_28 = arith.constant 0 : index
    %c12 = arith.constant 12 : index
    %29 = vector.load %arg1[%c0_27, %c0_28, %c12] : memref<1x8x122xbf16, #tpu.memory_space<vmem>>, vector<1x8x100xbf16>
    %30 = vector.shape_cast %29 : vector<1x8x100xbf16> to vector<8x100xbf16>
    %c5 = arith.constant 5 : index
    %c0_29 = arith.constant 0 : index
    %c0_30 = arith.constant 0 : index
    %31 = vector.load %arg2[%c5, %c0_29, %c0_30] : memref<9x16x8xbf16, #tpu.memory_space<vmem>>, vector<1x16x8xbf16>
    %32 = vector.shape_cast %31 : vector<1x16x8xbf16> to vector<16x8xbf16>
    %cst_31 = arith.constant dense<0.000000e+00> : vector<16x100xf32>
    %33 = tpu.matmul %32, %30, %cst_31 {dimension_numbers = #tpu.dot_dimension_numbers<[1], [0], [0], [1], [0, 0, 1, 1], [], []>} : vector<16x8xbf16>, vector<8x100xbf16>, vector<16x100xf32> -> vector<16x100xf32>
    %34 = arith.addf %28, %33 : vector<16x100xf32>
    %c0_32 = arith.constant 0 : index
    %c0_33 = arith.constant 0 : index
    %c20 = arith.constant 20 : index
    %35 = vector.load %arg1[%c0_32, %c0_33, %c20] : memref<1x8x122xbf16, #tpu.memory_space<vmem>>, vector<1x8x100xbf16>
    %36 = vector.shape_cast %35 : vector<1x8x100xbf16> to vector<8x100xbf16>
    %c6 = arith.constant 6 : index
    %c0_34 = arith.constant 0 : index
    %c0_35 = arith.constant 0 : index
    %37 = vector.load %arg2[%c6, %c0_34, %c0_35] : memref<9x16x8xbf16, #tpu.memory_space<vmem>>, vector<1x16x8xbf16>
    %38 = vector.shape_cast %37 : vector<1x16x8xbf16> to vector<16x8xbf16>
    %cst_36 = arith.constant dense<0.000000e+00> : vector<16x100xf32>
    %39 = tpu.matmul %38, %36, %cst_36 {dimension_numbers = #tpu.dot_dimension_numbers<[1], [0], [0], [1], [0, 0, 1, 1], [], []>} : vector<16x8xbf16>, vector<8x100xbf16>, vector<16x100xf32> -> vector<16x100xf32>
    %40 = arith.addf %34, %39 : vector<16x100xf32>
    %c0_37 = arith.constant 0 : index
    %c0_38 = arith.constant 0 : index
    %c21 = arith.constant 21 : index
    %41 = vector.load %arg1[%c0_37, %c0_38, %c21] : memref<1x8x122xbf16, #tpu.memory_space<vmem>>, vector<1x8x100xbf16>
    %42 = vector.shape_cast %41 : vector<1x8x100xbf16> to vector<8x100xbf16>
    %c7 = arith.constant 7 : index
    %c0_39 = arith.constant 0 : index
    %c0_40 = arith.constant 0 : index
    %43 = vector.load %arg2[%c7, %c0_39, %c0_40] : memref<9x16x8xbf16, #tpu.memory_space<vmem>>, vector<1x16x8xbf16>
    %44 = vector.shape_cast %43 : vector<1x16x8xbf16> to vector<16x8xbf16>
    %cst_41 = arith.constant dense<0.000000e+00> : vector<16x100xf32>
    %45 = tpu.matmul %44, %42, %cst_41 {dimension_numbers = #tpu.dot_dimension_numbers<[1], [0], [0], [1], [0, 0, 1, 1], [], []>} : vector<16x8xbf16>, vector<8x100xbf16>, vector<16x100xf32> -> vector<16x100xf32>
    %46 = arith.addf %40, %45 : vector<16x100xf32>
    %c0_42 = arith.constant 0 : index
    %c0_43 = arith.constant 0 : index
    %c22 = arith.constant 22 : index
    %47 = vector.load %arg1[%c0_42, %c0_43, %c22] : memref<1x8x122xbf16, #tpu.memory_space<vmem>>, vector<1x8x100xbf16>
    %48 = vector.shape_cast %47 : vector<1x8x100xbf16> to vector<8x100xbf16>
    %c8 = arith.constant 8 : index
    %c0_44 = arith.constant 0 : index
    %c0_45 = arith.constant 0 : index
    %49 = vector.load %arg2[%c8, %c0_44, %c0_45] : memref<9x16x8xbf16, #tpu.memory_space<vmem>>, vector<1x16x8xbf16>
    %50 = vector.shape_cast %49 : vector<1x16x8xbf16> to vector<16x8xbf16>
    %cst_46 = arith.constant dense<0.000000e+00> : vector<16x100xf32>
    %51 = tpu.matmul %50, %48, %cst_46 {dimension_numbers = #tpu.dot_dimension_numbers<[1], [0], [0], [1], [0, 0, 1, 1], [], []>} : vector<16x8xbf16>, vector<8x100xbf16>, vector<16x100xf32> -> vector<16x100xf32>
    %52 = arith.addf %46, %51 : vector<16x100xf32>
    %c0_47 = arith.constant 0 : index
    %c0_48 = arith.constant 0 : index
    %53 = vector.load %arg3[%c0_47, %c0_48] : memref<16x1xf32, #tpu.memory_space<vmem>>, vector<16x1xf32>
    %54 = vector.broadcast %53 : vector<16x1xf32> to vector<16x100xf32>
    %55 = arith.addf %52, %54 : vector<16x100xf32>
    %cst_49 = arith.constant 0.000000e+00 : f32
    %56 = vector.broadcast %cst_49 : f32 to vector<16x100xf32>
    %57 = arith.maximumf %55, %56 : vector<16x100xf32>
    %c0_50 = arith.constant 0 : index
    %c0_51 = arith.constant 0 : index
    %58 = vector.load %arg4[%c0_50, %c0_51] : memref<1x100xf32, #tpu.memory_space<vmem>>, vector<1x100xf32>
    %59 = vector.broadcast %58 : vector<1x100xf32> to vector<16x100xf32>
    %60 = arith.mulf %57, %59 : vector<16x100xf32>
    %61 = arith.truncf %60 : vector<16x100xf32> to vector<16x100xbf16>
    %c0_52 = arith.constant 0 : index
    %c0_53 = arith.constant 0 : index
    %c0_54 = arith.constant 0 : index
    %62 = vector.load %arg5[%c0_52, %c0_53, %c0_54] : memref<1x16x100xbf16, #tpu.memory_space<vmem>>, vector<1x16x100xbf16>
    %63 = vector.shape_cast %62 : vector<1x16x100xbf16> to vector<16x100xbf16>
    %64 = vector.shape_cast %61 : vector<16x100xbf16> to vector<1x16x100xbf16>
    tpu.vector_store %arg5[%c0_52, %c0_53, %c0_54], %64 {strides = array<i32>} : memref<1x16x100xbf16, #tpu.memory_space<vmem>>, vector<1x16x100xbf16>,
    return
  }
  func.func @transform_0(%arg0: i32) -> (i32, i32, i32) {
    %c0_i32 = arith.constant 0 : i32
    %c0_i32_0 = arith.constant 0 : i32
    %c0_i32_1 = arith.constant 0 : i32
    return %arg0, %c0_i32, %c0_i32_0 : i32, i32, i32
  }
  func.func @transform_1(%arg0: i32) -> (i32, i32, i32) {
    %c0_i32 = arith.constant 0 : i32
    %c0_i32_0 = arith.constant 0 : i32
    %c0_i32_1 = arith.constant 0 : i32
    %c0_i32_2 = arith.constant 0 : i32
    return %c0_i32, %c0_i32_0, %c0_i32_1 : i32, i32, i32
  }
  func.func @transform_2(%arg0: i32) -> (i32, i32) {
    %c0_i32 = arith.constant 0 : i32
    %c0_i32_0 = arith.constant 0 : i32
    %c0_i32_1 = arith.constant 0 : i32
    return %c0_i32, %c0_i32_0 : i32, i32
  }
  func.func @transform_3(%arg0: i32) -> (i32, i32) {
    %c0_i32 = arith.constant 0 : i32
    %c0_i32_0 = arith.constant 0 : i32
    %c0_i32_1 = arith.constant 0 : i32
    return %c0_i32, %c0_i32_0 : i32, i32
  }
  func.func @transform_4(%arg0: i32) -> (i32, i32, i32) {
    %c0_i32 = arith.constant 0 : i32
    %c0_i32_0 = arith.constant 0 : i32
    %c0_i32_1 = arith.constant 0 : i32
    return %arg0, %c0_i32, %c0_i32_0 : i32, i32, i32
  }
}

module attributes {stable_mosaic.version = 11 : i64} {
  func.func @_conv3x3_kernel(%arg0: i32, %arg1: memref<1x16x122xbf16, #tpu.memory_space<vmem>>, %arg2: memref<9x16x16xbf16, #tpu.memory_space<vmem>>, %arg3: memref<16x1xf32, #tpu.memory_space<vmem>>, %arg4: memref<1x100xf32, #tpu.memory_space<vmem>>, %arg5: memref<1x16x100xbf16, #tpu.memory_space<vmem>>) attributes {dimension_semantics = [#tpu.dimension_semantics<parallel>], iteration_bounds = array<i64: 2>, scalar_prefetch = 0 : i64, scratch_operands = 0 : i64, tpu.core_type = #tpu.core_type<tc>, window_params = [{transform_indices = @transform_0, window_bounds = array<i64: 1, 16, 122>}, {pipeline_mode = #tpu.pipeline_mode<synchronous>, transform_indices = @transform_1, window_bounds = array<i64: 9, 16, 16>}, {pipeline_mode = #tpu.pipeline_mode<synchronous>, transform_indices = @transform_2, window_bounds = array<i64: 16, 1>}, {pipeline_mode = #tpu.pipeline_mode<synchronous>, transform_indices = @transform_3, window_bounds = array<i64: 1, 100>}, {transform_indices = @transform_4, window_bounds = array<i64: 1, 16, 100>}]} {
    %c0 = arith.constant 0 : index
    %c0_0 = arith.constant 0 : index
    %c0_1 = arith.constant 0 : index
    %0 = vector.load %arg1[%c0, %c0_0, %c0_1] : memref<1x16x122xbf16, #tpu.memory_space<vmem>>, vector<1x16x100xbf16>
    %1 = vector.shape_cast %0 : vector<1x16x100xbf16> to vector<16x100xbf16>
    %c0_2 = arith.constant 0 : index
    %c0_3 = arith.constant 0 : index
    %c0_4 = arith.constant 0 : index
    %2 = vector.load %arg2[%c0_2, %c0_3, %c0_4] : memref<9x16x16xbf16, #tpu.memory_space<vmem>>, vector<1x16x16xbf16>
    %3 = vector.shape_cast %2 : vector<1x16x16xbf16> to vector<16x16xbf16>
    %cst = arith.constant dense<0.000000e+00> : vector<16x100xf32>
    %4 = tpu.matmul %3, %1, %cst {dimension_numbers = #tpu.dot_dimension_numbers<[1], [0], [0], [1], [0, 0, 1, 1], [], []>} : vector<16x16xbf16>, vector<16x100xbf16>, vector<16x100xf32> -> vector<16x100xf32>
    %c0_5 = arith.constant 0 : index
    %c0_6 = arith.constant 0 : index
    %c1 = arith.constant 1 : index
    %5 = vector.load %arg1[%c0_5, %c0_6, %c1] : memref<1x16x122xbf16, #tpu.memory_space<vmem>>, vector<1x16x100xbf16>
    %6 = vector.shape_cast %5 : vector<1x16x100xbf16> to vector<16x100xbf16>
    %c1_7 = arith.constant 1 : index
    %c0_8 = arith.constant 0 : index
    %c0_9 = arith.constant 0 : index
    %7 = vector.load %arg2[%c1_7, %c0_8, %c0_9] : memref<9x16x16xbf16, #tpu.memory_space<vmem>>, vector<1x16x16xbf16>
    %8 = vector.shape_cast %7 : vector<1x16x16xbf16> to vector<16x16xbf16>
    %cst_10 = arith.constant dense<0.000000e+00> : vector<16x100xf32>
    %9 = tpu.matmul %8, %6, %cst_10 {dimension_numbers = #tpu.dot_dimension_numbers<[1], [0], [0], [1], [0, 0, 1, 1], [], []>} : vector<16x16xbf16>, vector<16x100xbf16>, vector<16x100xf32> -> vector<16x100xf32>
    %10 = arith.addf %4, %9 : vector<16x100xf32>
    %c0_11 = arith.constant 0 : index
    %c0_12 = arith.constant 0 : index
    %c2 = arith.constant 2 : index
    %11 = vector.load %arg1[%c0_11, %c0_12, %c2] : memref<1x16x122xbf16, #tpu.memory_space<vmem>>, vector<1x16x100xbf16>
    %12 = vector.shape_cast %11 : vector<1x16x100xbf16> to vector<16x100xbf16>
    %c2_13 = arith.constant 2 : index
    %c0_14 = arith.constant 0 : index
    %c0_15 = arith.constant 0 : index
    %13 = vector.load %arg2[%c2_13, %c0_14, %c0_15] : memref<9x16x16xbf16, #tpu.memory_space<vmem>>, vector<1x16x16xbf16>
    %14 = vector.shape_cast %13 : vector<1x16x16xbf16> to vector<16x16xbf16>
    %cst_16 = arith.constant dense<0.000000e+00> : vector<16x100xf32>
    %15 = tpu.matmul %14, %12, %cst_16 {dimension_numbers = #tpu.dot_dimension_numbers<[1], [0], [0], [1], [0, 0, 1, 1], [], []>} : vector<16x16xbf16>, vector<16x100xbf16>, vector<16x100xf32> -> vector<16x100xf32>
    %16 = arith.addf %10, %15 : vector<16x100xf32>
    %c0_17 = arith.constant 0 : index
    %c0_18 = arith.constant 0 : index
    %c10 = arith.constant 10 : index
    %17 = vector.load %arg1[%c0_17, %c0_18, %c10] : memref<1x16x122xbf16, #tpu.memory_space<vmem>>, vector<1x16x100xbf16>
    %18 = vector.shape_cast %17 : vector<1x16x100xbf16> to vector<16x100xbf16>
    %c3 = arith.constant 3 : index
    %c0_19 = arith.constant 0 : index
    %c0_20 = arith.constant 0 : index
    %19 = vector.load %arg2[%c3, %c0_19, %c0_20] : memref<9x16x16xbf16, #tpu.memory_space<vmem>>, vector<1x16x16xbf16>
    %20 = vector.shape_cast %19 : vector<1x16x16xbf16> to vector<16x16xbf16>
    %cst_21 = arith.constant dense<0.000000e+00> : vector<16x100xf32>
    %21 = tpu.matmul %20, %18, %cst_21 {dimension_numbers = #tpu.dot_dimension_numbers<[1], [0], [0], [1], [0, 0, 1, 1], [], []>} : vector<16x16xbf16>, vector<16x100xbf16>, vector<16x100xf32> -> vector<16x100xf32>
    %22 = arith.addf %16, %21 : vector<16x100xf32>
    %c0_22 = arith.constant 0 : index
    %c0_23 = arith.constant 0 : index
    %c11 = arith.constant 11 : index
    %23 = vector.load %arg1[%c0_22, %c0_23, %c11] : memref<1x16x122xbf16, #tpu.memory_space<vmem>>, vector<1x16x100xbf16>
    %24 = vector.shape_cast %23 : vector<1x16x100xbf16> to vector<16x100xbf16>
    %c4 = arith.constant 4 : index
    %c0_24 = arith.constant 0 : index
    %c0_25 = arith.constant 0 : index
    %25 = vector.load %arg2[%c4, %c0_24, %c0_25] : memref<9x16x16xbf16, #tpu.memory_space<vmem>>, vector<1x16x16xbf16>
    %26 = vector.shape_cast %25 : vector<1x16x16xbf16> to vector<16x16xbf16>
    %cst_26 = arith.constant dense<0.000000e+00> : vector<16x100xf32>
    %27 = tpu.matmul %26, %24, %cst_26 {dimension_numbers = #tpu.dot_dimension_numbers<[1], [0], [0], [1], [0, 0, 1, 1], [], []>} : vector<16x16xbf16>, vector<16x100xbf16>, vector<16x100xf32> -> vector<16x100xf32>
    %28 = arith.addf %22, %27 : vector<16x100xf32>
    %c0_27 = arith.constant 0 : index
    %c0_28 = arith.constant 0 : index
    %c12 = arith.constant 12 : index
    %29 = vector.load %arg1[%c0_27, %c0_28, %c12] : memref<1x16x122xbf16, #tpu.memory_space<vmem>>, vector<1x16x100xbf16>
    %30 = vector.shape_cast %29 : vector<1x16x100xbf16> to vector<16x100xbf16>
    %c5 = arith.constant 5 : index
    %c0_29 = arith.constant 0 : index
    %c0_30 = arith.constant 0 : index
    %31 = vector.load %arg2[%c5, %c0_29, %c0_30] : memref<9x16x16xbf16, #tpu.memory_space<vmem>>, vector<1x16x16xbf16>
    %32 = vector.shape_cast %31 : vector<1x16x16xbf16> to vector<16x16xbf16>
    %cst_31 = arith.constant dense<0.000000e+00> : vector<16x100xf32>
    %33 = tpu.matmul %32, %30, %cst_31 {dimension_numbers = #tpu.dot_dimension_numbers<[1], [0], [0], [1], [0, 0, 1, 1], [], []>} : vector<16x16xbf16>, vector<16x100xbf16>, vector<16x100xf32> -> vector<16x100xf32>
    %34 = arith.addf %28, %33 : vector<16x100xf32>
    %c0_32 = arith.constant 0 : index
    %c0_33 = arith.constant 0 : index
    %c20 = arith.constant 20 : index
    %35 = vector.load %arg1[%c0_32, %c0_33, %c20] : memref<1x16x122xbf16, #tpu.memory_space<vmem>>, vector<1x16x100xbf16>
    %36 = vector.shape_cast %35 : vector<1x16x100xbf16> to vector<16x100xbf16>
    %c6 = arith.constant 6 : index
    %c0_34 = arith.constant 0 : index
    %c0_35 = arith.constant 0 : index
    %37 = vector.load %arg2[%c6, %c0_34, %c0_35] : memref<9x16x16xbf16, #tpu.memory_space<vmem>>, vector<1x16x16xbf16>
    %38 = vector.shape_cast %37 : vector<1x16x16xbf16> to vector<16x16xbf16>
    %cst_36 = arith.constant dense<0.000000e+00> : vector<16x100xf32>
    %39 = tpu.matmul %38, %36, %cst_36 {dimension_numbers = #tpu.dot_dimension_numbers<[1], [0], [0], [1], [0, 0, 1, 1], [], []>} : vector<16x16xbf16>, vector<16x100xbf16>, vector<16x100xf32> -> vector<16x100xf32>
    %40 = arith.addf %34, %39 : vector<16x100xf32>
    %c0_37 = arith.constant 0 : index
    %c0_38 = arith.constant 0 : index
    %c21 = arith.constant 21 : index
    %41 = vector.load %arg1[%c0_37, %c0_38, %c21] : memref<1x16x122xbf16, #tpu.memory_space<vmem>>, vector<1x16x100xbf16>
    %42 = vector.shape_cast %41 : vector<1x16x100xbf16> to vector<16x100xbf16>
    %c7 = arith.constant 7 : index
    %c0_39 = arith.constant 0 : index
    %c0_40 = arith.constant 0 : index
    %43 = vector.load %arg2[%c7, %c0_39, %c0_40] : memref<9x16x16xbf16, #tpu.memory_space<vmem>>, vector<1x16x16xbf16>
    %44 = vector.shape_cast %43 : vector<1x16x16xbf16> to vector<16x16xbf16>
    %cst_41 = arith.constant dense<0.000000e+00> : vector<16x100xf32>
    %45 = tpu.matmul %44, %42, %cst_41 {dimension_numbers = #tpu.dot_dimension_numbers<[1], [0], [0], [1], [0, 0, 1, 1], [], []>} : vector<16x16xbf16>, vector<16x100xbf16>, vector<16x100xf32> -> vector<16x100xf32>
    %46 = arith.addf %40, %45 : vector<16x100xf32>
    %c0_42 = arith.constant 0 : index
    %c0_43 = arith.constant 0 : index
    %c22 = arith.constant 22 : index
    %47 = vector.load %arg1[%c0_42, %c0_43, %c22] : memref<1x16x122xbf16, #tpu.memory_space<vmem>>, vector<1x16x100xbf16>
    %48 = vector.shape_cast %47 : vector<1x16x100xbf16> to vector<16x100xbf16>
    %c8 = arith.constant 8 : index
    %c0_44 = arith.constant 0 : index
    %c0_45 = arith.constant 0 : index
    %49 = vector.load %arg2[%c8, %c0_44, %c0_45] : memref<9x16x16xbf16, #tpu.memory_space<vmem>>, vector<1x16x16xbf16>
    %50 = vector.shape_cast %49 : vector<1x16x16xbf16> to vector<16x16xbf16>
    %cst_46 = arith.constant dense<0.000000e+00> : vector<16x100xf32>
    %51 = tpu.matmul %50, %48, %cst_46 {dimension_numbers = #tpu.dot_dimension_numbers<[1], [0], [0], [1], [0, 0, 1, 1], [], []>} : vector<16x16xbf16>, vector<16x100xbf16>, vector<16x100xf32> -> vector<16x100xf32>
    %52 = arith.addf %46, %51 : vector<16x100xf32>
    %c0_47 = arith.constant 0 : index
    %c0_48 = arith.constant 0 : index
    %53 = vector.load %arg3[%c0_47, %c0_48] : memref<16x1xf32, #tpu.memory_space<vmem>>, vector<16x1xf32>
    %54 = vector.broadcast %53 : vector<16x1xf32> to vector<16x100xf32>
    %55 = arith.addf %52, %54 : vector<16x100xf32>
    %cst_49 = arith.constant 0.000000e+00 : f32
    %56 = vector.broadcast %cst_49 : f32 to vector<16x100xf32>
    %57 = arith.maximumf %55, %56 : vector<16x100xf32>
    %c0_50 = arith.constant 0 : index
    %c0_51 = arith.constant 0 : index
    %58 = vector.load %arg4[%c0_50, %c0_51] : memref<1x100xf32, #tpu.memory_space<vmem>>, vector<1x100xf32>
    %59 = vector.broadcast %58 : vector<1x100xf32> to vector<16x100xf32>
    %60 = arith.mulf %57, %59 : vector<16x100xf32>
    %61 = arith.truncf %60 : vector<16x100xf32> to vector<16x100xbf16>
    %c0_52 = arith.constant 0 : index
    %c0_53 = arith.constant 0 : index
    %c0_54 = arith.constant 0 : index
    %62 = vector.load %arg5[%c0_52, %c0_53, %c0_54] : memref<1x16x100xbf16, #tpu.memory_space<vmem>>, vector<1x16x100xbf16>
    %63 = vector.shape_cast %62 : vector<1x16x100xbf16> to vector<16x100xbf16>
    %64 = vector.shape_cast %61 : vector<16x100xbf16> to vector<1x16x100xbf16>
    tpu.vector_store %arg5[%c0_52, %c0_53, %c0_54], %64 {strides = array<i32>} : memref<1x16x100xbf16, #tpu.memory_space<vmem>>, vector<1x16x100xbf16>,
    return
  }
  func.func @transform_0(%arg0: i32) -> (i32, i32, i32) {
    %c0_i32 = arith.constant 0 : i32
    %c0_i32_0 = arith.constant 0 : i32
    %c0_i32_1 = arith.constant 0 : i32
    return %arg0, %c0_i32, %c0_i32_0 : i32, i32, i32
  }
  func.func @transform_1(%arg0: i32) -> (i32, i32, i32) {
    %c0_i32 = arith.constant 0 : i32
    %c0_i32_0 = arith.constant 0 : i32
    %c0_i32_1 = arith.constant 0 : i32
    %c0_i32_2 = arith.constant 0 : i32
    return %c0_i32, %c0_i32_0, %c0_i32_1 : i32, i32, i32
  }
  func.func @transform_2(%arg0: i32) -> (i32, i32) {
    %c0_i32 = arith.constant 0 : i32
    %c0_i32_0 = arith.constant 0 : i32
    %c0_i32_1 = arith.constant 0 : i32
    return %c0_i32, %c0_i32_0 : i32, i32
  }
  func.func @transform_3(%arg0: i32) -> (i32, i32) {
    %c0_i32 = arith.constant 0 : i32
    %c0_i32_0 = arith.constant 0 : i32
    %c0_i32_1 = arith.constant 0 : i32
    return %c0_i32, %c0_i32_0 : i32, i32
  }
  func.func @transform_4(%arg0: i32) -> (i32, i32, i32) {
    %c0_i32 = arith.constant 0 : i32
    %c0_i32_0 = arith.constant 0 : i32
    %c0_i32_1 = arith.constant 0 : i32
    return %arg0, %c0_i32, %c0_i32_0 : i32, i32, i32
  }
}

module attributes {stable_mosaic.version = 11 : i64} {
  func.func @_head_kernel(%arg0: i32, %arg1: memref<1x16x50xbf16, #tpu.memory_space<vmem>>, %arg2: memref<9x64x16xbf16, #tpu.memory_space<vmem>>, %arg3: memref<64x1xf32, #tpu.memory_space<vmem>>, %arg4: memref<40x64xbf16, #tpu.memory_space<vmem>>, %arg5: memref<40x1xf32, #tpu.memory_space<vmem>>, %arg6: memref<1x17x36xf32, #tpu.memory_space<vmem>>, %arg7: memref<1x16x36xf32, #tpu.memory_space<vmem>>, %arg8: memref<1x16x36xf32, #tpu.memory_space<vmem>>) attributes {dimension_semantics = [#tpu.dimension_semantics<parallel>], iteration_bounds = array<i64: 2>, scalar_prefetch = 0 : i64, scratch_operands = 0 : i64, tpu.core_type = #tpu.core_type<tc>, window_params = [{transform_indices = @transform_0, window_bounds = array<i64: 1, 16, 50>}, {pipeline_mode = #tpu.pipeline_mode<synchronous>, transform_indices = @transform_1, window_bounds = array<i64: 9, 64, 16>}, {pipeline_mode = #tpu.pipeline_mode<synchronous>, transform_indices = @transform_2, window_bounds = array<i64: 64, 1>}, {pipeline_mode = #tpu.pipeline_mode<synchronous>, transform_indices = @transform_3, window_bounds = array<i64: 40, 64>}, {pipeline_mode = #tpu.pipeline_mode<synchronous>, transform_indices = @transform_4, window_bounds = array<i64: 40, 1>}, {transform_indices = @transform_5, window_bounds = array<i64: 1, 17, 36>}, {transform_indices = @transform_6, window_bounds = array<i64: 1, 16, 36>}, {transform_indices = @transform_7, window_bounds = array<i64: 1, 16, 36>}]} {
    %cst = arith.constant 0.000000e+00 : f32
    %0 = vector.broadcast %cst : f32 to vector<64x36xf32>
    %c0 = arith.constant 0 : index
    %c0_0 = arith.constant 0 : index
    %c0_1 = arith.constant 0 : index
    %1 = vector.load %arg1[%c0, %c0_0, %c0_1] : memref<1x16x50xbf16, #tpu.memory_space<vmem>>, vector<1x16x36xbf16>
    %2 = vector.shape_cast %1 : vector<1x16x36xbf16> to vector<16x36xbf16>
    %c0_2 = arith.constant 0 : index
    %c0_3 = arith.constant 0 : index
    %c0_4 = arith.constant 0 : index
    %3 = vector.load %arg2[%c0_2, %c0_3, %c0_4] : memref<9x64x16xbf16, #tpu.memory_space<vmem>>, vector<1x64x16xbf16>
    %4 = vector.shape_cast %3 : vector<1x64x16xbf16> to vector<64x16xbf16>
    %cst_5 = arith.constant dense<0.000000e+00> : vector<64x36xf32>
    %5 = tpu.matmul %4, %2, %cst_5 {dimension_numbers = #tpu.dot_dimension_numbers<[1], [0], [0], [1], [0, 0, 1, 1], [], []>} : vector<64x16xbf16>, vector<16x36xbf16>, vector<64x36xf32> -> vector<64x36xf32>
    %6 = arith.addf %0, %5 : vector<64x36xf32>
    %c0_6 = arith.constant 0 : index
    %c0_7 = arith.constant 0 : index
    %c1 = arith.constant 1 : index
    %7 = vector.load %arg1[%c0_6, %c0_7, %c1] : memref<1x16x50xbf16, #tpu.memory_space<vmem>>, vector<1x16x36xbf16>
    %8 = vector.shape_cast %7 : vector<1x16x36xbf16> to vector<16x36xbf16>
    %c1_8 = arith.constant 1 : index
    %c0_9 = arith.constant 0 : index
    %c0_10 = arith.constant 0 : index
    %9 = vector.load %arg2[%c1_8, %c0_9, %c0_10] : memref<9x64x16xbf16, #tpu.memory_space<vmem>>, vector<1x64x16xbf16>
    %10 = vector.shape_cast %9 : vector<1x64x16xbf16> to vector<64x16xbf16>
    %cst_11 = arith.constant dense<0.000000e+00> : vector<64x36xf32>
    %11 = tpu.matmul %10, %8, %cst_11 {dimension_numbers = #tpu.dot_dimension_numbers<[1], [0], [0], [1], [0, 0, 1, 1], [], []>} : vector<64x16xbf16>, vector<16x36xbf16>, vector<64x36xf32> -> vector<64x36xf32>
    %12 = arith.addf %6, %11 : vector<64x36xf32>
    %c0_12 = arith.constant 0 : index
    %c0_13 = arith.constant 0 : index
    %c2 = arith.constant 2 : index
    %13 = vector.load %arg1[%c0_12, %c0_13, %c2] : memref<1x16x50xbf16, #tpu.memory_space<vmem>>, vector<1x16x36xbf16>
    %14 = vector.shape_cast %13 : vector<1x16x36xbf16> to vector<16x36xbf16>
    %c2_14 = arith.constant 2 : index
    %c0_15 = arith.constant 0 : index
    %c0_16 = arith.constant 0 : index
    %15 = vector.load %arg2[%c2_14, %c0_15, %c0_16] : memref<9x64x16xbf16, #tpu.memory_space<vmem>>, vector<1x64x16xbf16>
    %16 = vector.shape_cast %15 : vector<1x64x16xbf16> to vector<64x16xbf16>
    %cst_17 = arith.constant dense<0.000000e+00> : vector<64x36xf32>
    %17 = tpu.matmul %16, %14, %cst_17 {dimension_numbers = #tpu.dot_dimension_numbers<[1], [0], [0], [1], [0, 0, 1, 1], [], []>} : vector<64x16xbf16>, vector<16x36xbf16>, vector<64x36xf32> -> vector<64x36xf32>
    %18 = arith.addf %12, %17 : vector<64x36xf32>
    %c0_18 = arith.constant 0 : index
    %c0_19 = arith.constant 0 : index
    %c6 = arith.constant 6 : index
    %19 = vector.load %arg1[%c0_18, %c0_19, %c6] : memref<1x16x50xbf16, #tpu.memory_space<vmem>>, vector<1x16x36xbf16>
    %20 = vector.shape_cast %19 : vector<1x16x36xbf16> to vector<16x36xbf16>
    %c3 = arith.constant 3 : index
    %c0_20 = arith.constant 0 : index
    %c0_21 = arith.constant 0 : index
    %21 = vector.load %arg2[%c3, %c0_20, %c0_21] : memref<9x64x16xbf16, #tpu.memory_space<vmem>>, vector<1x64x16xbf16>
    %22 = vector.shape_cast %21 : vector<1x64x16xbf16> to vector<64x16xbf16>
    %cst_22 = arith.constant dense<0.000000e+00> : vector<64x36xf32>
    %23 = tpu.matmul %22, %20, %cst_22 {dimension_numbers = #tpu.dot_dimension_numbers<[1], [0], [0], [1], [0, 0, 1, 1], [], []>} : vector<64x16xbf16>, vector<16x36xbf16>, vector<64x36xf32> -> vector<64x36xf32>
    %24 = arith.addf %18, %23 : vector<64x36xf32>
    %c0_23 = arith.constant 0 : index
    %c0_24 = arith.constant 0 : index
    %c7 = arith.constant 7 : index
    %25 = vector.load %arg1[%c0_23, %c0_24, %c7] : memref<1x16x50xbf16, #tpu.memory_space<vmem>>, vector<1x16x36xbf16>
    %26 = vector.shape_cast %25 : vector<1x16x36xbf16> to vector<16x36xbf16>
    %c4 = arith.constant 4 : index
    %c0_25 = arith.constant 0 : index
    %c0_26 = arith.constant 0 : index
    %27 = vector.load %arg2[%c4, %c0_25, %c0_26] : memref<9x64x16xbf16, #tpu.memory_space<vmem>>, vector<1x64x16xbf16>
    %28 = vector.shape_cast %27 : vector<1x64x16xbf16> to vector<64x16xbf16>
    %cst_27 = arith.constant dense<0.000000e+00> : vector<64x36xf32>
    %29 = tpu.matmul %28, %26, %cst_27 {dimension_numbers = #tpu.dot_dimension_numbers<[1], [0], [0], [1], [0, 0, 1, 1], [], []>} : vector<64x16xbf16>, vector<16x36xbf16>, vector<64x36xf32> -> vector<64x36xf32>
    %30 = arith.addf %24, %29 : vector<64x36xf32>
    %c0_28 = arith.constant 0 : index
    %c0_29 = arith.constant 0 : index
    %c8 = arith.constant 8 : index
    %31 = vector.load %arg1[%c0_28, %c0_29, %c8] : memref<1x16x50xbf16, #tpu.memory_space<vmem>>, vector<1x16x36xbf16>
    %32 = vector.shape_cast %31 : vector<1x16x36xbf16> to vector<16x36xbf16>
    %c5 = arith.constant 5 : index
    %c0_30 = arith.constant 0 : index
    %c0_31 = arith.constant 0 : index
    %33 = vector.load %arg2[%c5, %c0_30, %c0_31] : memref<9x64x16xbf16, #tpu.memory_space<vmem>>, vector<1x64x16xbf16>
    %34 = vector.shape_cast %33 : vector<1x64x16xbf16> to vector<64x16xbf16>
    %cst_32 = arith.constant dense<0.000000e+00> : vector<64x36xf32>
    %35 = tpu.matmul %34, %32, %cst_32 {dimension_numbers = #tpu.dot_dimension_numbers<[1], [0], [0], [1], [0, 0, 1, 1], [], []>} : vector<64x16xbf16>, vector<16x36xbf16>, vector<64x36xf32> -> vector<64x36xf32>
    %36 = arith.addf %30, %35 : vector<64x36xf32>
    %c0_33 = arith.constant 0 : index
    %c0_34 = arith.constant 0 : index
    %c12 = arith.constant 12 : index
    %37 = vector.load %arg1[%c0_33, %c0_34, %c12] : memref<1x16x50xbf16, #tpu.memory_space<vmem>>, vector<1x16x36xbf16>
    %38 = vector.shape_cast %37 : vector<1x16x36xbf16> to vector<16x36xbf16>
    %c6_35 = arith.constant 6 : index
    %c0_36 = arith.constant 0 : index
    %c0_37 = arith.constant 0 : index
    %39 = vector.load %arg2[%c6_35, %c0_36, %c0_37] : memref<9x64x16xbf16, #tpu.memory_space<vmem>>, vector<1x64x16xbf16>
    %40 = vector.shape_cast %39 : vector<1x64x16xbf16> to vector<64x16xbf16>
    %cst_38 = arith.constant dense<0.000000e+00> : vector<64x36xf32>
    %41 = tpu.matmul %40, %38, %cst_38 {dimension_numbers = #tpu.dot_dimension_numbers<[1], [0], [0], [1], [0, 0, 1, 1], [], []>} : vector<64x16xbf16>, vector<16x36xbf16>, vector<64x36xf32> -> vector<64x36xf32>
    %42 = arith.addf %36, %41 : vector<64x36xf32>
    %c0_39 = arith.constant 0 : index
    %c0_40 = arith.constant 0 : index
    %c13 = arith.constant 13 : index
    %43 = vector.load %arg1[%c0_39, %c0_40, %c13] : memref<1x16x50xbf16, #tpu.memory_space<vmem>>, vector<1x16x36xbf16>
    %44 = vector.shape_cast %43 : vector<1x16x36xbf16> to vector<16x36xbf16>
    %c7_41 = arith.constant 7 : index
    %c0_42 = arith.constant 0 : index
    %c0_43 = arith.constant 0 : index
    %45 = vector.load %arg2[%c7_41, %c0_42, %c0_43] : memref<9x64x16xbf16, #tpu.memory_space<vmem>>, vector<1x64x16xbf16>
    %46 = vector.shape_cast %45 : vector<1x64x16xbf16> to vector<64x16xbf16>
    %cst_44 = arith.constant dense<0.000000e+00> : vector<64x36xf32>
    %47 = tpu.matmul %46, %44, %cst_44 {dimension_numbers = #tpu.dot_dimension_numbers<[1], [0], [0], [1], [0, 0, 1, 1], [], []>} : vector<64x16xbf16>, vector<16x36xbf16>, vector<64x36xf32> -> vector<64x36xf32>
    %48 = arith.addf %42, %47 : vector<64x36xf32>
    %c0_45 = arith.constant 0 : index
    %c0_46 = arith.constant 0 : index
    %c14 = arith.constant 14 : index
    %49 = vector.load %arg1[%c0_45, %c0_46, %c14] : memref<1x16x50xbf16, #tpu.memory_space<vmem>>, vector<1x16x36xbf16>
    %50 = vector.shape_cast %49 : vector<1x16x36xbf16> to vector<16x36xbf16>
    %c8_47 = arith.constant 8 : index
    %c0_48 = arith.constant 0 : index
    %c0_49 = arith.constant 0 : index
    %51 = vector.load %arg2[%c8_47, %c0_48, %c0_49] : memref<9x64x16xbf16, #tpu.memory_space<vmem>>, vector<1x64x16xbf16>
    %52 = vector.shape_cast %51 : vector<1x64x16xbf16> to vector<64x16xbf16>
    %cst_50 = arith.constant dense<0.000000e+00> : vector<64x36xf32>
    %53 = tpu.matmul %52, %50, %cst_50 {dimension_numbers = #tpu.dot_dimension_numbers<[1], [0], [0], [1], [0, 0, 1, 1], [], []>} : vector<64x16xbf16>, vector<16x36xbf16>, vector<64x36xf32> -> vector<64x36xf32>
    %54 = arith.addf %48, %53 : vector<64x36xf32>
    %c0_51 = arith.constant 0 : index
    %c0_52 = arith.constant 0 : index
    %55 = vector.load %arg3[%c0_51, %c0_52] : memref<64x1xf32, #tpu.memory_space<vmem>>, vector<64x1xf32>
    %56 = vector.broadcast %55 : vector<64x1xf32> to vector<64x36xf32>
    %57 = arith.addf %54, %56 : vector<64x36xf32>
    %cst_53 = arith.constant 0.000000e+00 : f32
    %58 = vector.broadcast %cst_53 : f32 to vector<64x36xf32>
    %59 = arith.maximumf %57, %58 : vector<64x36xf32>
    %60 = arith.truncf %59 : vector<64x36xf32> to vector<64x36xbf16>
    %c0_54 = arith.constant 0 : index
    %c0_55 = arith.constant 0 : index
    %61 = vector.load %arg4[%c0_54, %c0_55] : memref<40x64xbf16, #tpu.memory_space<vmem>>, vector<40x64xbf16>
    %cst_56 = arith.constant dense<0.000000e+00> : vector<40x36xf32>
    %62 = tpu.matmul %61, %60, %cst_56 {dimension_numbers = #tpu.dot_dimension_numbers<[1], [0], [0], [1], [0, 0, 1, 1], [], []>} : vector<40x64xbf16>, vector<64x36xbf16>, vector<40x36xf32> -> vector<40x36xf32>
    %c0_57 = arith.constant 0 : index
    %c0_58 = arith.constant 0 : index
    %63 = vector.load %arg5[%c0_57, %c0_58] : memref<40x1xf32, #tpu.memory_space<vmem>>, vector<40x1xf32>
    %64 = vector.broadcast %63 : vector<40x1xf32> to vector<40x36xf32>
    %65 = arith.addf %62, %64 : vector<40x36xf32>
    %66 = tpu.iota {dimensions = array<i32: 0>} : vector<40x36xi32>
    %c17_i32 = arith.constant 17 : i32
    %67 = vector.broadcast %c17_i32 : i32 to vector<40x36xi32>
    %68 = arith.cmpi slt, %66, %67 : vector<40x36xi32>
    %cst_59 = arith.constant 0xFF800000 : f32
    %69 = vector.broadcast %cst_59 : f32 to vector<40x36xf32>
    %70 = arith.select %68, %65, %69 : vector<40x36xi1>, vector<40x36xf32>
    %cst_60 = arith.constant dense<0xFF800000> : vector<36xf32>
    %71 = vector.multi_reduction <maximumf>, %70, %cst_60 [0] : vector<40x36xf32> to vector<36xf32>
    %72 = vector.shape_cast %71 : vector<36xf32> to vector<1x36xf32>
    %73 = vector.broadcast %72 : vector<1x36xf32> to vector<40x36xf32>
    %74 = arith.subf %70, %73 : vector<40x36xf32>
    %75 = math.exp %74 : vector<40x36xf32>
    %cst_61 = arith.constant 0.000000e+00 : f32
    %76 = vector.broadcast %cst_61 : f32 to vector<40x36xf32>
    %77 = arith.select %68, %75, %76 : vector<40x36xi1>, vector<40x36xf32>
    %cst_62 = arith.constant dense<0.000000e+00> : vector<36xf32>
    %78 = vector.multi_reduction <add>, %77, %cst_62 [0] : vector<40x36xf32> to vector<36xf32>
    %79 = vector.shape_cast %78 : vector<36xf32> to vector<1x36xf32>
    %80 = vector.broadcast %79 : vector<1x36xf32> to vector<40x36xf32>
    %81 = arith.divf %77, %80 : vector<40x36xf32>
    %82 = vector.extract_strided_slice %65 {offsets = [0, 0], sizes = [17, 36], strides = [1, 1]} : vector<40x36xf32> to vector<17x36xf32>
    %c0_63 = arith.constant 0 : index
    %c0_64 = arith.constant 0 : index
    %c0_65 = arith.constant 0 : index
    %83 = vector.load %arg6[%c0_63, %c0_64, %c0_65] : memref<1x17x36xf32, #tpu.memory_space<vmem>>, vector<1x17x36xf32>
    %84 = vector.shape_cast %83 : vector<1x17x36xf32> to vector<17x36xf32>
    %85 = vector.shape_cast %82 : vector<17x36xf32> to vector<1x17x36xf32>
    tpu.vector_store %arg6[%c0_63, %c0_64, %c0_65], %85 {strides = array<i32>} : memref<1x17x36xf32, #tpu.memory_space<vmem>>, vector<1x17x36xf32>,
    %86 = vector.extract_strided_slice %65 {offsets = [24, 0], sizes = [16, 36], strides = [1, 1]} : vector<40x36xf32> to vector<16x36xf32>
    %c0_66 = arith.constant 0 : index
    %c0_67 = arith.constant 0 : index
    %c0_68 = arith.constant 0 : index
    %87 = vector.load %arg7[%c0_66, %c0_67, %c0_68] : memref<1x16x36xf32, #tpu.memory_space<vmem>>, vector<1x16x36xf32>
    %88 = vector.shape_cast %87 : vector<1x16x36xf32> to vector<16x36xf32>
    %89 = vector.shape_cast %86 : vector<16x36xf32> to vector<1x16x36xf32>
    tpu.vector_store %arg7[%c0_66, %c0_67, %c0_68], %89 {strides = array<i32>} : memref<1x16x36xf32, #tpu.memory_space<vmem>>, vector<1x16x36xf32>,
    %90 = vector.extract_strided_slice %81 {offsets = [0, 0], sizes = [16, 36], strides = [1, 1]} : vector<40x36xf32> to vector<16x36xf32>
    %c0_69 = arith.constant 0 : index
    %c0_70 = arith.constant 0 : index
    %c0_71 = arith.constant 0 : index
    %91 = vector.load %arg8[%c0_69, %c0_70, %c0_71] : memref<1x16x36xf32, #tpu.memory_space<vmem>>, vector<1x16x36xf32>
    %92 = vector.shape_cast %91 : vector<1x16x36xf32> to vector<16x36xf32>
    %93 = vector.shape_cast %90 : vector<16x36xf32> to vector<1x16x36xf32>
    tpu.vector_store %arg8[%c0_69, %c0_70, %c0_71], %93 {strides = array<i32>} : memref<1x16x36xf32, #tpu.memory_space<vmem>>, vector<1x16x36xf32>,
    return
  }
  func.func @transform_0(%arg0: i32) -> (i32, i32, i32) {
    %c0_i32 = arith.constant 0 : i32
    %c0_i32_0 = arith.constant 0 : i32
    %c0_i32_1 = arith.constant 0 : i32
    return %arg0, %c0_i32, %c0_i32_0 : i32, i32, i32
  }
  func.func @transform_1(%arg0: i32) -> (i32, i32, i32) {
    %c0_i32 = arith.constant 0 : i32
    %c0_i32_0 = arith.constant 0 : i32
    %c0_i32_1 = arith.constant 0 : i32
    %c0_i32_2 = arith.constant 0 : i32
    return %c0_i32, %c0_i32_0, %c0_i32_1 : i32, i32, i32
  }
  func.func @transform_2(%arg0: i32) -> (i32, i32) {
    %c0_i32 = arith.constant 0 : i32
    %c0_i32_0 = arith.constant 0 : i32
    %c0_i32_1 = arith.constant 0 : i32
    return %c0_i32, %c0_i32_0 : i32, i32
  }
  func.func @transform_3(%arg0: i32) -> (i32, i32) {
    %c0_i32 = arith.constant 0 : i32
    %c0_i32_0 = arith.constant 0 : i32
    %c0_i32_1 = arith.constant 0 : i32
    return %c0_i32, %c0_i32_0 : i32, i32
  }
  func.func @transform_4(%arg0: i32) -> (i32, i32) {
    %c0_i32 = arith.constant 0 : i32
    %c0_i32_0 = arith.constant 0 : i32
    %c0_i32_1 = arith.constant 0 : i32
    return %c0_i32, %c0_i32_0 : i32, i32
  }
  func.func @transform_5(%arg0: i32) -> (i32, i32, i32) {
    %c0_i32 = arith.constant 0 : i32
    %c0_i32_0 = arith.constant 0 : i32
    %c0_i32_1 = arith.constant 0 : i32
    return %arg0, %c0_i32, %c0_i32_0 : i32, i32, i32
  }
  func.func @transform_6(%arg0: i32) -> (i32, i32, i32) {
    %c0_i32 = arith.constant 0 : i32
    %c0_i32_0 = arith.constant 0 : i32
    %c0_i32_1 = arith.constant 0 : i32
    return %arg0, %c0_i32, %c0_i32_0 : i32, i32, i32
  }
  func.func @transform_7(%arg0: i32) -> (i32, i32, i32) {
    %c0_i32 = arith.constant 0 : i32
    %c0_i32_0 = arith.constant 0 : i32
    %c0_i32_1 = arith.constant 0 : i32
    return %arg0, %c0_i32, %c0_i32_0 : i32, i32, i32
  }
}

module attributes {stable_mosaic.version = 11 : i64} {
  func.func @_upsample_l2_kernel(%arg0: i32, %arg1: memref<1x16x8x8xf32, #tpu.memory_space<vmem>>, %arg2: memref<16x8xf32, #tpu.memory_space<vmem>>, %arg3: memref<8x16xf32, #tpu.memory_space<vmem>>, %arg4: memref<1x16x16x16xf32, #tpu.memory_space<vmem>>, %arg5: memref<16x16x16xf32, #tpu.memory_space<vmem>>) attributes {dimension_semantics = [#tpu.dimension_semantics<parallel>], iteration_bounds = array<i64: 2>, scalar_prefetch = 0 : i64, scratch_operands = 1 : i64, tpu.core_type = #tpu.core_type<tc>, window_params = [{transform_indices = @transform_0, window_bounds = array<i64: 1, 16, 8, 8>}, {pipeline_mode = #tpu.pipeline_mode<synchronous>, transform_indices = @transform_1, window_bounds = array<i64: 16, 8>}, {pipeline_mode = #tpu.pipeline_mode<synchronous>, transform_indices = @transform_2, window_bounds = array<i64: 8, 16>}, {transform_indices = @transform_3, window_bounds = array<i64: 1, 16, 16, 16>}]} {
    %c0 = arith.constant 0 : index
    %c0_0 = arith.constant 0 : index
    %c0_1 = arith.constant 0 : index
    %c0_2 = arith.constant 0 : index
    %0 = vector.load %arg1[%c0, %c0_0, %c0_1, %c0_2] : memref<1x16x8x8xf32, #tpu.memory_space<vmem>>, vector<1x1x8x8xf32>
    %1 = vector.shape_cast %0 : vector<1x1x8x8xf32> to vector<8x8xf32>
    %c0_3 = arith.constant 0 : index
    %c0_4 = arith.constant 0 : index
    %2 = vector.load %arg3[%c0_3, %c0_4] : memref<8x16xf32, #tpu.memory_space<vmem>>, vector<8x16xf32>
    %cst = arith.constant dense<0.000000e+00> : vector<8x16xf32>
    %3 = tpu.matmul %1, %2, %cst {dimension_numbers = #tpu.dot_dimension_numbers<[1], [0], [0], [1], [0, 0, 1, 1], [], []>} : vector<8x8xf32>, vector<8x16xf32>, vector<8x16xf32> -> vector<8x16xf32>
    %c0_5 = arith.constant 0 : index
    %c0_6 = arith.constant 0 : index
    %4 = vector.load %arg2[%c0_5, %c0_6] : memref<16x8xf32, #tpu.memory_space<vmem>>, vector<16x8xf32>
    %cst_7 = arith.constant dense<0.000000e+00> : vector<16x16xf32>
    %5 = tpu.matmul %4, %3, %cst_7 {dimension_numbers = #tpu.dot_dimension_numbers<[1], [0], [0], [1], [0, 0, 1, 1], [], []>} : vector<16x8xf32>, vector<8x16xf32>, vector<16x16xf32> -> vector<16x16xf32>
    %c0_8 = arith.constant 0 : index
    %c0_9 = arith.constant 0 : index
    %c0_10 = arith.constant 0 : index
    %6 = vector.load %arg5[%c0_8, %c0_9, %c0_10] : memref<16x16x16xf32, #tpu.memory_space<vmem>>, vector<1x16x16xf32>
    %7 = vector.shape_cast %6 : vector<1x16x16xf32> to vector<16x16xf32>
    %8 = vector.shape_cast %5 : vector<16x16xf32> to vector<1x16x16xf32>
    tpu.vector_store %arg5[%c0_8, %c0_9, %c0_10], %8 {strides = array<i32>} : memref<16x16x16xf32, #tpu.memory_space<vmem>>, vector<1x16x16xf32>,
    %c0_11 = arith.constant 0 : index
    %c1 = arith.constant 1 : index
    %c0_12 = arith.constant 0 : index
    %c0_13 = arith.constant 0 : index
    %9 = vector.load %arg1[%c0_11, %c1, %c0_12, %c0_13] : memref<1x16x8x8xf32, #tpu.memory_space<vmem>>, vector<1x1x8x8xf32>
    %10 = vector.shape_cast %9 : vector<1x1x8x8xf32> to vector<8x8xf32>
    %c0_14 = arith.constant 0 : index
    %c0_15 = arith.constant 0 : index
    %11 = vector.load %arg3[%c0_14, %c0_15] : memref<8x16xf32, #tpu.memory_space<vmem>>, vector<8x16xf32>
    %cst_16 = arith.constant dense<0.000000e+00> : vector<8x16xf32>
    %12 = tpu.matmul %10, %11, %cst_16 {dimension_numbers = #tpu.dot_dimension_numbers<[1], [0], [0], [1], [0, 0, 1, 1], [], []>} : vector<8x8xf32>, vector<8x16xf32>, vector<8x16xf32> -> vector<8x16xf32>
    %c0_17 = arith.constant 0 : index
    %c0_18 = arith.constant 0 : index
    %13 = vector.load %arg2[%c0_17, %c0_18] : memref<16x8xf32, #tpu.memory_space<vmem>>, vector<16x8xf32>
    %cst_19 = arith.constant dense<0.000000e+00> : vector<16x16xf32>
    %14 = tpu.matmul %13, %12, %cst_19 {dimension_numbers = #tpu.dot_dimension_numbers<[1], [0], [0], [1], [0, 0, 1, 1], [], []>} : vector<16x8xf32>, vector<8x16xf32>, vector<16x16xf32> -> vector<16x16xf32>
    %c1_20 = arith.constant 1 : index
    %c0_21 = arith.constant 0 : index
    %c0_22 = arith.constant 0 : index
    %15 = vector.load %arg5[%c1_20, %c0_21, %c0_22] : memref<16x16x16xf32, #tpu.memory_space<vmem>>, vector<1x16x16xf32>
    %16 = vector.shape_cast %15 : vector<1x16x16xf32> to vector<16x16xf32>
    %17 = vector.shape_cast %14 : vector<16x16xf32> to vector<1x16x16xf32>
    tpu.vector_store %arg5[%c1_20, %c0_21, %c0_22], %17 {strides = array<i32>} : memref<16x16x16xf32, #tpu.memory_space<vmem>>, vector<1x16x16xf32>,
    %c0_23 = arith.constant 0 : index
    %c2 = arith.constant 2 : index
    %c0_24 = arith.constant 0 : index
    %c0_25 = arith.constant 0 : index
    %18 = vector.load %arg1[%c0_23, %c2, %c0_24, %c0_25] : memref<1x16x8x8xf32, #tpu.memory_space<vmem>>, vector<1x1x8x8xf32>
    %19 = vector.shape_cast %18 : vector<1x1x8x8xf32> to vector<8x8xf32>
    %c0_26 = arith.constant 0 : index
    %c0_27 = arith.constant 0 : index
    %20 = vector.load %arg3[%c0_26, %c0_27] : memref<8x16xf32, #tpu.memory_space<vmem>>, vector<8x16xf32>
    %cst_28 = arith.constant dense<0.000000e+00> : vector<8x16xf32>
    %21 = tpu.matmul %19, %20, %cst_28 {dimension_numbers = #tpu.dot_dimension_numbers<[1], [0], [0], [1], [0, 0, 1, 1], [], []>} : vector<8x8xf32>, vector<8x16xf32>, vector<8x16xf32> -> vector<8x16xf32>
    %c0_29 = arith.constant 0 : index
    %c0_30 = arith.constant 0 : index
    %22 = vector.load %arg2[%c0_29, %c0_30] : memref<16x8xf32, #tpu.memory_space<vmem>>, vector<16x8xf32>
    %cst_31 = arith.constant dense<0.000000e+00> : vector<16x16xf32>
    %23 = tpu.matmul %22, %21, %cst_31 {dimension_numbers = #tpu.dot_dimension_numbers<[1], [0], [0], [1], [0, 0, 1, 1], [], []>} : vector<16x8xf32>, vector<8x16xf32>, vector<16x16xf32> -> vector<16x16xf32>
    %c2_32 = arith.constant 2 : index
    %c0_33 = arith.constant 0 : index
    %c0_34 = arith.constant 0 : index
    %24 = vector.load %arg5[%c2_32, %c0_33, %c0_34] : memref<16x16x16xf32, #tpu.memory_space<vmem>>, vector<1x16x16xf32>
    %25 = vector.shape_cast %24 : vector<1x16x16xf32> to vector<16x16xf32>
    %26 = vector.shape_cast %23 : vector<16x16xf32> to vector<1x16x16xf32>
    tpu.vector_store %arg5[%c2_32, %c0_33, %c0_34], %26 {strides = array<i32>} : memref<16x16x16xf32, #tpu.memory_space<vmem>>, vector<1x16x16xf32>,
    %c0_35 = arith.constant 0 : index
    %c3 = arith.constant 3 : index
    %c0_36 = arith.constant 0 : index
    %c0_37 = arith.constant 0 : index
    %27 = vector.load %arg1[%c0_35, %c3, %c0_36, %c0_37] : memref<1x16x8x8xf32, #tpu.memory_space<vmem>>, vector<1x1x8x8xf32>
    %28 = vector.shape_cast %27 : vector<1x1x8x8xf32> to vector<8x8xf32>
    %c0_38 = arith.constant 0 : index
    %c0_39 = arith.constant 0 : index
    %29 = vector.load %arg3[%c0_38, %c0_39] : memref<8x16xf32, #tpu.memory_space<vmem>>, vector<8x16xf32>
    %cst_40 = arith.constant dense<0.000000e+00> : vector<8x16xf32>
    %30 = tpu.matmul %28, %29, %cst_40 {dimension_numbers = #tpu.dot_dimension_numbers<[1], [0], [0], [1], [0, 0, 1, 1], [], []>} : vector<8x8xf32>, vector<8x16xf32>, vector<8x16xf32> -> vector<8x16xf32>
    %c0_41 = arith.constant 0 : index
    %c0_42 = arith.constant 0 : index
    %31 = vector.load %arg2[%c0_41, %c0_42] : memref<16x8xf32, #tpu.memory_space<vmem>>, vector<16x8xf32>
    %cst_43 = arith.constant dense<0.000000e+00> : vector<16x16xf32>
    %32 = tpu.matmul %31, %30, %cst_43 {dimension_numbers = #tpu.dot_dimension_numbers<[1], [0], [0], [1], [0, 0, 1, 1], [], []>} : vector<16x8xf32>, vector<8x16xf32>, vector<16x16xf32> -> vector<16x16xf32>
    %c3_44 = arith.constant 3 : index
    %c0_45 = arith.constant 0 : index
    %c0_46 = arith.constant 0 : index
    %33 = vector.load %arg5[%c3_44, %c0_45, %c0_46] : memref<16x16x16xf32, #tpu.memory_space<vmem>>, vector<1x16x16xf32>
    %34 = vector.shape_cast %33 : vector<1x16x16xf32> to vector<16x16xf32>
    %35 = vector.shape_cast %32 : vector<16x16xf32> to vector<1x16x16xf32>
    tpu.vector_store %arg5[%c3_44, %c0_45, %c0_46], %35 {strides = array<i32>} : memref<16x16x16xf32, #tpu.memory_space<vmem>>, vector<1x16x16xf32>,
    %c0_47 = arith.constant 0 : index
    %c4 = arith.constant 4 : index
    %c0_48 = arith.constant 0 : index
    %c0_49 = arith.constant 0 : index
    %36 = vector.load %arg1[%c0_47, %c4, %c0_48, %c0_49] : memref<1x16x8x8xf32, #tpu.memory_space<vmem>>, vector<1x1x8x8xf32>
    %37 = vector.shape_cast %36 : vector<1x1x8x8xf32> to vector<8x8xf32>
    %c0_50 = arith.constant 0 : index
    %c0_51 = arith.constant 0 : index
    %38 = vector.load %arg3[%c0_50, %c0_51] : memref<8x16xf32, #tpu.memory_space<vmem>>, vector<8x16xf32>
    %cst_52 = arith.constant dense<0.000000e+00> : vector<8x16xf32>
    %39 = tpu.matmul %37, %38, %cst_52 {dimension_numbers = #tpu.dot_dimension_numbers<[1], [0], [0], [1], [0, 0, 1, 1], [], []>} : vector<8x8xf32>, vector<8x16xf32>, vector<8x16xf32> -> vector<8x16xf32>
    %c0_53 = arith.constant 0 : index
    %c0_54 = arith.constant 0 : index
    %40 = vector.load %arg2[%c0_53, %c0_54] : memref<16x8xf32, #tpu.memory_space<vmem>>, vector<16x8xf32>
    %cst_55 = arith.constant dense<0.000000e+00> : vector<16x16xf32>
    %41 = tpu.matmul %40, %39, %cst_55 {dimension_numbers = #tpu.dot_dimension_numbers<[1], [0], [0], [1], [0, 0, 1, 1], [], []>} : vector<16x8xf32>, vector<8x16xf32>, vector<16x16xf32> -> vector<16x16xf32>
    %c4_56 = arith.constant 4 : index
    %c0_57 = arith.constant 0 : index
    %c0_58 = arith.constant 0 : index
    %42 = vector.load %arg5[%c4_56, %c0_57, %c0_58] : memref<16x16x16xf32, #tpu.memory_space<vmem>>, vector<1x16x16xf32>
    %43 = vector.shape_cast %42 : vector<1x16x16xf32> to vector<16x16xf32>
    %44 = vector.shape_cast %41 : vector<16x16xf32> to vector<1x16x16xf32>
    tpu.vector_store %arg5[%c4_56, %c0_57, %c0_58], %44 {strides = array<i32>} : memref<16x16x16xf32, #tpu.memory_space<vmem>>, vector<1x16x16xf32>,
    %c0_59 = arith.constant 0 : index
    %c5 = arith.constant 5 : index
    %c0_60 = arith.constant 0 : index
    %c0_61 = arith.constant 0 : index
    %45 = vector.load %arg1[%c0_59, %c5, %c0_60, %c0_61] : memref<1x16x8x8xf32, #tpu.memory_space<vmem>>, vector<1x1x8x8xf32>
    %46 = vector.shape_cast %45 : vector<1x1x8x8xf32> to vector<8x8xf32>
    %c0_62 = arith.constant 0 : index
    %c0_63 = arith.constant 0 : index
    %47 = vector.load %arg3[%c0_62, %c0_63] : memref<8x16xf32, #tpu.memory_space<vmem>>, vector<8x16xf32>
    %cst_64 = arith.constant dense<0.000000e+00> : vector<8x16xf32>
    %48 = tpu.matmul %46, %47, %cst_64 {dimension_numbers = #tpu.dot_dimension_numbers<[1], [0], [0], [1], [0, 0, 1, 1], [], []>} : vector<8x8xf32>, vector<8x16xf32>, vector<8x16xf32> -> vector<8x16xf32>
    %c0_65 = arith.constant 0 : index
    %c0_66 = arith.constant 0 : index
    %49 = vector.load %arg2[%c0_65, %c0_66] : memref<16x8xf32, #tpu.memory_space<vmem>>, vector<16x8xf32>
    %cst_67 = arith.constant dense<0.000000e+00> : vector<16x16xf32>
    %50 = tpu.matmul %49, %48, %cst_67 {dimension_numbers = #tpu.dot_dimension_numbers<[1], [0], [0], [1], [0, 0, 1, 1], [], []>} : vector<16x8xf32>, vector<8x16xf32>, vector<16x16xf32> -> vector<16x16xf32>
    %c5_68 = arith.constant 5 : index
    %c0_69 = arith.constant 0 : index
    %c0_70 = arith.constant 0 : index
    %51 = vector.load %arg5[%c5_68, %c0_69, %c0_70] : memref<16x16x16xf32, #tpu.memory_space<vmem>>, vector<1x16x16xf32>
    %52 = vector.shape_cast %51 : vector<1x16x16xf32> to vector<16x16xf32>
    %53 = vector.shape_cast %50 : vector<16x16xf32> to vector<1x16x16xf32>
    tpu.vector_store %arg5[%c5_68, %c0_69, %c0_70], %53 {strides = array<i32>} : memref<16x16x16xf32, #tpu.memory_space<vmem>>, vector<1x16x16xf32>,
    %c0_71 = arith.constant 0 : index
    %c6 = arith.constant 6 : index
    %c0_72 = arith.constant 0 : index
    %c0_73 = arith.constant 0 : index
    %54 = vector.load %arg1[%c0_71, %c6, %c0_72, %c0_73] : memref<1x16x8x8xf32, #tpu.memory_space<vmem>>, vector<1x1x8x8xf32>
    %55 = vector.shape_cast %54 : vector<1x1x8x8xf32> to vector<8x8xf32>
    %c0_74 = arith.constant 0 : index
    %c0_75 = arith.constant 0 : index
    %56 = vector.load %arg3[%c0_74, %c0_75] : memref<8x16xf32, #tpu.memory_space<vmem>>, vector<8x16xf32>
    %cst_76 = arith.constant dense<0.000000e+00> : vector<8x16xf32>
    %57 = tpu.matmul %55, %56, %cst_76 {dimension_numbers = #tpu.dot_dimension_numbers<[1], [0], [0], [1], [0, 0, 1, 1], [], []>} : vector<8x8xf32>, vector<8x16xf32>, vector<8x16xf32> -> vector<8x16xf32>
    %c0_77 = arith.constant 0 : index
    %c0_78 = arith.constant 0 : index
    %58 = vector.load %arg2[%c0_77, %c0_78] : memref<16x8xf32, #tpu.memory_space<vmem>>, vector<16x8xf32>
    %cst_79 = arith.constant dense<0.000000e+00> : vector<16x16xf32>
    %59 = tpu.matmul %58, %57, %cst_79 {dimension_numbers = #tpu.dot_dimension_numbers<[1], [0], [0], [1], [0, 0, 1, 1], [], []>} : vector<16x8xf32>, vector<8x16xf32>, vector<16x16xf32> -> vector<16x16xf32>
    %c6_80 = arith.constant 6 : index
    %c0_81 = arith.constant 0 : index
    %c0_82 = arith.constant 0 : index
    %60 = vector.load %arg5[%c6_80, %c0_81, %c0_82] : memref<16x16x16xf32, #tpu.memory_space<vmem>>, vector<1x16x16xf32>
    %61 = vector.shape_cast %60 : vector<1x16x16xf32> to vector<16x16xf32>
    %62 = vector.shape_cast %59 : vector<16x16xf32> to vector<1x16x16xf32>
    tpu.vector_store %arg5[%c6_80, %c0_81, %c0_82], %62 {strides = array<i32>} : memref<16x16x16xf32, #tpu.memory_space<vmem>>, vector<1x16x16xf32>,
    %c0_83 = arith.constant 0 : index
    %c7 = arith.constant 7 : index
    %c0_84 = arith.constant 0 : index
    %c0_85 = arith.constant 0 : index
    %63 = vector.load %arg1[%c0_83, %c7, %c0_84, %c0_85] : memref<1x16x8x8xf32, #tpu.memory_space<vmem>>, vector<1x1x8x8xf32>
    %64 = vector.shape_cast %63 : vector<1x1x8x8xf32> to vector<8x8xf32>
    %c0_86 = arith.constant 0 : index
    %c0_87 = arith.constant 0 : index
    %65 = vector.load %arg3[%c0_86, %c0_87] : memref<8x16xf32, #tpu.memory_space<vmem>>, vector<8x16xf32>
    %cst_88 = arith.constant dense<0.000000e+00> : vector<8x16xf32>
    %66 = tpu.matmul %64, %65, %cst_88 {dimension_numbers = #tpu.dot_dimension_numbers<[1], [0], [0], [1], [0, 0, 1, 1], [], []>} : vector<8x8xf32>, vector<8x16xf32>, vector<8x16xf32> -> vector<8x16xf32>
    %c0_89 = arith.constant 0 : index
    %c0_90 = arith.constant 0 : index
    %67 = vector.load %arg2[%c0_89, %c0_90] : memref<16x8xf32, #tpu.memory_space<vmem>>, vector<16x8xf32>
    %cst_91 = arith.constant dense<0.000000e+00> : vector<16x16xf32>
    %68 = tpu.matmul %67, %66, %cst_91 {dimension_numbers = #tpu.dot_dimension_numbers<[1], [0], [0], [1], [0, 0, 1, 1], [], []>} : vector<16x8xf32>, vector<8x16xf32>, vector<16x16xf32> -> vector<16x16xf32>
    %c7_92 = arith.constant 7 : index
    %c0_93 = arith.constant 0 : index
    %c0_94 = arith.constant 0 : index
    %69 = vector.load %arg5[%c7_92, %c0_93, %c0_94] : memref<16x16x16xf32, #tpu.memory_space<vmem>>, vector<1x16x16xf32>
    %70 = vector.shape_cast %69 : vector<1x16x16xf32> to vector<16x16xf32>
    %71 = vector.shape_cast %68 : vector<16x16xf32> to vector<1x16x16xf32>
    tpu.vector_store %arg5[%c7_92, %c0_93, %c0_94], %71 {strides = array<i32>} : memref<16x16x16xf32, #tpu.memory_space<vmem>>, vector<1x16x16xf32>,
    %c0_95 = arith.constant 0 : index
    %c8 = arith.constant 8 : index
    %c0_96 = arith.constant 0 : index
    %c0_97 = arith.constant 0 : index
    %72 = vector.load %arg1[%c0_95, %c8, %c0_96, %c0_97] : memref<1x16x8x8xf32, #tpu.memory_space<vmem>>, vector<1x1x8x8xf32>
    %73 = vector.shape_cast %72 : vector<1x1x8x8xf32> to vector<8x8xf32>
    %c0_98 = arith.constant 0 : index
    %c0_99 = arith.constant 0 : index
    %74 = vector.load %arg3[%c0_98, %c0_99] : memref<8x16xf32, #tpu.memory_space<vmem>>, vector<8x16xf32>
    %cst_100 = arith.constant dense<0.000000e+00> : vector<8x16xf32>
    %75 = tpu.matmul %73, %74, %cst_100 {dimension_numbers = #tpu.dot_dimension_numbers<[1], [0], [0], [1], [0, 0, 1, 1], [], []>} : vector<8x8xf32>, vector<8x16xf32>, vector<8x16xf32> -> vector<8x16xf32>
    %c0_101 = arith.constant 0 : index
    %c0_102 = arith.constant 0 : index
    %76 = vector.load %arg2[%c0_101, %c0_102] : memref<16x8xf32, #tpu.memory_space<vmem>>, vector<16x8xf32>
    %cst_103 = arith.constant dense<0.000000e+00> : vector<16x16xf32>
    %77 = tpu.matmul %76, %75, %cst_103 {dimension_numbers = #tpu.dot_dimension_numbers<[1], [0], [0], [1], [0, 0, 1, 1], [], []>} : vector<16x8xf32>, vector<8x16xf32>, vector<16x16xf32> -> vector<16x16xf32>
    %c8_104 = arith.constant 8 : index
    %c0_105 = arith.constant 0 : index
    %c0_106 = arith.constant 0 : index
    %78 = vector.load %arg5[%c8_104, %c0_105, %c0_106] : memref<16x16x16xf32, #tpu.memory_space<vmem>>, vector<1x16x16xf32>
    %79 = vector.shape_cast %78 : vector<1x16x16xf32> to vector<16x16xf32>
    %80 = vector.shape_cast %77 : vector<16x16xf32> to vector<1x16x16xf32>
    tpu.vector_store %arg5[%c8_104, %c0_105, %c0_106], %80 {strides = array<i32>} : memref<16x16x16xf32, #tpu.memory_space<vmem>>, vector<1x16x16xf32>,
    %c0_107 = arith.constant 0 : index
    %c9 = arith.constant 9 : index
    %c0_108 = arith.constant 0 : index
    %c0_109 = arith.constant 0 : index
    %81 = vector.load %arg1[%c0_107, %c9, %c0_108, %c0_109] : memref<1x16x8x8xf32, #tpu.memory_space<vmem>>, vector<1x1x8x8xf32>
    %82 = vector.shape_cast %81 : vector<1x1x8x8xf32> to vector<8x8xf32>
    %c0_110 = arith.constant 0 : index
    %c0_111 = arith.constant 0 : index
    %83 = vector.load %arg3[%c0_110, %c0_111] : memref<8x16xf32, #tpu.memory_space<vmem>>, vector<8x16xf32>
    %cst_112 = arith.constant dense<0.000000e+00> : vector<8x16xf32>
    %84 = tpu.matmul %82, %83, %cst_112 {dimension_numbers = #tpu.dot_dimension_numbers<[1], [0], [0], [1], [0, 0, 1, 1], [], []>} : vector<8x8xf32>, vector<8x16xf32>, vector<8x16xf32> -> vector<8x16xf32>
    %c0_113 = arith.constant 0 : index
    %c0_114 = arith.constant 0 : index
    %85 = vector.load %arg2[%c0_113, %c0_114] : memref<16x8xf32, #tpu.memory_space<vmem>>, vector<16x8xf32>
    %cst_115 = arith.constant dense<0.000000e+00> : vector<16x16xf32>
    %86 = tpu.matmul %85, %84, %cst_115 {dimension_numbers = #tpu.dot_dimension_numbers<[1], [0], [0], [1], [0, 0, 1, 1], [], []>} : vector<16x8xf32>, vector<8x16xf32>, vector<16x16xf32> -> vector<16x16xf32>
    %c9_116 = arith.constant 9 : index
    %c0_117 = arith.constant 0 : index
    %c0_118 = arith.constant 0 : index
    %87 = vector.load %arg5[%c9_116, %c0_117, %c0_118] : memref<16x16x16xf32, #tpu.memory_space<vmem>>, vector<1x16x16xf32>
    %88 = vector.shape_cast %87 : vector<1x16x16xf32> to vector<16x16xf32>
    %89 = vector.shape_cast %86 : vector<16x16xf32> to vector<1x16x16xf32>
    tpu.vector_store %arg5[%c9_116, %c0_117, %c0_118], %89 {strides = array<i32>} : memref<16x16x16xf32, #tpu.memory_space<vmem>>, vector<1x16x16xf32>,
    %c0_119 = arith.constant 0 : index
    %c10 = arith.constant 10 : index
    %c0_120 = arith.constant 0 : index
    %c0_121 = arith.constant 0 : index
    %90 = vector.load %arg1[%c0_119, %c10, %c0_120, %c0_121] : memref<1x16x8x8xf32, #tpu.memory_space<vmem>>, vector<1x1x8x8xf32>
    %91 = vector.shape_cast %90 : vector<1x1x8x8xf32> to vector<8x8xf32>
    %c0_122 = arith.constant 0 : index
    %c0_123 = arith.constant 0 : index
    %92 = vector.load %arg3[%c0_122, %c0_123] : memref<8x16xf32, #tpu.memory_space<vmem>>, vector<8x16xf32>
    %cst_124 = arith.constant dense<0.000000e+00> : vector<8x16xf32>
    %93 = tpu.matmul %91, %92, %cst_124 {dimension_numbers = #tpu.dot_dimension_numbers<[1], [0], [0], [1], [0, 0, 1, 1], [], []>} : vector<8x8xf32>, vector<8x16xf32>, vector<8x16xf32> -> vector<8x16xf32>
    %c0_125 = arith.constant 0 : index
    %c0_126 = arith.constant 0 : index
    %94 = vector.load %arg2[%c0_125, %c0_126] : memref<16x8xf32, #tpu.memory_space<vmem>>, vector<16x8xf32>
    %cst_127 = arith.constant dense<0.000000e+00> : vector<16x16xf32>
    %95 = tpu.matmul %94, %93, %cst_127 {dimension_numbers = #tpu.dot_dimension_numbers<[1], [0], [0], [1], [0, 0, 1, 1], [], []>} : vector<16x8xf32>, vector<8x16xf32>, vector<16x16xf32> -> vector<16x16xf32>
    %c10_128 = arith.constant 10 : index
    %c0_129 = arith.constant 0 : index
    %c0_130 = arith.constant 0 : index
    %96 = vector.load %arg5[%c10_128, %c0_129, %c0_130] : memref<16x16x16xf32, #tpu.memory_space<vmem>>, vector<1x16x16xf32>
    %97 = vector.shape_cast %96 : vector<1x16x16xf32> to vector<16x16xf32>
    %98 = vector.shape_cast %95 : vector<16x16xf32> to vector<1x16x16xf32>
    tpu.vector_store %arg5[%c10_128, %c0_129, %c0_130], %98 {strides = array<i32>} : memref<16x16x16xf32, #tpu.memory_space<vmem>>, vector<1x16x16xf32>,
    %c0_131 = arith.constant 0 : index
    %c11 = arith.constant 11 : index
    %c0_132 = arith.constant 0 : index
    %c0_133 = arith.constant 0 : index
    %99 = vector.load %arg1[%c0_131, %c11, %c0_132, %c0_133] : memref<1x16x8x8xf32, #tpu.memory_space<vmem>>, vector<1x1x8x8xf32>
    %100 = vector.shape_cast %99 : vector<1x1x8x8xf32> to vector<8x8xf32>
    %c0_134 = arith.constant 0 : index
    %c0_135 = arith.constant 0 : index
    %101 = vector.load %arg3[%c0_134, %c0_135] : memref<8x16xf32, #tpu.memory_space<vmem>>, vector<8x16xf32>
    %cst_136 = arith.constant dense<0.000000e+00> : vector<8x16xf32>
    %102 = tpu.matmul %100, %101, %cst_136 {dimension_numbers = #tpu.dot_dimension_numbers<[1], [0], [0], [1], [0, 0, 1, 1], [], []>} : vector<8x8xf32>, vector<8x16xf32>, vector<8x16xf32> -> vector<8x16xf32>
    %c0_137 = arith.constant 0 : index
    %c0_138 = arith.constant 0 : index
    %103 = vector.load %arg2[%c0_137, %c0_138] : memref<16x8xf32, #tpu.memory_space<vmem>>, vector<16x8xf32>
    %cst_139 = arith.constant dense<0.000000e+00> : vector<16x16xf32>
    %104 = tpu.matmul %103, %102, %cst_139 {dimension_numbers = #tpu.dot_dimension_numbers<[1], [0], [0], [1], [0, 0, 1, 1], [], []>} : vector<16x8xf32>, vector<8x16xf32>, vector<16x16xf32> -> vector<16x16xf32>
    %c11_140 = arith.constant 11 : index
    %c0_141 = arith.constant 0 : index
    %c0_142 = arith.constant 0 : index
    %105 = vector.load %arg5[%c11_140, %c0_141, %c0_142] : memref<16x16x16xf32, #tpu.memory_space<vmem>>, vector<1x16x16xf32>
    %106 = vector.shape_cast %105 : vector<1x16x16xf32> to vector<16x16xf32>
    %107 = vector.shape_cast %104 : vector<16x16xf32> to vector<1x16x16xf32>
    tpu.vector_store %arg5[%c11_140, %c0_141, %c0_142], %107 {strides = array<i32>} : memref<16x16x16xf32, #tpu.memory_space<vmem>>, vector<1x16x16xf32>,
    %c0_143 = arith.constant 0 : index
    %c12 = arith.constant 12 : index
    %c0_144 = arith.constant 0 : index
    %c0_145 = arith.constant 0 : index
    %108 = vector.load %arg1[%c0_143, %c12, %c0_144, %c0_145] : memref<1x16x8x8xf32, #tpu.memory_space<vmem>>, vector<1x1x8x8xf32>
    %109 = vector.shape_cast %108 : vector<1x1x8x8xf32> to vector<8x8xf32>
    %c0_146 = arith.constant 0 : index
    %c0_147 = arith.constant 0 : index
    %110 = vector.load %arg3[%c0_146, %c0_147] : memref<8x16xf32, #tpu.memory_space<vmem>>, vector<8x16xf32>
    %cst_148 = arith.constant dense<0.000000e+00> : vector<8x16xf32>
    %111 = tpu.matmul %109, %110, %cst_148 {dimension_numbers = #tpu.dot_dimension_numbers<[1], [0], [0], [1], [0, 0, 1, 1], [], []>} : vector<8x8xf32>, vector<8x16xf32>, vector<8x16xf32> -> vector<8x16xf32>
    %c0_149 = arith.constant 0 : index
    %c0_150 = arith.constant 0 : index
    %112 = vector.load %arg2[%c0_149, %c0_150] : memref<16x8xf32, #tpu.memory_space<vmem>>, vector<16x8xf32>
    %cst_151 = arith.constant dense<0.000000e+00> : vector<16x16xf32>
    %113 = tpu.matmul %112, %111, %cst_151 {dimension_numbers = #tpu.dot_dimension_numbers<[1], [0], [0], [1], [0, 0, 1, 1], [], []>} : vector<16x8xf32>, vector<8x16xf32>, vector<16x16xf32> -> vector<16x16xf32>
    %c12_152 = arith.constant 12 : index
    %c0_153 = arith.constant 0 : index
    %c0_154 = arith.constant 0 : index
    %114 = vector.load %arg5[%c12_152, %c0_153, %c0_154] : memref<16x16x16xf32, #tpu.memory_space<vmem>>, vector<1x16x16xf32>
    %115 = vector.shape_cast %114 : vector<1x16x16xf32> to vector<16x16xf32>
    %116 = vector.shape_cast %113 : vector<16x16xf32> to vector<1x16x16xf32>
    tpu.vector_store %arg5[%c12_152, %c0_153, %c0_154], %116 {strides = array<i32>} : memref<16x16x16xf32, #tpu.memory_space<vmem>>, vector<1x16x16xf32>,
    %c0_155 = arith.constant 0 : index
    %c13 = arith.constant 13 : index
    %c0_156 = arith.constant 0 : index
    %c0_157 = arith.constant 0 : index
    %117 = vector.load %arg1[%c0_155, %c13, %c0_156, %c0_157] : memref<1x16x8x8xf32, #tpu.memory_space<vmem>>, vector<1x1x8x8xf32>
    %118 = vector.shape_cast %117 : vector<1x1x8x8xf32> to vector<8x8xf32>
    %c0_158 = arith.constant 0 : index
    %c0_159 = arith.constant 0 : index
    %119 = vector.load %arg3[%c0_158, %c0_159] : memref<8x16xf32, #tpu.memory_space<vmem>>, vector<8x16xf32>
    %cst_160 = arith.constant dense<0.000000e+00> : vector<8x16xf32>
    %120 = tpu.matmul %118, %119, %cst_160 {dimension_numbers = #tpu.dot_dimension_numbers<[1], [0], [0], [1], [0, 0, 1, 1], [], []>} : vector<8x8xf32>, vector<8x16xf32>, vector<8x16xf32> -> vector<8x16xf32>
    %c0_161 = arith.constant 0 : index
    %c0_162 = arith.constant 0 : index
    %121 = vector.load %arg2[%c0_161, %c0_162] : memref<16x8xf32, #tpu.memory_space<vmem>>, vector<16x8xf32>
    %cst_163 = arith.constant dense<0.000000e+00> : vector<16x16xf32>
    %122 = tpu.matmul %121, %120, %cst_163 {dimension_numbers = #tpu.dot_dimension_numbers<[1], [0], [0], [1], [0, 0, 1, 1], [], []>} : vector<16x8xf32>, vector<8x16xf32>, vector<16x16xf32> -> vector<16x16xf32>
    %c13_164 = arith.constant 13 : index
    %c0_165 = arith.constant 0 : index
    %c0_166 = arith.constant 0 : index
    %123 = vector.load %arg5[%c13_164, %c0_165, %c0_166] : memref<16x16x16xf32, #tpu.memory_space<vmem>>, vector<1x16x16xf32>
    %124 = vector.shape_cast %123 : vector<1x16x16xf32> to vector<16x16xf32>
    %125 = vector.shape_cast %122 : vector<16x16xf32> to vector<1x16x16xf32>
    tpu.vector_store %arg5[%c13_164, %c0_165, %c0_166], %125 {strides = array<i32>} : memref<16x16x16xf32, #tpu.memory_space<vmem>>, vector<1x16x16xf32>,
    %c0_167 = arith.constant 0 : index
    %c14 = arith.constant 14 : index
    %c0_168 = arith.constant 0 : index
    %c0_169 = arith.constant 0 : index
    %126 = vector.load %arg1[%c0_167, %c14, %c0_168, %c0_169] : memref<1x16x8x8xf32, #tpu.memory_space<vmem>>, vector<1x1x8x8xf32>
    %127 = vector.shape_cast %126 : vector<1x1x8x8xf32> to vector<8x8xf32>
    %c0_170 = arith.constant 0 : index
    %c0_171 = arith.constant 0 : index
    %128 = vector.load %arg3[%c0_170, %c0_171] : memref<8x16xf32, #tpu.memory_space<vmem>>, vector<8x16xf32>
    %cst_172 = arith.constant dense<0.000000e+00> : vector<8x16xf32>
    %129 = tpu.matmul %127, %128, %cst_172 {dimension_numbers = #tpu.dot_dimension_numbers<[1], [0], [0], [1], [0, 0, 1, 1], [], []>} : vector<8x8xf32>, vector<8x16xf32>, vector<8x16xf32> -> vector<8x16xf32>
    %c0_173 = arith.constant 0 : index
    %c0_174 = arith.constant 0 : index
    %130 = vector.load %arg2[%c0_173, %c0_174] : memref<16x8xf32, #tpu.memory_space<vmem>>, vector<16x8xf32>
    %cst_175 = arith.constant dense<0.000000e+00> : vector<16x16xf32>
    %131 = tpu.matmul %130, %129, %cst_175 {dimension_numbers = #tpu.dot_dimension_numbers<[1], [0], [0], [1], [0, 0, 1, 1], [], []>} : vector<16x8xf32>, vector<8x16xf32>, vector<16x16xf32> -> vector<16x16xf32>
    %c14_176 = arith.constant 14 : index
    %c0_177 = arith.constant 0 : index
    %c0_178 = arith.constant 0 : index
    %132 = vector.load %arg5[%c14_176, %c0_177, %c0_178] : memref<16x16x16xf32, #tpu.memory_space<vmem>>, vector<1x16x16xf32>
    %133 = vector.shape_cast %132 : vector<1x16x16xf32> to vector<16x16xf32>
    %134 = vector.shape_cast %131 : vector<16x16xf32> to vector<1x16x16xf32>
    tpu.vector_store %arg5[%c14_176, %c0_177, %c0_178], %134 {strides = array<i32>} : memref<16x16x16xf32, #tpu.memory_space<vmem>>, vector<1x16x16xf32>,
    %c0_179 = arith.constant 0 : index
    %c15 = arith.constant 15 : index
    %c0_180 = arith.constant 0 : index
    %c0_181 = arith.constant 0 : index
    %135 = vector.load %arg1[%c0_179, %c15, %c0_180, %c0_181] : memref<1x16x8x8xf32, #tpu.memory_space<vmem>>, vector<1x1x8x8xf32>
    %136 = vector.shape_cast %135 : vector<1x1x8x8xf32> to vector<8x8xf32>
    %c0_182 = arith.constant 0 : index
    %c0_183 = arith.constant 0 : index
    %137 = vector.load %arg3[%c0_182, %c0_183] : memref<8x16xf32, #tpu.memory_space<vmem>>, vector<8x16xf32>
    %cst_184 = arith.constant dense<0.000000e+00> : vector<8x16xf32>
    %138 = tpu.matmul %136, %137, %cst_184 {dimension_numbers = #tpu.dot_dimension_numbers<[1], [0], [0], [1], [0, 0, 1, 1], [], []>} : vector<8x8xf32>, vector<8x16xf32>, vector<8x16xf32> -> vector<8x16xf32>
    %c0_185 = arith.constant 0 : index
    %c0_186 = arith.constant 0 : index
    %139 = vector.load %arg2[%c0_185, %c0_186] : memref<16x8xf32, #tpu.memory_space<vmem>>, vector<16x8xf32>
    %cst_187 = arith.constant dense<0.000000e+00> : vector<16x16xf32>
    %140 = tpu.matmul %139, %138, %cst_187 {dimension_numbers = #tpu.dot_dimension_numbers<[1], [0], [0], [1], [0, 0, 1, 1], [], []>} : vector<16x8xf32>, vector<8x16xf32>, vector<16x16xf32> -> vector<16x16xf32>
    %c15_188 = arith.constant 15 : index
    %c0_189 = arith.constant 0 : index
    %c0_190 = arith.constant 0 : index
    %141 = vector.load %arg5[%c15_188, %c0_189, %c0_190] : memref<16x16x16xf32, #tpu.memory_space<vmem>>, vector<1x16x16xf32>
    %142 = vector.shape_cast %141 : vector<1x16x16xf32> to vector<16x16xf32>
    %143 = vector.shape_cast %140 : vector<16x16xf32> to vector<1x16x16xf32>
    tpu.vector_store %arg5[%c15_188, %c0_189, %c0_190], %143 {strides = array<i32>} : memref<16x16x16xf32, #tpu.memory_space<vmem>>, vector<1x16x16xf32>,
    %c0_191 = arith.constant 0 : index
    %c0_192 = arith.constant 0 : index
    %c0_193 = arith.constant 0 : index
    %144 = vector.load %arg5[%c0_191, %c0_192, %c0_193] : memref<16x16x16xf32, #tpu.memory_space<vmem>>, vector<16x16x16xf32>
    %145 = arith.mulf %144, %144 : vector<16x16x16xf32>
    %cst_194 = arith.constant dense<0.000000e+00> : vector<16x16xf32>
    %146 = vector.multi_reduction <add>, %145, %cst_194 [0] : vector<16x16x16xf32> to vector<16x16xf32>
    %147 = vector.shape_cast %146 : vector<16x16xf32> to vector<1x16x16xf32>
    %cst_195 = arith.constant 1.000000e-24 : f32
    %148 = vector.broadcast %cst_195 : f32 to vector<1x16x16xf32>
    %149 = arith.maximumf %147, %148 : vector<1x16x16xf32>
    %150 = math.rsqrt %149 : vector<1x16x16xf32>
    %151 = vector.broadcast %150 : vector<1x16x16xf32> to vector<16x16x16xf32>
    %152 = arith.mulf %144, %151 : vector<16x16x16xf32>
    %c0_196 = arith.constant 0 : index
    %c0_197 = arith.constant 0 : index
    %c0_198 = arith.constant 0 : index
    %c0_199 = arith.constant 0 : index
    %153 = vector.load %arg4[%c0_196, %c0_197, %c0_198, %c0_199] : memref<1x16x16x16xf32, #tpu.memory_space<vmem>>, vector<1x16x16x16xf32>
    %154 = vector.shape_cast %153 : vector<1x16x16x16xf32> to vector<16x16x16xf32>
    %155 = vector.shape_cast %152 : vector<16x16x16xf32> to vector<1x16x16x16xf32>
    tpu.vector_store %arg4[%c0_196, %c0_197, %c0_198, %c0_199], %155 {strides = array<i32>} : memref<1x16x16x16xf32, #tpu.memory_space<vmem>>, vector<1x16x16x16xf32>,
    return
  }
  func.func @transform_0(%arg0: i32) -> (i32, i32, i32, i32) {
    %c0_i32 = arith.constant 0 : i32
    %c0_i32_0 = arith.constant 0 : i32
    %c0_i32_1 = arith.constant 0 : i32
    %c0_i32_2 = arith.constant 0 : i32
    return %arg0, %c0_i32, %c0_i32_0, %c0_i32_1 : i32, i32, i32, i32
  }
  func.func @transform_1(%arg0: i32) -> (i32, i32) {
    %c0_i32 = arith.constant 0 : i32
    %c0_i32_0 = arith.constant 0 : i32
    %c0_i32_1 = arith.constant 0 : i32
    return %c0_i32, %c0_i32_0 : i32, i32
  }
  func.func @transform_2(%arg0: i32) -> (i32, i32) {
    %c0_i32 = arith.constant 0 : i32
    %c0_i32_0 = arith.constant 0 : i32
    %c0_i32_1 = arith.constant 0 : i32
    return %c0_i32, %c0_i32_0 : i32, i32
  }
  func.func @transform_3(%arg0: i32) -> (i32, i32, i32, i32) {
    %c0_i32 = arith.constant 0 : i32
    %c0_i32_0 = arith.constant 0 : i32
    %c0_i32_1 = arith.constant 0 : i32
    %c0_i32_2 = arith.constant 0 : i32
    return %arg0, %c0_i32, %c0_i32_0, %c0_i32_1 : i32, i32, i32, i32
  }
}

</mosaic_0001>

<bundles_post_ra>
// kernel: superpoint_forward.6
= control target key start
LH: loop header
LB: loop body
LE: loop exit
PB: predicated region body
PF: predicated region fallthrough
CT: control target
= control target key end

     0   :  { %s653_s15 = smov 0   ;;  %s754_s0 = inlined_call_operand.vmem [shape: bf16[2,1,362], index: 0, kind: input, shape index: {}]   ;;  %s755_s1 = inlined_call_operand.vmem [shape: bf16[9,8,1], index: 1, kind: input, shape index: {}]   ;;  %s756_s2 = inlined_call_operand.vmem [shape: f32[8,1], index: 2, kind: input, shape index: {}]   ;;  %s757_s3 = inlined_call_operand.vmem [shape: f32[1,324], index: 3, kind: input, shape index: {}]   ;;  %s758_s4 = inlined_call_operand.vmem [shape: bf16[2,8,324], index: 4, kind: output, shape index: {}]  }
   0x1 LB: > { %s570_s16 = sadd.s32 4294967295, %s617_s15   ;;  %p574_p0 = scmp.ge.s32.totalorder %s617_s15, 1  ;;  %s617_s15 = sphi %s653_s15, %s14_s15  }
   0x2   : > { %p161_p1 = scmp.lt.s32.totalorder %s617_s15, 3 }
   0x4   : > { %p162_p2 = pnand %p574_p0, %p161_p1 }
   0x5   : > { %v578_v0 = vld [vmem:[%s755_s1 + $0xc] sm:$0xff] (!%p162_p2)   ;;  %v576_v1 = vld [vmem:[%s755_s1 + $0x4] sm:$0xff] (!%p162_p2)   ;;  %v619_v2 = vmov (!%p162_p2), 0   ;;  %v581_v7 = vld [vmem:[%s755_s1 + $0x18] sm:$0xff] (!%p162_p2)   ;;  %p186_p3 = scmp.lt.s32.totalorder (!%p162_p2), %s570_s16, 1  ;;  %v205_v16 = vlaneseq (!%p162_p2)  ;;  %s620_s7 = smov (!%p162_p2), 127  }
   0x6   : > { %165 = sbr.rel (%p162_p2) target bundleno = 309 (0x135), region = 36  ;;  %610 = vset.pattern.permute.xlu1 (!%p162_p2), %v619_v2  ;;  %609 = vset.pattern.permute.xlu0 (!%p162_p2), %v619_v2  ;;  %v295_v3 = vunpack.c.l.bf16 (!%p162_p2), %v578_v0  ;;  %v237_v4 = vunpack.c.l.bf16 (!%p162_p2), %v576_v1  ;;  %v324_v5 = vunpack.c.h.bf16 (!%p162_p2), %v578_v0  ;;  %v266_v6 = vunpack.c.h.bf16 (!%p162_p2), %v576_v1  ;;  %v580_v8 = vld [vmem:[%s755_s1 + $0x14] ss:$12 sps:$4 sm:$0xff] (!%p162_p2)   ;;  %s621_s8 = smov (!%p162_p2), 126  }
   0x7   : > { %v382_v9 = vunpack.c.l.bf16 (!%p162_p2), %v581_v7  ;;  %v353_v10 = vunpack.c.l.bf16 (!%p162_p2), %v580_v8  ;;  %v440_v11 = vunpack.c.h.bf16 (!%p162_p2), %v580_v8  ;;  %v411_v12 = vunpack.c.h.bf16 (!%p162_p2), %v581_v7  ;;  %v196_v13 = vld [vmem:[%s755_s1] sm:$0xf] (!%p162_p2)  ;;  %s622_s9 = smov (!%p162_p2), 110   ;;  %s623_s10 = smov (!%p162_p2), 109  }
   0x8   : > { %298 = vperm.xlu1 (!%p162_p2), %610, %v295_v3   ;;  %240 = vperm.xlu0 (!%p162_p2), %609, %v237_v4   ;;  %v197_v14 = vunpack.c.l.bf16 (!%p162_p2), %v196_v13  ;;  %v467_v15 = vld [vmem:[%s756_s2] sm:$0xff] (!%p162_p2)  ;;  %v689_v17 = vshrl.u32 (!%p162_p2), %v205_v16, 7  ;;  %s624_s11 = smov (!%p162_p2), 108   ;;  %s625_s12 = smov (!%p162_p2), 92   ;;  %vm255_vm0 = vcmask (!%p162_p2), 1039360   ;;  %vm284_vm1 = vcmask (!%p162_p2), 1031168  }
   0x9   : > { %s626_s13 = smov (!%p162_p2), 91   ;;  %s627_s14 = smov (!%p162_p2), 90   ;;  %vm313_vm2 = vcmask (!%p162_p2), 900096   ;;  %vm342_vm3 = vcmask (!%p162_p2), 891904   ;;  %vm371_vm4 = vcmask (!%p162_p2), 883712   ;;  %vm400_vm5 = vcmask (!%p162_p2), 752640  }
   0xa   : > { %v692_v19 = vsub.s32 (!%p162_p2), 0, %v689_v17  ;;  %v211_v21 = vsub.s32 (!%p162_p2), 2, %v689_v17  ;;  %v215_v22 = vsub.s32 (!%p162_p2), 4, %v689_v17  ;;  %vm429_vm6 = vcmask (!%p162_p2), 744448  }
   0xb   : > { %vm458_vm7 = vcmask (!%p162_p2), 736256   ;;  %vm513_vm8 = vcmask (!%p162_p2), 551936  }
   0xc   : > { %327 = vperm.xlu1 (!%p162_p2), %610, %v324_v5   ;;  %269 = vperm.xlu0 (!%p162_p2), %609, %v266_v6  }
   0xd   : > { %s760_s16 = smov (!%p186_p3, %s570_s16), 1 }
   0xe   : > { %s590_s29 = smul.u32 3, %s760_s16 }
   0xf   : > { %s591_s19 = smul.u32 12, %s760_s16 }
  0x10   : > { %385 = vperm.xlu1 %610, %v382_v9   ;;  %356 = vperm.xlu0 %609, %v353_v10   ;;  %s189_s6 = scalar_lea.vmem %s754_s0, %s590_s29 }
  0x11   : > { %v195_v18 = vld [vmem:[%s189_s6] sm:$0x7]  ;;  %s194_s22 = scalar_lea.vmem %s758_s4, %s591_s19 }
  0x12   : > { %v198_v20 = vunpack.c.l.bf16 %v195_v18 }
  0x14   : > { %443 = vperm.xlu1 %610, %v440_v11   ;;  %414 = vperm.xlu0 %609, %v411_v12   ;;  %v208_v23 = vrot.slane %v198_v20, %v692_v19  ;;  %v212_v24 = vrot.slane %v198_v20, %v211_v21  ;;  %v216_v25 = vrot.slane %v198_v20, %v215_v22 }
  0x16   : > { %v700_v26 = vrot.slane %v208_v23, %v692_v19  ;;  %v703_v27 = vrot.slane %v212_v24, %v692_v19  ;;  %v706_v29 = vrot.slane %v216_v25, %v692_v19 }
  0x18   : > { %470 = vperm.xlu1 %610, %v467_v15   ;;  %201 = vperm.xlu0 %609, %v197_v14  }
  0x87   : > { %v241_v28 = vpop.permute.xlu0 %240  ;;  %v299_v36 = vpop.permute.xlu1 %298 }
  0x88   : > { %v243_v30 = vmul.f32 %v241_v28, %v700_v26  ;;  %v244_v31 = vmul.f32 %v241_v28, %v703_v27  ;;  %v245_v33 = vmul.f32 %v241_v28, %v706_v29  ;;  %v301_v38 = vmul.f32 %v299_v36, %v700_v26 }
  0x89   : > { %v302_v39 = vmul.f32 %v299_v36, %v703_v27  ;;  %v303_v40 = vmul.f32 %v299_v36, %v706_v29 }
  0x8a   : > { %249 = vrot.lane.b32.xlu1 %v243_v30, %s620_s7  ;;  %251 = vrot.lane.b32.xlu0 %v244_v31, %s620_s7 }
  0x8b   : > { %v270_v32 = vpop.permute.xlu0 %269  ;;  %v328_v41 = vpop.permute.xlu1 %327 }
  0x8c   : > { %v272_v34 = vmul.f32 %v270_v32, %v700_v26  ;;  %v273_v35 = vmul.f32 %v270_v32, %v703_v27  ;;  %v274_v37 = vmul.f32 %v270_v32, %v706_v29  ;;  %v330_v42 = vmul.f32 %v328_v41, %v700_v26 }
  0x8d   : > { %v331_v43 = vmul.f32 %v328_v41, %v703_v27  ;;  %v332_v44 = vmul.f32 %v328_v41, %v706_v29 }
  0x8e   : > { %253 = vrot.lane.b32.xlu1 %v245_v33, %s620_s7  ;;  %278 = vrot.lane.b32.xlu0 %v272_v34, %s621_s8 }
  0x8f   : > { %v357_v45 = vpop.permute.xlu0 %356  ;;  %v386_v48 = vpop.permute.xlu1 %385 }
  0x90   : > { %v359_v46 = vmul.f32 %v357_v45, %v700_v26  ;;  %v360_v47 = vmul.f32 %v357_v45, %v703_v27  ;;  %v361_v49 = vmul.f32 %v357_v45, %v706_v29  ;;  %v388_v50 = vmul.f32 %v386_v48, %v700_v26 }
  0x91   : > { %v389_v51 = vmul.f32 %v386_v48, %v703_v27  ;;  %v390_v52 = vmul.f32 %v386_v48, %v706_v29 }
  0x92   : > { %280 = vrot.lane.b32.xlu1 %v273_v35, %s621_s8  ;;  %282 = vrot.lane.b32.xlu0 %v274_v37, %s621_s8 }
  0x93   : > { %v415_v53 = vpop.permute.xlu0 %414  ;;  %v444_v55 = vpop.permute.xlu1 %443 }
  0x94   : > { %v418_v54 = vmul.f32 %v415_v53, %v703_v27  ;;  %v417_v56 = vmul.f32 %v415_v53, %v700_v26  ;;  %v446_v57 = vmul.f32 %v444_v55, %v700_v26  ;;  %v419_v58 = vmul.f32 %v415_v53, %v706_v29 }
  0x95   : > { %v448_v59 = vmul.f32 %v444_v55, %v706_v29  ;;  %v447_v60 = vmul.f32 %v444_v55, %v703_v27 }
  0x96   : > { %307 = vrot.lane.b32.xlu1 %v301_v38, %s622_s9  ;;  %309 = vrot.lane.b32.xlu0 %v302_v39, %s622_s9 }
  0x97   : > { %v732_v61 = vpop.permute.xlu1 %470  ;;  %v202_v62 = vpop.permute.xlu0 %201 }
  0x98   : > { %v234_v14 = vmul.f32 %v706_v29, %v202_v62  ;;  %v232_v20 = vmul.f32 %v700_v26, %v202_v62  ;;  %v233_v22 = vmul.f32 %v703_v27, %v202_v62 }
  0x9a   : > { %311 = vrot.lane.b32.xlu1 %v303_v40, %s622_s9  ;;  %336 = vrot.lane.b32.xlu0 %v330_v42, %s623_s10 }
  0x9e   : > { %338 = vrot.lane.b32.xlu1 %v331_v43, %s623_s10  ;;  %340 = vrot.lane.b32.xlu0 %v332_v44, %s623_s10 }
  0xa2   : > { %365 = vrot.lane.b32.xlu1 %v359_v46, %s624_s11  ;;  %367 = vrot.lane.b32.xlu0 %v360_v47, %s624_s11 }
  0xa6   : > { %369 = vrot.lane.b32.xlu1 %v361_v49, %s624_s11  ;;  %394 = vrot.lane.b32.xlu0 %v388_v50, %s625_s12 }
  0xaa   : > { %396 = vrot.lane.b32.xlu1 %v389_v51, %s625_s12  ;;  %398 = vrot.lane.b32.xlu0 %v390_v52, %s625_s12 }
  0xae   : > { %425 = vrot.lane.b32.xlu1 %v418_v54, %s626_s13  ;;  %423 = vrot.lane.b32.xlu0 %v417_v56, %s626_s13 }
  0xb2   : > { %452 = vrot.lane.b32.xlu1 %v446_v57, %s627_s14  ;;  %427 = vrot.lane.b32.xlu0 %v419_v58, %s626_s13 }
  0xb6   : > { %456 = vrot.lane.b32.xlu1 %v448_v59, %s627_s14  ;;  %454 = vrot.lane.b32.xlu0 %v447_v60, %s627_s14  ;;  %v479_v60 = vld [vmem:[%s757_s3] sm:$0x7] }
  0xfc   : > { %v250_v63 = vpop.permute.xlu1 %249  ;;  %v252_v0 = vpop.permute.xlu0 %251 }
  0xfd   : > { %v256_v16 = vsel %vm255_vm0, %v250_v63, %v252_v0 }
  0xfe   : > { %v261_v30 = vadd.f32 %v256_v16, %v232_v20 }
 0x100   : > { %v254_v1 = vpop.permute.xlu1 %253  ;;  %v279_v2 = vpop.permute.xlu0 %278 }
 0x101   : > { %v257_v18 = vsel %vm255_vm0, %v252_v0, %v254_v1  ;;  %v263_v23 = vadd.f32 %v254_v1, %v234_v14 }
 0x102   : > { %v262_v31 = vadd.f32 %v257_v18, %v233_v22 }
 0x104   : > { %v281_v3 = vpop.permute.xlu1 %280  ;;  %v283_v4 = vpop.permute.xlu0 %282 }
 0x105   : > { %v285_v24 = vsel %vm284_vm1, %v279_v2, %v281_v3  ;;  %v286_v25 = vsel %vm284_vm1, %v281_v3, %v283_v4  ;;  %v292_v32 = vadd.f32 %v283_v4, %v263_v23  ;;  %v487_v2 = vsub.s32 1, %v689_v17 }
 0x106   : > { %v290_v35 = vadd.f32 %v285_v24, %v261_v30  ;;  %v291_v36 = vadd.f32 %v286_v25, %v262_v31 }
 0x108   : > { %v308_v5 = vpop.permute.xlu1 %307  ;;  %v310_v6 = vpop.permute.xlu0 %309 }
 0x109   : > { %v314_v34 = vsel %vm313_vm2, %v308_v5, %v310_v6 }
 0x10a   : > { %v319_v27 = vadd.f32 %v314_v34, %v290_v35 }
 0x10c   : > { %v312_v7 = vpop.permute.xlu1 %311  ;;  %v337_v8 = vpop.permute.xlu0 %336 }
 0x10d   : > { %v315_v29 = vsel %vm313_vm2, %v310_v6, %v312_v7  ;;  %v321_v37 = vadd.f32 %v312_v7, %v292_v32  ;;  %v492_v7 = vrot.slane %v479_v60, %v211_v21 }
 0x10e   : > { %v320_v40 = vadd.f32 %v315_v29, %v291_v36 }
 0x110   : > { %v339_v9 = vpop.permute.xlu1 %338  ;;  %v341_v10 = vpop.permute.xlu0 %340 }
 0x111   : > { %v343_v38 = vsel %vm342_vm3, %v337_v8, %v339_v9  ;;  %v344_v26 = vsel %vm342_vm3, %v339_v9, %v341_v10  ;;  %v350_v41 = vadd.f32 %v341_v10, %v321_v37  ;;  %v484_v10 = vrot.slane %v479_v60, %v692_v19 }
 0x112   : > { %v348_v45 = vadd.f32 %v343_v38, %v319_v27  ;;  %v349_v46 = vadd.f32 %v344_v26, %v320_v40 }
 0x114   : > { %v366_v11 = vpop.permute.xlu1 %365  ;;  %v368_v12 = vpop.permute.xlu0 %367 }
 0x115   : > { %v372_v43 = vsel %vm371_vm4, %v366_v11, %v368_v12 }
 0x116   : > { %v377_v51 = vadd.f32 %v372_v43, %v348_v45 }
 0x118   : > { %v370_v13 = vpop.permute.xlu1 %369  ;;  %v395_v15 = vpop.permute.xlu0 %394 }
 0x119   : > { %v373_v44 = vsel %vm371_vm4, %v368_v12, %v370_v13  ;;  %v379_v47 = vadd.f32 %v370_v13, %v350_v41  ;;  %v488_v12 = vrot.slane %v479_v60, %v487_v2 }
 0x11a   : > { %v378_v52 = vadd.f32 %v373_v44, %v349_v46 }
 0x11c   : > { %v397_v28 = vpop.permute.xlu1 %396  ;;  %v399_v33 = vpop.permute.xlu0 %398 }
 0x11d   : > { %v401_v48 = vsel %vm400_vm5, %v395_v15, %v397_v28  ;;  %v402_v49 = vsel %vm400_vm5, %v397_v28, %v399_v33  ;;  %v408_v53 = vadd.f32 %v399_v33, %v379_v47 }
 0x11e   : > { %v406_v57 = vadd.f32 %v401_v48, %v377_v51  ;;  %v407_v58 = vadd.f32 %v402_v49, %v378_v52 }
 0x120   : > { %v426_v39 = vpop.permute.xlu1 %425  ;;  %v424_v42 = vpop.permute.xlu0 %423 }
 0x121   : > { %v430_v55 = vsel %vm429_vm6, %v424_v42, %v426_v39 }
 0x122   : > { %v435_v63 = vadd.f32 %v430_v55, %v406_v57 }
 0x124   : > { %v453_v50 = vpop.permute.xlu1 %452  ;;  %v428_v54 = vpop.permute.xlu0 %427 }
 0x125   : > { %v431_v56 = vsel %vm429_vm6, %v426_v39, %v428_v54  ;;  %v437_v59 = vadd.f32 %v428_v54, %v408_v53 }
 0x126   : > { %v436_v0 = vadd.f32 %v431_v56, %v407_v58 }
 0x128   : > { %v457_v62 = vpop.permute.xlu1 %456  ;;  %v455_v1 = vpop.permute.xlu0 %454 }
 0x129   : > { %v466_v3 = vadd.f32 %v457_v62, %v437_v59  ;;  %v459_v4 = vsel %vm458_vm7, %v453_v50, %v455_v1  ;;  %v460_v5 = vsel %vm458_vm7, %v455_v1, %v457_v62 }
 0x12a   : > { %v464_v6 = vadd.f32 %v459_v4, %v435_v63  ;;  %v465_v8 = vadd.f32 %v460_v5, %v436_v0 }
 0x12b   : > { %v475_v9 = vadd.f32 %v732_v61, %v466_v3 }
 0x12c   : > { %v473_v11 = vadd.f32 %v732_v61, %v464_v6  ;;  %v474_v13 = vadd.f32 %v732_v61, %v465_v8 }
 0x12d   : > { %v478_v14 = vmax.f32 %v475_v9, 0.0 }
 0x12e   : > { %v476_v15 = vmax.f32 %v473_v11, 0.0  ;;  %v477_v16 = vmax.f32 %v474_v13, 0.0 }
 0x12f   : > { %v498_v18 = vmul.f32 %v492_v7, %v478_v14 }
 0x130   : > { %v496_v17 = vmul.f32 %v484_v10, %v476_v15  ;;  %v497_v21 = vmul.f32 %v488_v12, %v477_v16 }
 0x131   : > { %v589_v20 = vpack.c.bf16 %v498_v18, %v498_v18 }
 0x132   : > { %v588_v22 = vpack.c.bf16 %v497_v21, %v496_v17 }
 0x133   : > { %514 = vst.msk [vmem:[%s194_s22 + $0x8] sm:$0xf] %vm513_vm8, %v589_v20 }
 0x134   : > { %512 = vst [vmem:[%s194_s22] sm:$0xff] %v588_v22 }
 0x135 PF: > { %s14_s15 = sadd.s32 1, %s617_s15  }
 0x136   : > { %p11_p4 = scmp.ge.s32.totalorder %s14_s15, 4  }
 0x138   :  { %13 = sbr.rel (!%p11_p4) target bundleno = 1 (0x1), region = 74 }

// kernel: superpoint_forward.7
= control target key start
LH: loop header
LB: loop body
LE: loop exit
PB: predicated region body
PF: predicated region fallthrough
CT: control target
= control target key end

     0   :  { %s1452_s15 = smov 0   ;;  %s1593_s0 = inlined_call_operand.vmem [shape: bf16[2,8,362], index: 0, kind: input, shape index: {}]   ;;  %s1594_s1 = inlined_call_operand.vmem [shape: bf16[9,8,8], index: 1, kind: input, shape index: {}]   ;;  %s1595_s2 = inlined_call_operand.vmem [shape: f32[8,1], index: 2, kind: input, shape index: {}]   ;;  %s1596_s3 = inlined_call_operand.vmem [shape: f32[1,324], index: 3, kind: input, shape index: {}]   ;;  %s1597_s4 = inlined_call_operand.vmem [shape: bf16[2,8,324], index: 4, kind: output, shape index: {}]  }
   0x1 LB: > { %s1261_s16 = sadd.s32 4294967295, %s1414_s15   ;;  %p1265_p0 = scmp.ge.s32.totalorder %s1414_s15, 1  ;;  %s1414_s15 = sphi %s1452_s15, %s14_s15  }
   0x2   : > { %p162_p1 = scmp.lt.s32.totalorder %s1414_s15, 3 }
   0x4   : > { %p163_p2 = pnand %p1265_p0, %p162_p1 }
   0x5   : > { %p188_p3 = scmp.lt.s32.totalorder (!%p163_p2), %s1261_s16, 1  ;;  %v1416_v0 = vmov (!%p163_p2), 0.0   ;;  %vm1417_vm0 = vmmov (!%p163_p2), 0   ;;  %v1418_v1 = vmov (!%p163_p2), 0   ;;  %s1419_s21 = smov (!%p163_p2), 127   ;;  %v1158_v6 = vld [vmem:[%s1595_s2] sm:$0xff] (!%p163_p2) }
   0x6   : > { %166 = sbr.rel (%p163_p2) target bundleno = 432 (0x1b0), region = 36  ;;  %1330 = vmatprep.subr.bf16.mxu1 (!%p163_p2), %v1416_v0  ;;  %1332 = vmatprep.mubr.msk.bf16.mxu1 (!%p163_p2), %vm1417_vm0, %v1416_v0  ;;  %s1420_s22 = smov (!%p163_p2), 126   ;;  %vm225_vm1 = vcmask (!%p163_p2), 1043456   ;;  %v1268_v10 = vld [vmem:[%s1594_s1 + $0x4] sm:$0xf] (!%p163_p2)  ;;  %vm221_vm2 = vcmask (!%p163_p2), 64512  }
   0x7   : > { %267 = vmatprep.mubr.bf16.mxu0 (!%p163_p2), %v1418_v1  ;;  %1404 = vset.pattern.permute.xlu0 (!%p163_p2), %v1418_v1  ;;  %s1421_s23 = smov (!%p163_p2), 110   ;;  %s1422_s24 = smov (!%p163_p2), 109   ;;  %vm218_vm3 = vcmask (!%p163_p2), 1039360   ;;  %vm417_vm4 = vcmask (!%p163_p2), 1031168   ;;  %v201_v20 = vld [vmem:[%s1594_s1] sm:$0xf] (!%p163_p2) }
   0x8   : > { %s1423_s25 = smov (!%p163_p2), 108   ;;  %s1424_s26 = smov (!%p163_p2), 92   ;;  %vm524_vm5 = vcmask (!%p163_p2), 900096   ;;  %v1278_v29 = vld [vmem:[%s1594_s1 + $0x8] sm:$0xf] (!%p163_p2)  ;;  %vm631_vm6 = vcmask (!%p163_p2), 891904  }
   0x9   : > { %s1425_s27 = smov (!%p163_p2), 91   ;;  %s1426_s28 = smov (!%p163_p2), 90   ;;  %v1282_v37 = vld [vmem:[%s1594_s1 + $0xc] sm:$0xf] (!%p163_p2)  ;;  %vm738_vm7 = vcmask (!%p163_p2), 883712   ;;  %vm845_vm8 = vcmask (!%p163_p2), 752640  }
   0xa   : > { %v1286_v45 = vld [vmem:[%s1594_s1 + $0x10] sm:$0xf] (!%p163_p2)  ;;  %v1290_v53 = vld [vmem:[%s1594_s1 + $0x14] sm:$0xf] (!%p163_p2)  ;;  %vm952_vm9 = vcmask (!%p163_p2), 744448   ;;  %vm1059_vm10 = vcmask (!%p163_p2), 736256  }
   0xb   : > { %v1294_v61 = vld [vmem:[%s1594_s1 + $0x18] sm:$0xf] (!%p163_p2)  ;;  %vm1204_vm11 = vcmask (!%p163_p2), 551936  }
   0xd   : > { %s1599_s16 = smov (!%p188_p3, %s1261_s16), 1 }
   0xe   : > { %s1384_s17 = smul.u32 12, %s1599_s16 }
  0x10   : > { %s192_s20 = scalar_lea.vmem %s1593_s0, %s1384_s17  ;;  %s197_s30 = scalar_lea.vmem %s1597_s4, %s1384_s17 }
  0x11   : > { %v1405_v2 = vld [vmem:[%s192_s20 + $0x8] ss:$0 sps:$4 sm:$0xff]   ;;  %v199_v3 = vld [vmem:[%s192_s20] sm:$0xff] }
  0x12   : > { %v1269_v4 = vcombine.low %v199_v3, %v199_v3  ;;  %216 = vrot.lane.b32.xlu1 %v1405_v2, %s1419_s21  ;;  %v1270_v5 = vcombine.high %v199_v3, %v199_v3  ;;  %v326_v11 = vsel %vm225_vm1, %v1405_v2, 0 }
  0x14   : > { %212 = vrot.lane.b32.xlu0 %v1269_v4, %s1419_s21  ;;  %v320_v18 = vsel %vm225_vm1, %v1269_v4, 0 }
  0x16   : > { %411 = vrot.lane.b32.xlu1 %v1269_v4, %s1420_s22 }
  0x18   : > { %214 = vrot.lane.b32.xlu0 %v1270_v5, %s1419_s21 }
  0x1a   : > { %415 = vrot.lane.b32.xlu1 %v1405_v2, %s1420_s22 }
  0x1c   : > { %413 = vrot.lane.b32.xlu0 %v1270_v5, %s1420_s22 }
  0x1e   : > { %520 = vrot.lane.b32.xlu1 %v1270_v5, %s1421_s23 }
  0x20   : > { %518 = vrot.lane.b32.xlu0 %v1269_v4, %s1421_s23 }
  0x22   : > { %625 = vrot.lane.b32.xlu1 %v1269_v4, %s1422_s24 }
  0x24   : > { %522 = vrot.lane.b32.xlu0 %v1405_v2, %s1421_s23 }
  0x26   : > { %629 = vrot.lane.b32.xlu1 %v1405_v2, %s1422_s24 }
  0x28   : > { %627 = vrot.lane.b32.xlu0 %v1270_v5, %s1422_s24 }
  0x2a   : > { %734 = vrot.lane.b32.xlu1 %v1270_v5, %s1423_s25 }
  0x2c   : > { %732 = vrot.lane.b32.xlu0 %v1269_v4, %s1423_s25 }
  0x2e   : > { %839 = vrot.lane.b32.xlu1 %v1269_v4, %s1424_s26 }
  0x30   : > { %736 = vrot.lane.b32.xlu0 %v1405_v2, %s1423_s25 }
  0x32   : > { %843 = vrot.lane.b32.xlu1 %v1405_v2, %s1424_s26 }
  0x34   : > { %841 = vrot.lane.b32.xlu0 %v1270_v5, %s1424_s26 }
  0x36   : > { %948 = vrot.lane.b32.xlu1 %v1270_v5, %s1425_s27 }
  0x38   : > { %946 = vrot.lane.b32.xlu0 %v1269_v4, %s1425_s27 }
  0x3a   : > { %1053 = vrot.lane.b32.xlu1 %v1269_v4, %s1426_s28 }
  0x3c   : > { %950 = vrot.lane.b32.xlu0 %v1405_v2, %s1425_s27 }
  0x3e   : > { %1057 = vrot.lane.b32.xlu1 %v1405_v2, %s1426_s28 }
  0x40   : > { %1055 = vrot.lane.b32.xlu0 %v1270_v5, %s1426_s28 }
  0x44   : > { %1161 = vperm.xlu0 %1404, %v1158_v6   ;;  %v1298_v6 = vld [vmem:[%s1594_s1 + $0x1c] sm:$0xf] }
  0x84   : > { %v217_v7 = vpop.permute.xlu1 %216 }
  0x85   : > { %v233_v9 = vsel %vm225_vm1, %v217_v7, 0 }
  0x86   : > { %v213_v8 = vpop.permute.xlu0 %212  ;;  %1331 = vmatpush3.bf16.msra.mxu1 %v233_v9 }
  0x87   : > { %1336 = vmatprep.subr.bf16.mxu1 %v1416_v0 }
  0x88   : > { %v412_v12 = vpop.permute.xlu1 %411 }
  0x89   : > { %1333 = vmatmul.mubr.msk.bf16.vlgmr.msra.gmra.mrb[0].mxu1 %vm221_vm2, %v1268_v10 }
  0x8a   : > { %v215_v13 = vpop.permute.xlu0 %214  ;;  %1337 = vmatpush3.bf16.msra.mxu1 %v326_v11  ;;  %1338 = vmatprep.mubr.msk.bf16.mxu1 %vm1417_vm0, %v1416_v0  ;;  %v1302_v11 = vld [vmem:[%s1594_s1 + $0x20] sm:$0xf] }
  0x8b   : > { %v220_v14 = vsel %vm218_vm3, %v215_v13, %v217_v7  ;;  %v219_v15 = vsel %vm218_vm3, %v213_v8, %v215_v13  ;;  %1342 = vmatprep.subr.bf16.mxu1 %v1416_v0 }
  0x8c   : > { %1272 = vmatprep.subr.msk.bf16.mxu0 %vm225_vm1, %v220_v14  ;;  %v227_v16 = vsel %vm225_vm1, %v219_v15, 0  ;;  %v416_v17 = vpop.permute.xlu1 %415 }
  0x8d   : > { %236 = vmatpush1.bf16.msra.mxu0 %v227_v16  ;;  %v430_v22 = vsel %vm225_vm1, %v416_v17, 0 }
  0x8e   : > { %1275 = vmatprep.subr.msk.bf16.mxu0 %vm225_vm1, %v1270_v5  ;;  %v414_v19 = vpop.permute.xlu0 %413 }
  0x8f   : > { %v419_v21 = vsel %vm417_vm4, %v414_v19, %v416_v17  ;;  %v418_v25 = vsel %vm417_vm4, %v412_v12, %v414_v19 }
  0x90   : > { %1273 = vmatmul.mubr.msk.bf16.vlgmr.msra.gmra.mrb[0].mxu0 %vm221_vm2, %v1268_v10  ;;  %v521_v23 = vpop.permute.xlu1 %520  ;;  %v424_v26 = vsel %vm225_vm1, %v418_v25, 0 }
  0x91   : > { %329 = vmatpush1.bf16.msra.mxu0 %v320_v18  ;;  %360 = vmatprep.mubr.bf16.mxu0 %v1418_v1 }
  0x92   : > { %1339 = vmatmul.mubr.msk.bf16.vlgmr.msra.gmra.mrb[4].mxu1 %vm221_vm2, %v201_v20  ;;  %1279 = vmatprep.subr.msk.bf16.mxu0 %vm225_vm1, %v419_v21  ;;  %v519_v24 = vpop.permute.xlu0 %518 }
  0x93   : > { %1343 = vmatpush3.bf16.msra.mxu1 %v430_v22  ;;  %1344 = vmatprep.mubr.msk.bf16.mxu1 %vm1417_vm0, %v1416_v0  ;;  %v525_v33 = vsel %vm524_vm5, %v519_v24, %v521_v23 }
  0x94   : > { %1348 = vmatprep.subr.bf16.mxu1 %v1416_v0  ;;  %v626_v28 = vpop.permute.xlu1 %625  ;;  %v531_v35 = vsel %vm225_vm1, %v525_v33, 0 }
  0x96   : > { %v523_v27 = vpop.permute.xlu0 %522 }
  0x97   : > { %v526_v30 = vsel %vm524_vm5, %v521_v23, %v523_v27  ;;  %v537_v31 = vsel %vm225_vm1, %v523_v27, 0 }
  0x98   : > { %1276 = vmatmul.mubr.msk.bf16.vlgmr.msra.gmra.mrb[4].mxu0 %vm221_vm2, %v201_v20  ;;  %v630_v34 = vpop.permute.xlu1 %629 }
  0x99   : > { %433 = vmatpush1.bf16.msra.mxu0 %v424_v26  ;;  %464 = vmatprep.mubr.bf16.mxu0 %v1418_v1  ;;  %v644_v39 = vsel %vm225_vm1, %v630_v34, 0 }
  0x9a   : > { %1345 = vmatmul.mubr.msk.bf16.vlgmr.msra.gmra.mrb[8].mxu1 %vm221_vm2, %v1278_v29  ;;  %1283 = vmatprep.subr.msk.bf16.mxu0 %vm225_vm1, %v526_v30  ;;  %v628_v32 = vpop.permute.xlu0 %627 }
  0x9b   : > { %1349 = vmatpush3.bf16.msra.mxu1 %v537_v31  ;;  %1350 = vmatprep.mubr.msk.bf16.mxu1 %vm1417_vm0, %v1416_v0  ;;  %v633_v38 = vsel %vm631_vm6, %v628_v32, %v630_v34  ;;  %v632_v41 = vsel %vm631_vm6, %v626_v28, %v628_v32 }
  0x9c   : > { %1354 = vmatprep.subr.bf16.mxu1 %v1416_v0  ;;  %v735_v40 = vpop.permute.xlu1 %734  ;;  %v638_v43 = vsel %vm225_vm1, %v632_v41, 0 }
  0x9e   : > { %v733_v36 = vpop.permute.xlu0 %732 }
  0x9f   : > { %v739_v49 = vsel %vm738_vm7, %v733_v36, %v735_v40 }
  0xa0   : > { %1280 = vmatmul.mubr.msk.bf16.vlgmr.msra.gmra.mrb[8].mxu0 %vm221_vm2, %v1278_v29  ;;  %v840_v44 = vpop.permute.xlu1 %839  ;;  %v745_v51 = vsel %vm225_vm1, %v739_v49, 0 }
  0xa1   : > { %540 = vmatpush1.bf16.msra.mxu0 %v531_v35  ;;  %571 = vmatprep.mubr.bf16.mxu0 %v1418_v1 }
  0xa2   : > { %1351 = vmatmul.mubr.msk.bf16.vlgmr.msra.gmra.mrb[12].mxu1 %vm221_vm2, %v1282_v37  ;;  %1287 = vmatprep.subr.msk.bf16.mxu0 %vm225_vm1, %v633_v38  ;;  %v737_v42 = vpop.permute.xlu0 %736 }
  0xa3   : > { %1355 = vmatpush3.bf16.msra.mxu1 %v644_v39  ;;  %1356 = vmatprep.mubr.msk.bf16.mxu1 %vm1417_vm0, %v1416_v0  ;;  %v740_v46 = vsel %vm738_vm7, %v735_v40, %v737_v42  ;;  %v751_v47 = vsel %vm225_vm1, %v737_v42, 0 }
  0xa4   : > { %1360 = vmatprep.subr.bf16.mxu1 %v1416_v0  ;;  %v844_v50 = vpop.permute.xlu1 %843 }
  0xa5   : > { %v858_v55 = vsel %vm225_vm1, %v844_v50, 0 }
  0xa6   : > { %v842_v48 = vpop.permute.xlu0 %841 }
  0xa7   : > { %v847_v54 = vsel %vm845_vm8, %v842_v48, %v844_v50  ;;  %v846_v57 = vsel %vm845_vm8, %v840_v44, %v842_v48 }
  0xa8   : > { %1284 = vmatmul.mubr.msk.bf16.vlgmr.msra.gmra.mrb[12].mxu0 %vm221_vm2, %v1282_v37  ;;  %v949_v56 = vpop.permute.xlu1 %948  ;;  %v852_v59 = vsel %vm225_vm1, %v846_v57, 0 }
  0xa9   : > { %647 = vmatpush1.bf16.msra.mxu0 %v638_v43  ;;  %678 = vmatprep.mubr.bf16.mxu0 %v1418_v1 }
  0xaa   : > { %1357 = vmatmul.mubr.msk.bf16.vlgmr.msra.gmra.mrb[16].mxu1 %vm221_vm2, %v1286_v45  ;;  %1291 = vmatprep.subr.msk.bf16.mxu0 %vm225_vm1, %v740_v46  ;;  %v947_v52 = vpop.permute.xlu0 %946 }
  0xab   : > { %1361 = vmatpush3.bf16.msra.mxu1 %v751_v47  ;;  %1362 = vmatprep.mubr.msk.bf16.mxu1 %vm1417_vm0, %v1416_v0  ;;  %v953_v2 = vsel %vm952_vm9, %v947_v52, %v949_v56 }
  0xac   : > { %1366 = vmatprep.subr.bf16.mxu1 %v1416_v0  ;;  %v1054_v60 = vpop.permute.xlu1 %1053  ;;  %v959_v5 = vsel %vm225_vm1, %v953_v2, 0 }
  0xae   : > { %v951_v58 = vpop.permute.xlu0 %950 }
  0xaf   : > { %v954_v62 = vsel %vm952_vm9, %v949_v56, %v951_v58  ;;  %v965_v63 = vsel %vm225_vm1, %v951_v58, 0 }
  0xb0   : > { %1288 = vmatmul.mubr.msk.bf16.vlgmr.msra.gmra.mrb[16].mxu0 %vm221_vm2, %v1286_v45  ;;  %v1058_v4 = vpop.permute.xlu1 %1057 }
  0xb1   : > { %754 = vmatpush1.bf16.msra.mxu0 %v745_v51  ;;  %785 = vmatprep.mubr.bf16.mxu0 %v1418_v1  ;;  %v1072_v8 = vsel %vm225_vm1, %v1058_v4, 0 }
  0xb2   : > { %1363 = vmatmul.mubr.msk.bf16.vlgmr.msra.gmra.mrb[20].mxu1 %vm221_vm2, %v1290_v53  ;;  %1295 = vmatprep.subr.msk.bf16.mxu0 %vm225_vm1, %v847_v54  ;;  %v1056_v3 = vpop.permute.xlu0 %1055 }
  0xb3   : > { %1367 = vmatpush3.bf16.msra.mxu1 %v858_v55  ;;  %1368 = vmatprep.mubr.msk.bf16.mxu1 %vm1417_vm0, %v1416_v0  ;;  %v1061_v7 = vsel %vm1059_vm10, %v1056_v3, %v1058_v4  ;;  %v1060_v9 = vsel %vm1059_vm10, %v1054_v60, %v1056_v3 }
  0xb4   : > { %1372 = vmatprep.subr.bf16.mxu1 %v1416_v0  ;;  %v1066_v10 = vsel %vm225_vm1, %v1060_v9, 0 }
  0xb8   : > { %1292 = vmatmul.mubr.msk.bf16.vlgmr.msra.gmra.mrb[20].mxu0 %vm221_vm2, %v1290_v53 }
  0xb9   : > { %861 = vmatpush1.bf16.msra.mxu0 %v852_v59  ;;  %892 = vmatprep.mubr.bf16.mxu0 %v1418_v1 }
  0xba   : > { %1369 = vmatmul.mubr.msk.bf16.vlgmr.msra.gmra.mrb[24].mxu1 %vm221_vm2, %v1294_v61  ;;  %1299 = vmatprep.subr.msk.bf16.mxu0 %vm225_vm1, %v954_v62 }
  0xbb   : > { %1373 = vmatpush3.bf16.msra.mxu1 %v965_v63  ;;  %1374 = vmatprep.mubr.msk.bf16.mxu1 %vm1417_vm0, %v1416_v0 }
  0xbc   : > { %1378 = vmatprep.subr.bf16.mxu1 %v1416_v0 }
  0xc0   : > { %1296 = vmatmul.mubr.msk.bf16.vlgmr.msra.gmra.mrb[24].mxu0 %vm221_vm2, %v1294_v61 }
  0xc1   : > { %968 = vmatpush1.bf16.msra.mxu0 %v959_v5  ;;  %999 = vmatprep.mubr.bf16.mxu0 %v1418_v1 }
  0xc2   : > { %1375 = vmatmul.mubr.msk.bf16.vlgmr.msra.gmra.mrb[28].mxu1 %vm221_vm2, %v1298_v6  ;;  %1303 = vmatprep.subr.msk.bf16.mxu0 %vm225_vm1, %v1061_v7 }
  0xc3   : > { %1379 = vmatpush3.bf16.msra.mxu1 %v1072_v8  ;;  %1380 = vmatprep.mubr.msk.bf16.mxu1 %vm1417_vm0, %v1416_v0 }
  0xc8   : > { %1300 = vmatmul.mubr.msk.bf16.vlgmr.msra.gmra.mrb[28].mxu0 %vm221_vm2, %v1298_v6 }
  0xc9   : > { %1075 = vmatpush1.bf16.msra.mxu0 %v1066_v10  ;;  %1106 = vmatprep.mubr.bf16.mxu0 %v1418_v1 }
  0xca   : > { %1381 = vmatmul.mubr.msk.bf16.vlgmr.msra.gmra.mrb[32].mxu1 %vm221_vm2, %v1302_v11 }
  0xd0   : > { %1304 = vmatmul.mubr.msk.bf16.vlgmr.msra.gmra.mrb[32].mxu0 %vm221_vm2, %v1302_v11 }
 0x15c   : > { %v310_v12 = vpop.f32.mrb[0].mxu1 }
 0x15d   : > { %v1334_v13 = vpop.f32.mrb[1].mxu1 }
 0x15e   : > { %v313_v14 = vpop.f32.mrb[2].mxu1 }
 0x15f   : > { %v1335_v15 = vpop.f32.mrb[3].mxu1 }
 0x163   : > { %v269_v0 = vpop.f32.mrb[0].mxu0 }
 0x164   : > { %v271_v16 = vpop.f32.mrb[1].mxu0 }
 0x165   : > { %v273_v17 = vpop.f32.mrb[2].mxu0  ;;  %v403_v18 = vpop.f32.mrb[4].mxu1 }
 0x166   : > { %v274_v19 = vpop.f32.mrb[3].mxu0  ;;  %v404_v20 = vadd.f32 %v403_v18, %v310_v12  ;;  %v1340_v21 = vpop.f32.mrb[5].mxu1  ;;  %v1172_v18 = vlaneseq }
 0x167   : > { %v406_v22 = vpop.f32.mrb[6].mxu1 }
 0x168   : > { %v1341_v23 = vpop.f32.mrb[7].mxu1 }
 0x16b   : > { %v362_v24 = vpop.f32.mrb[4].mxu0 }
 0x16c   : > { %v363_v25 = vadd.f32 %v362_v24, %v269_v0  ;;  %v364_v1 = vpop.f32.mrb[5].mxu0 }
 0x16d   : > { %v365_v26 = vadd.f32 %v364_v1, %v271_v16  ;;  %v366_v27 = vpop.f32.mrb[6].mxu0  ;;  %v507_v28 = vpop.f32.mrb[8].mxu1 }
 0x16e   : > { %v367_v29 = vpop.f32.mrb[7].mxu0  ;;  %v515_v30 = vadd.f32 %v507_v28, %v404_v20  ;;  %v1346_v31 = vpop.f32.mrb[9].mxu1 }
 0x16f   : > { %v510_v32 = vpop.f32.mrb[10].mxu1  ;;  %v1162_v31 = vpop.permute.xlu0 %1161 }
 0x170   : > { %v1347_v33 = vpop.f32.mrb[11].mxu1 }
 0x173   : > { %v466_v34 = vpop.f32.mrb[8].mxu0 }
 0x174   : > { %v513_v35 = vadd.f32 %v466_v34, %v363_v25  ;;  %v468_v36 = vpop.f32.mrb[9].mxu0 }
 0x175   : > { %v514_v37 = vadd.f32 %v468_v36, %v365_v26  ;;  %v470_v38 = vpop.f32.mrb[10].mxu0  ;;  %v614_v39 = vpop.f32.mrb[12].mxu1  ;;  %v1173_v26 = vshrl.u32 %v1172_v18, 7 }
 0x176   : > { %v471_v40 = vpop.f32.mrb[11].mxu0  ;;  %v622_v41 = vadd.f32 %v614_v39, %v515_v30  ;;  %v1352_v42 = vpop.f32.mrb[13].mxu1 }
 0x177   : > { %v617_v43 = vpop.f32.mrb[14].mxu1  ;;  %v1182_v30 = vsub.s32 2, %v1173_v26 }
 0x178   : > { %v1353_v44 = vpop.f32.mrb[15].mxu1 }
 0x179   : > { %v1174_v44 = vsub.s32 0, %v1173_v26 }
 0x17b   : > { %v573_v45 = vpop.f32.mrb[12].mxu0 }
 0x17c   : > { %v620_v46 = vadd.f32 %v573_v45, %v513_v35  ;;  %v575_v47 = vpop.f32.mrb[13].mxu0  ;;  %v1170_v35 = vld [vmem:[%s1596_s3] sm:$0x7] }
 0x17d   : > { %v621_v48 = vadd.f32 %v575_v47, %v514_v37  ;;  %v577_v49 = vpop.f32.mrb[14].mxu0  ;;  %v721_v50 = vpop.f32.mrb[16].mxu1  ;;  %v1183_v40 = vrot.slane %v1170_v35, %v1182_v30 }
 0x17e   : > { %v578_v51 = vpop.f32.mrb[15].mxu0  ;;  %v729_v52 = vadd.f32 %v721_v50, %v622_v41  ;;  %v1358_v53 = vpop.f32.mrb[17].mxu1 }
 0x17f   : > { %v724_v54 = vpop.f32.mrb[18].mxu1 }
 0x180   : > { %v1359_v55 = vpop.f32.mrb[19].mxu1  ;;  %v1175_v54 = vrot.slane %v1170_v35, %v1174_v44 }
 0x183   : > { %v680_v56 = vpop.f32.mrb[16].mxu0 }
 0x184   : > { %v727_v57 = vadd.f32 %v680_v56, %v620_v46  ;;  %v682_v58 = vpop.f32.mrb[17].mxu0  ;;  %v1178_v46 = vsub.s32 1, %v1173_v26 }
 0x185   : > { %v728_v59 = vadd.f32 %v682_v58, %v621_v48  ;;  %v684_v60 = vpop.f32.mrb[18].mxu0  ;;  %v828_v61 = vpop.f32.mrb[20].mxu1 }
 0x186   : > { %v685_v62 = vpop.f32.mrb[19].mxu0  ;;  %v836_v63 = vadd.f32 %v828_v61, %v729_v52  ;;  %v1364_v2 = vpop.f32.mrb[21].mxu1 }
 0x187   : > { %v831_v3 = vpop.f32.mrb[22].mxu1 }
 0x188   : > { %v1365_v4 = vpop.f32.mrb[23].mxu1 }
 0x18b   : > { %v787_v5 = vpop.f32.mrb[20].mxu0 }
 0x18c   : > { %v834_v6 = vadd.f32 %v787_v5, %v727_v57  ;;  %v789_v7 = vpop.f32.mrb[21].mxu0  ;;  %v1179_v57 = vrot.slane %v1170_v35, %v1178_v46 }
 0x18d   : > { %v835_v8 = vadd.f32 %v789_v7, %v728_v59  ;;  %v791_v9 = vpop.f32.mrb[22].mxu0  ;;  %v935_v10 = vpop.f32.mrb[24].mxu1 }
 0x18e   : > { %v792_v11 = vpop.f32.mrb[23].mxu0  ;;  %v943_v12 = vadd.f32 %v935_v10, %v836_v63  ;;  %v1370_v13 = vpop.f32.mrb[25].mxu1 }
 0x18f   : > { %v938_v14 = vpop.f32.mrb[26].mxu1 }
 0x190   : > { %v1371_v15 = vpop.f32.mrb[27].mxu1 }
 0x193   : > { %v894_v0 = vpop.f32.mrb[24].mxu0 }
 0x194   : > { %v941_v16 = vadd.f32 %v894_v0, %v834_v6  ;;  %v896_v17 = vpop.f32.mrb[25].mxu0 }
 0x195   : > { %v942_v19 = vadd.f32 %v896_v17, %v835_v8  ;;  %v898_v20 = vpop.f32.mrb[26].mxu0  ;;  %v1042_v21 = vpop.f32.mrb[28].mxu1 }
 0x196   : > { %v899_v22 = vpop.f32.mrb[27].mxu0  ;;  %v1050_v23 = vadd.f32 %v1042_v21, %v943_v12  ;;  %v1376_v24 = vpop.f32.mrb[29].mxu1 }
 0x197   : > { %v1045_v25 = vpop.f32.mrb[30].mxu1 }
 0x198   : > { %v1377_v1 = vpop.f32.mrb[31].mxu1 }
 0x19b   : > { %v1001_v27 = vpop.f32.mrb[28].mxu0 }
 0x19c   : > { %v1048_v28 = vadd.f32 %v1001_v27, %v941_v16  ;;  %v1003_v29 = vpop.f32.mrb[29].mxu0 }
 0x19d   : > { %v1049_v32 = vadd.f32 %v1003_v29, %v942_v19  ;;  %v1005_v33 = vpop.f32.mrb[30].mxu0  ;;  %v1149_v34 = vpop.f32.mrb[32].mxu1 }
 0x19e   : > { %v1006_v36 = vpop.f32.mrb[31].mxu0  ;;  %v1157_v37 = vadd.f32 %v1149_v34, %v1050_v23  ;;  %v1382_v38 = vpop.f32.mrb[33].mxu1 }
 0x19f   : > { %v1152_v39 = vpop.f32.mrb[34].mxu1 }
 0x1a0   : > { %v1166_v41 = vadd.f32 %v1162_v31, %v1157_v37  ;;  %v1383_v42 = vpop.f32.mrb[35].mxu1 }
 0x1a2   : > { %v1169_v43 = vmax.f32 %v1166_v41, 0.0 }
 0x1a3   : > { %v1108_v45 = vpop.f32.mrb[32].mxu0 }
 0x1a4   : > { %v1189_v47 = vmul.f32 %v1183_v40, %v1169_v43  ;;  %v1155_v48 = vadd.f32 %v1108_v45, %v1048_v28  ;;  %v1110_v49 = vpop.f32.mrb[33].mxu0 }
 0x1a5   : > { %v1156_v50 = vadd.f32 %v1110_v49, %v1049_v32  ;;  %v1112_v51 = vpop.f32.mrb[34].mxu0 }
 0x1a6   : > { %v1311_v52 = vpack.c.bf16 %v1189_v47, %v1189_v47  ;;  %v1164_v53 = vadd.f32 %v1162_v31, %v1155_v48  ;;  %v1113_v55 = vpop.f32.mrb[35].mxu0 }
 0x1a7   : > { %v1165_v56 = vadd.f32 %v1162_v31, %v1156_v50 }
 0x1a8   : > { %1205 = vst.msk [vmem:[%s197_s30 + $0x8] sm:$0xf] %vm1204_vm11, %v1311_v52  ;;  %v1167_v58 = vmax.f32 %v1164_v53, 0.0 }
 0x1a9   : > { %v1168_v59 = vmax.f32 %v1165_v56, 0.0 }
 0x1aa   : > { %v1187_v60 = vmul.f32 %v1175_v54, %v1167_v58 }
 0x1ab   : > { %v1188_v61 = vmul.f32 %v1179_v57, %v1168_v59 }
 0x1ad   : > { %v1310_v62 = vpack.c.bf16 %v1188_v61, %v1187_v60 }
 0x1af   : > { %1203 = vst [vmem:[%s197_s30] sm:$0xff] %v1310_v62 }
 0x1b0 PF: > { %s14_s15 = sadd.s32 1, %s1414_s15  }
 0x1b1   : > { %p11_p4 = scmp.ge.s32.totalorder %s14_s15, 4  }
 0x1b3   :  { %13 = sbr.rel (!%p11_p4) target bundleno = 1 (0x1), region = 74 }

// kernel: superpoint_forward.8
= control target key start
LH: loop header
LB: loop body
LE: loop exit
PB: predicated region body
PF: predicated region fallthrough
CT: control target
= control target key end

     0   :  { %s1015_s15 = smov 0   ;;  %s1117_s0 = inlined_call_operand.vmem [shape: bf16[2,8,122], index: 0, kind: input, shape index: {}]   ;;  %s1118_s1 = inlined_call_operand.vmem [shape: bf16[9,16,8], index: 1, kind: input, shape index: {}]   ;;  %s1119_s2 = inlined_call_operand.vmem [shape: f32[16,1], index: 2, kind: input, shape index: {}]   ;;  %s1120_s3 = inlined_call_operand.vmem [shape: f32[1,100], index: 3, kind: input, shape index: {}]   ;;  %s1121_s4 = inlined_call_operand.vmem [shape: bf16[2,16,100], index: 4, kind: output, shape index: {}]  }
   0x1 LB: > { %s817_s16 = sadd.s32 4294967295, %s977_s15   ;;  %p821_p0 = scmp.ge.s32.totalorder %s977_s15, 1  ;;  %s977_s15 = sphi %s1015_s15, %s14_s15  }
   0x2   : > { %p161_p1 = scmp.lt.s32.totalorder %s977_s15, 3 }
   0x4   : > { %p162_p2 = pnand %p821_p0, %p161_p1 }
   0x5   : > { %p186_p3 = scmp.lt.s32.totalorder (!%p162_p2), %s817_s16, 1  ;;  %v979_v0 = vmov (!%p162_p2), 0.0   ;;  %vm980_vm0 = vmmov (!%p162_p2), 0   ;;  %vm216_vm1 = vcmask (!%p162_p2), 1043456   ;;  %v963_v4 = vld [vmem:[%s1118_s1] sm:$0xff] (!%p162_p2)   ;;  %vm212_vm2 = vcmask (!%p162_p2), 64512  }
   0x6   : > { %165 = sbr.rel (%p162_p2) target bundleno = 395 (0x18b), region = 36  ;;  %886 = vmatprep.subr.bf16.mxu0 (!%p162_p2), %v979_v0  ;;  %892 = vmatprep.subr.bf16.mxu1 (!%p162_p2), %v979_v0  ;;  %s981_s23 = smov (!%p162_p2), 127   ;;  %v726_v5 = vld [vmem:[%s1119_s2] sm:$0xff] (!%p162_p2)  ;;  %v727_v6 = vld [vmem:[%s1119_s2 + $0x8] sm:$0xff] (!%p162_p2)  ;;  %v989_v7 = vmov (!%p162_p2), 0   ;;  %v965_v13 = vld [vmem:[%s1118_s1 + $0x18] sm:$0xff] (!%p162_p2)  }
   0x7   : > { %888 = vmatprep.mubr.msk.bf16.mxu0 (!%p162_p2), %vm980_vm0, %v979_v0  ;;  %894 = vmatprep.mubr.msk.bf16.mxu1 (!%p162_p2), %vm980_vm0, %v979_v0  ;;  %s982_s24 = smov (!%p162_p2), 118   ;;  %s983_s25 = smov (!%p162_p2), 126   ;;  %v962_v11 = vld [vmem:[%s1118_s1 + $0x8] sm:$0xff] (!%p162_p2)   ;;  %v964_v18 = vld [vmem:[%s1118_s1 + $0x10] sm:$0xff] (!%p162_p2)   ;;  %v966_v25 = vld [vmem:[%s1118_s1 + $0x20] sm:$0xff] (!%p162_p2)   ;;  %vm759_vm3 = vcmask (!%p162_p2), 814080  }
   0x8   : > { %s984_s26 = smov (!%p162_p2), 117   ;;  %s985_s27 = smov (!%p162_p2), 116   ;;  %959 = vset.pattern.permute.xlu0 (!%p162_p2), %v989_v7  ;;  %960 = vset.pattern.permute.xlu1 (!%p162_p2), %v989_v7  ;;  %v967_v20 = vld [vmem:[%s1118_s1 + $0x28] sm:$0xff] (!%p162_p2)   ;;  %v969_v26 = vld [vmem:[%s1118_s1 + $0x38] sm:$0xff] (!%p162_p2)   ;;  %v968_v29 = vld [vmem:[%s1118_s1 + $0x30] sm:$0xff] (!%p162_p2)  }
   0x9   : > { %s986_s28 = smov (!%p162_p2), 108   ;;  %s987_s29 = smov (!%p162_p2), 107   ;;  %v970_v31 = vld [vmem:[%s1118_s1 + $0x40] sm:$0xff] (!%p162_p2)  }
   0xa   : > { %s988_s30 = smov (!%p162_p2), 106  }
   0xd   : > { %s1123_s16 = smov (!%p186_p3, %s817_s16), 1 }
   0xe   : > { %s822_s17 = sshll.u32 %s1123_s16, 2 }
   0xf   : > { %s189_s20 = scalar_lea.vmem %s1117_s0, %s822_s17 }
  0x10   : > { %v196_v1 = vld [vmem:[%s189_s20] sm:$0xf] }
  0x11   : > { %v828_v2 = vcombine.low %v196_v1, %v196_v1  ;;  %v270_v3 = vsel %vm216_vm1, %v196_v1, 0 }
  0x12   : > { %893 = vmatpush3.bf16.msra.mxu1 %v270_v3 }
  0x13   : > { %210 = vrot.lane.b32.xlu0 %v828_v2, %s981_s23  ;;  %380 = vrot.lane.b32.xlu1 %v828_v2, %s982_s24 }
  0x14   : > { %904 = vmatprep.subr.bf16.mxu1 %v979_v0 }
  0x15   : > { %895 = vmatmul.mubr.msk.bf16.vlgmr.msra.gmra.mrb[0].mxu1 %vm212_vm2, %v963_v4 }
  0x16   : > { %906 = vmatprep.mubr.msk.bf16.mxu1 %vm980_vm0, %v979_v0 }
  0x17   : > { %321 = vrot.lane.b32.xlu0 %v828_v2, %s983_s25  ;;  %439 = vrot.lane.b32.xlu1 %v828_v2, %s984_s26 }
  0x1b   : > { %498 = vrot.lane.b32.xlu0 %v828_v2, %s985_s27  ;;  %557 = vrot.lane.b32.xlu1 %v828_v2, %s986_s28 }
  0x1f   : > { %616 = vrot.lane.b32.xlu0 %v828_v2, %s987_s29  ;;  %675 = vrot.lane.b32.xlu1 %v828_v2, %s988_s30  ;;  %s865_s29 = sshll.u32 %s1123_s16, 3 }
  0x20   : > { %s194_s6 = scalar_lea.vmem %s1121_s4, %s865_s29 }
  0x23   : > { %730 = vperm.xlu0 %959, %v726_v5   ;;  %735 = vperm.xlu1 %960, %v727_v6  }
  0x85   : > { %v211_v8 = vpop.permute.xlu0 %210  ;;  %v381_v9 = vpop.permute.xlu1 %380 }
  0x86   : > { %v218_v10 = vsel %vm216_vm1, %v211_v8, 0  ;;  %v386_v12 = vsel %vm216_vm1, %v381_v9, 0 }
  0x87   : > { %887 = vmatpush3.bf16.msra.mxu0 %v218_v10  ;;  %905 = vmatpush3.bf16.msra.mxu1 %v386_v12 }
  0x88   : > { %898 = vmatprep.subr.bf16.mxu0 %v979_v0  ;;  %916 = vmatprep.subr.bf16.mxu1 %v979_v0 }
  0x89   : > { %v322_v14 = vpop.permute.xlu0 %321  ;;  %v440_v16 = vpop.permute.xlu1 %439 }
  0x8a   : > { %v327_v15 = vsel %vm216_vm1, %v322_v14, 0  ;;  %889 = vmatmul.mubr.msk.bf16.vlgmr.msra.gmra.mrb[0].mxu0 %vm212_vm2, %v962_v11  ;;  %907 = vmatmul.mubr.msk.bf16.vlgmr.msra.gmra.mrb[4].mxu1 %vm212_vm2, %v965_v13  ;;  %v445_v21 = vsel %vm216_vm1, %v440_v16, 0 }
  0x8b   : > { %899 = vmatpush3.bf16.msra.mxu0 %v327_v15  ;;  %900 = vmatprep.mubr.msk.bf16.mxu0 %vm980_vm0, %v979_v0 }
  0x8c   : > { %910 = vmatprep.subr.bf16.mxu0 %v979_v0  ;;  %918 = vmatprep.mubr.msk.bf16.mxu1 %vm980_vm0, %v979_v0 }
  0x8d   : > { %v499_v17 = vpop.permute.xlu0 %498  ;;  %v558_v24 = vpop.permute.xlu1 %557 }
  0x8e   : > { %v504_v19 = vsel %vm216_vm1, %v499_v17, 0  ;;  %v563_v27 = vsel %vm216_vm1, %v558_v24, 0 }
  0x8f   : > { %917 = vmatpush3.bf16.msra.mxu1 %v504_v19 }
  0x90   : > { %928 = vmatprep.subr.bf16.mxu1 %v979_v0 }
  0x91   : > { %v617_v22 = vpop.permute.xlu0 %616  ;;  %v676_v28 = vpop.permute.xlu1 %675 }
  0x92   : > { %901 = vmatmul.mubr.msk.bf16.vlgmr.msra.gmra.mrb[4].mxu0 %vm212_vm2, %v964_v18  ;;  %919 = vmatmul.mubr.msk.bf16.vlgmr.msra.gmra.mrb[8].mxu1 %vm212_vm2, %v967_v20  ;;  %v622_v23 = vsel %vm216_vm1, %v617_v22, 0  ;;  %v681_v30 = vsel %vm216_vm1, %v676_v28, 0 }
  0x93   : > { %911 = vmatpush3.bf16.msra.mxu0 %v445_v21  ;;  %912 = vmatprep.mubr.msk.bf16.mxu0 %vm980_vm0, %v979_v0 }
  0x94   : > { %922 = vmatprep.subr.bf16.mxu0 %v979_v0  ;;  %929 = vmatpush3.bf16.msra.mxu1 %v622_v23  ;;  %v860_v23 = vld [vmem:[%s1120_s3] ss:$0 sm:$0xff] }
  0x95   : > { %930 = vmatprep.mubr.msk.bf16.mxu1 %vm980_vm0, %v979_v0 }
  0x9a   : > { %913 = vmatmul.mubr.msk.bf16.vlgmr.msra.gmra.mrb[8].mxu0 %vm212_vm2, %v966_v25  ;;  %931 = vmatmul.mubr.msk.bf16.vlgmr.msra.gmra.mrb[12].mxu1 %vm212_vm2, %v969_v26 }
  0x9b   : > { %923 = vmatpush3.bf16.msra.mxu0 %v563_v27  ;;  %924 = vmatprep.mubr.msk.bf16.mxu0 %vm980_vm0, %v979_v0 }
  0x9c   : > { %934 = vmatprep.subr.bf16.mxu0 %v979_v0 }
  0xa2   : > { %925 = vmatmul.mubr.msk.bf16.vlgmr.msra.gmra.mrb[12].mxu0 %vm212_vm2, %v968_v29  ;;  %v731_v15 = vpop.permute.xlu0 %730  ;;  %v736_v19 = vpop.permute.xlu1 %735 }
  0xa3   : > { %935 = vmatpush3.bf16.msra.mxu0 %v681_v30  ;;  %936 = vmatprep.mubr.msk.bf16.mxu0 %vm980_vm0, %v979_v0 }
  0xaa   : > { %937 = vmatmul.mubr.msk.bf16.vlgmr.msra.gmra.mrb[16].mxu0 %vm212_vm2, %v970_v31 }
  0xe8   : > { %v306_v32 = vpop.f32.mrb[0].mxu1 }
  0xe9   : > { %v896_v33 = vpop.f32.mrb[1].mxu1 }
  0xea   : > { %v309_v34 = vpop.f32.mrb[2].mxu1 }
  0xeb   : > { %v897_v35 = vpop.f32.mrb[3].mxu1 }
 0x15d   : > { %v254_v36 = vpop.f32.mrb[0].mxu0  ;;  %v422_v37 = vpop.f32.mrb[4].mxu1 }
 0x15e   : > { %v307_v38 = vadd.f32 %v306_v32, %v254_v36  ;;  %v890_v39 = vpop.f32.mrb[1].mxu0  ;;  %v908_v40 = vpop.f32.mrb[5].mxu1 }
 0x15f   : > { %v257_v41 = vpop.f32.mrb[2].mxu0  ;;  %v425_v42 = vpop.f32.mrb[6].mxu1 }
 0x160   : > { %v310_v43 = vadd.f32 %v309_v34, %v257_v41  ;;  %v891_v44 = vpop.f32.mrb[3].mxu0  ;;  %v909_v45 = vpop.f32.mrb[7].mxu1 }
 0x165   : > { %v363_v46 = vpop.f32.mrb[4].mxu0  ;;  %v540_v47 = vpop.f32.mrb[8].mxu1 }
 0x166   : > { %v370_v48 = vadd.f32 %v363_v46, %v307_v38  ;;  %v902_v49 = vpop.f32.mrb[5].mxu0  ;;  %v920_v50 = vpop.f32.mrb[9].mxu1 }
 0x167   : > { %v366_v51 = vpop.f32.mrb[6].mxu0  ;;  %v543_v52 = vpop.f32.mrb[10].mxu1 }
 0x168   : > { %v371_v53 = vadd.f32 %v366_v51, %v310_v43  ;;  %v429_v54 = vadd.f32 %v422_v37, %v370_v48  ;;  %v903_v55 = vpop.f32.mrb[7].mxu0  ;;  %v921_v56 = vpop.f32.mrb[11].mxu1 }
 0x16a   : > { %v430_v57 = vadd.f32 %v425_v42, %v371_v53 }
 0x16d   : > { %v481_v58 = vpop.f32.mrb[8].mxu0  ;;  %v658_v59 = vpop.f32.mrb[12].mxu1 }
 0x16e   : > { %v488_v60 = vadd.f32 %v481_v58, %v429_v54  ;;  %v914_v61 = vpop.f32.mrb[9].mxu0  ;;  %v932_v62 = vpop.f32.mrb[13].mxu1 }
 0x16f   : > { %v484_v63 = vpop.f32.mrb[10].mxu0  ;;  %v661_v0 = vpop.f32.mrb[14].mxu1 }
 0x170   : > { %v489_v1 = vadd.f32 %v484_v63, %v430_v57  ;;  %v547_v2 = vadd.f32 %v540_v47, %v488_v60  ;;  %v915_v3 = vpop.f32.mrb[11].mxu0  ;;  %v933_v4 = vpop.f32.mrb[15].mxu1 }
 0x172   : > { %v548_v5 = vadd.f32 %v543_v52, %v489_v1 }
 0x175   : > { %v599_v6 = vpop.f32.mrb[12].mxu0 }
 0x176   : > { %v606_v7 = vadd.f32 %v599_v6, %v547_v2  ;;  %v926_v8 = vpop.f32.mrb[13].mxu0 }
 0x177   : > { %v602_v9 = vpop.f32.mrb[14].mxu0 }
 0x178   : > { %v607_v10 = vadd.f32 %v602_v9, %v548_v5  ;;  %v665_v11 = vadd.f32 %v658_v59, %v606_v7  ;;  %v927_v12 = vpop.f32.mrb[15].mxu0 }
 0x17a   : > { %v666_v13 = vadd.f32 %v661_v0, %v607_v10 }
 0x17d   : > { %v717_v14 = vpop.f32.mrb[16].mxu0 }
 0x17e   : > { %v724_v16 = vadd.f32 %v717_v14, %v665_v11  ;;  %v938_v17 = vpop.f32.mrb[17].mxu0 }
 0x17f   : > { %v720_v18 = vpop.f32.mrb[18].mxu0 }
 0x180   : > { %v725_v20 = vadd.f32 %v720_v18, %v666_v13  ;;  %v738_v21 = vadd.f32 %v731_v15, %v724_v16  ;;  %v939_v22 = vpop.f32.mrb[19].mxu0 }
 0x182   : > { %v740_v24 = vmax.f32 %v738_v21, 0.0  ;;  %v739_v25 = vadd.f32 %v736_v19, %v725_v20 }
 0x184   : > { %v749_v26 = vmul.f32 %v860_v23, %v740_v24  ;;  %v741_v27 = vmax.f32 %v739_v25, 0.0 }
 0x186   : > { %v866_v28 = vpack.c.bf16 %v749_v26, %v749_v26  ;;  %v750_v29 = vmul.f32 %v860_v23, %v741_v27 }
 0x188   : > { %760 = vst.msk [vmem:[%s194_s6] sm:$0xf] %vm759_vm3, %v866_v28  ;;  %v867_v30 = vpack.c.bf16 %v750_v29, %v750_v29 }
 0x18a   : > { %761 = vst.msk [vmem:[%s194_s6 + $0x4] sm:$0xf] %vm759_vm3, %v867_v30 }
 0x18b PF: > { %s14_s15 = sadd.s32 1, %s977_s15  }
 0x18c   : > { %p11_p4 = scmp.ge.s32.totalorder %s14_s15, 4  }
 0x18e   :  { %13 = sbr.rel (!%p11_p4) target bundleno = 1 (0x1), region = 74 }

// kernel: superpoint_forward.9
= control target key start
LH: loop header
LB: loop body
LE: loop exit
PB: predicated region body
PF: predicated region fallthrough
CT: control target
= control target key end

     0   :  { %s1004_s15 = smov 0   ;;  %s1100_s0 = inlined_call_operand.vmem [shape: bf16[2,16,122], index: 0, kind: input, shape index: {}]   ;;  %s1101_s1 = inlined_call_operand.vmem [shape: bf16[9,16,16], index: 1, kind: input, shape index: {}]   ;;  %s1102_s2 = inlined_call_operand.vmem [shape: f32[16,1], index: 2, kind: input, shape index: {}]   ;;  %s1103_s3 = inlined_call_operand.vmem [shape: f32[1,100], index: 3, kind: input, shape index: {}]   ;;  %s1104_s4 = inlined_call_operand.vmem [shape: bf16[2,16,100], index: 4, kind: output, shape index: {}]  }
   0x1 LB: > { %s804_s16 = sadd.s32 4294967295, %s966_s15   ;;  %p808_p0 = scmp.ge.s32.totalorder %s966_s15, 1  ;;  %s966_s15 = sphi %s1004_s15, %s14_s15  }
   0x2   : > { %p162_p1 = scmp.lt.s32.totalorder %s966_s15, 3 }
   0x4   : > { %p163_p2 = pnand %p808_p0, %p162_p1 }
   0x5   : > { %p188_p3 = scmp.lt.s32.totalorder (!%p163_p2), %s804_s16, 1  ;;  %v968_v0 = vmov (!%p163_p2), 0.0   ;;  %vm969_vm0 = vmmov (!%p163_p2), 0   ;;  %v952_v2 = vld [vmem:[%s1101_s1] sm:$0xff] (!%p163_p2)   ;;  %s970_s23 = smov (!%p163_p2), 127   ;;  %vm219_vm1 = vcmask (!%p163_p2), 130048  }
   0x6   : > { %166 = sbr.rel (%p163_p2) target bundleno = 392 (0x188), region = 36  ;;  %875 = vmatprep.subr.bf16.mxu0 (!%p163_p2), %v968_v0  ;;  %881 = vmatprep.subr.bf16.mxu1 (!%p163_p2), %v968_v0  ;;  %s971_s24 = smov (!%p163_p2), 118   ;;  %v713_v3 = vld [vmem:[%s1102_s2] sm:$0xff] (!%p163_p2)  ;;  %v714_v4 = vld [vmem:[%s1102_s2 + $0x8] sm:$0xff] (!%p163_p2)  ;;  %v978_v5 = vmov (!%p163_p2), 0   ;;  %v954_v9 = vld [vmem:[%s1101_s1 + $0x18] sm:$0xff] (!%p163_p2)  }
   0x7   : > { %877 = vmatprep.mubr.msk.bf16.mxu0 (!%p163_p2), %vm969_vm0, %v968_v0  ;;  %883 = vmatprep.mubr.msk.bf16.mxu1 (!%p163_p2), %vm969_vm0, %v968_v0  ;;  %s972_s25 = smov (!%p163_p2), 126   ;;  %s973_s26 = smov (!%p163_p2), 117   ;;  %v951_v7 = vld [vmem:[%s1101_s1 + $0x8] sm:$0xff] (!%p163_p2)   ;;  %v953_v11 = vld [vmem:[%s1101_s1 + $0x10] sm:$0xff] (!%p163_p2)   ;;  %v955_v16 = vld [vmem:[%s1101_s1 + $0x20] sm:$0xff] (!%p163_p2)   ;;  %vm746_vm2 = vcmask (!%p163_p2), 814080  }
   0x8   : > { %s974_s27 = smov (!%p163_p2), 116   ;;  %s975_s28 = smov (!%p163_p2), 108   ;;  %948 = vset.pattern.permute.xlu0 (!%p163_p2), %v978_v5  ;;  %949 = vset.pattern.permute.xlu1 (!%p163_p2), %v978_v5  ;;  %v956_v13 = vld [vmem:[%s1101_s1 + $0x28] sm:$0xff] (!%p163_p2)   ;;  %v958_v17 = vld [vmem:[%s1101_s1 + $0x38] sm:$0xff] (!%p163_p2)   ;;  %v957_v19 = vld [vmem:[%s1101_s1 + $0x30] sm:$0xff] (!%p163_p2)  }
   0x9   : > { %s976_s29 = smov (!%p163_p2), 107   ;;  %s977_s30 = smov (!%p163_p2), 106   ;;  %v959_v21 = vld [vmem:[%s1101_s1 + $0x40] sm:$0xff] (!%p163_p2)  }
   0xd   : > { %s1106_s16 = smov (!%p188_p3, %s804_s16), 1 }
   0xe   : > { %s853_s17 = sshll.u32 %s1106_s16, 3 }
   0xf   : > { %s192_s20 = scalar_lea.vmem %s1100_s0, %s853_s17  ;;  %s197_s6 = scalar_lea.vmem %s1104_s4, %s853_s17 }
  0x10   : > { %v950_v1 = vld [vmem:[%s192_s20] sm:$0xff]  }
  0x11   : > { %216 = vrot.lane.b32.xlu0 %v950_v1, %s970_s23  ;;  %379 = vrot.lane.b32.xlu1 %v950_v1, %s971_s24 }
  0x12   : > { %882 = vmatpush3.bf16.msra.mxu1 %v950_v1 }
  0x13   : > { %893 = vmatprep.subr.bf16.mxu1 %v968_v0 }
  0x15   : > { %322 = vrot.lane.b32.xlu0 %v950_v1, %s972_s25  ;;  %436 = vrot.lane.b32.xlu1 %v950_v1, %s973_s26 }
  0x16   : > { %884 = vmatmul.mubr.msk.bf16.vlgmr.msra.gmra.mrb[0].mxu1 %vm219_vm1, %v952_v2 }
  0x17   : > { %895 = vmatprep.mubr.msk.bf16.mxu1 %vm969_vm0, %v968_v0 }
  0x19   : > { %493 = vrot.lane.b32.xlu0 %v950_v1, %s974_s27  ;;  %550 = vrot.lane.b32.xlu1 %v950_v1, %s975_s28 }
  0x1d   : > { %607 = vrot.lane.b32.xlu0 %v950_v1, %s976_s29  ;;  %664 = vrot.lane.b32.xlu1 %v950_v1, %s977_s30 }
  0x21   : > { %717 = vperm.xlu0 %948, %v713_v3   ;;  %722 = vperm.xlu1 %949, %v714_v4  }
  0x83   : > { %v217_v6 = vpop.permute.xlu0 %216  ;;  %v380_v8 = vpop.permute.xlu1 %379 }
  0x84   : > { %876 = vmatpush3.bf16.msra.mxu0 %v217_v6  ;;  %894 = vmatpush3.bf16.msra.mxu1 %v380_v8 }
  0x85   : > { %887 = vmatprep.subr.bf16.mxu0 %v968_v0  ;;  %905 = vmatprep.subr.bf16.mxu1 %v968_v0 }
  0x87   : > { %878 = vmatmul.mubr.msk.bf16.vlgmr.msra.gmra.mrb[0].mxu0 %vm219_vm1, %v951_v7  ;;  %v323_v10 = vpop.permute.xlu0 %322  ;;  %896 = vmatmul.mubr.msk.bf16.vlgmr.msra.gmra.mrb[4].mxu1 %vm219_vm1, %v954_v9  ;;  %v437_v14 = vpop.permute.xlu1 %436 }
  0x88   : > { %888 = vmatpush3.bf16.msra.mxu0 %v323_v10  ;;  %889 = vmatprep.mubr.msk.bf16.mxu0 %vm969_vm0, %v968_v0 }
  0x89   : > { %899 = vmatprep.subr.bf16.mxu0 %v968_v0  ;;  %907 = vmatprep.mubr.msk.bf16.mxu1 %vm969_vm0, %v968_v0 }
  0x8b   : > { %v494_v12 = vpop.permute.xlu0 %493  ;;  %v551_v18 = vpop.permute.xlu1 %550 }
  0x8c   : > { %906 = vmatpush3.bf16.msra.mxu1 %v494_v12 }
  0x8d   : > { %917 = vmatprep.subr.bf16.mxu1 %v968_v0 }
  0x8f   : > { %890 = vmatmul.mubr.msk.bf16.vlgmr.msra.gmra.mrb[4].mxu0 %vm219_vm1, %v953_v11  ;;  %908 = vmatmul.mubr.msk.bf16.vlgmr.msra.gmra.mrb[8].mxu1 %vm219_vm1, %v956_v13  ;;  %v608_v15 = vpop.permute.xlu0 %607  ;;  %v665_v20 = vpop.permute.xlu1 %664  ;;  %v848_v13 = vld [vmem:[%s1103_s3] ss:$0 sm:$0xff] }
  0x90   : > { %900 = vmatpush3.bf16.msra.mxu0 %v437_v14  ;;  %901 = vmatprep.mubr.msk.bf16.mxu0 %vm969_vm0, %v968_v0 }
  0x91   : > { %911 = vmatprep.subr.bf16.mxu0 %v968_v0  ;;  %918 = vmatpush3.bf16.msra.mxu1 %v608_v15 }
  0x92   : > { %919 = vmatprep.mubr.msk.bf16.mxu1 %vm969_vm0, %v968_v0 }
  0x97   : > { %902 = vmatmul.mubr.msk.bf16.vlgmr.msra.gmra.mrb[8].mxu0 %vm219_vm1, %v955_v16  ;;  %920 = vmatmul.mubr.msk.bf16.vlgmr.msra.gmra.mrb[12].mxu1 %vm219_vm1, %v958_v17 }
  0x98   : > { %912 = vmatpush3.bf16.msra.mxu0 %v551_v18  ;;  %913 = vmatprep.mubr.msk.bf16.mxu0 %vm969_vm0, %v968_v0 }
  0x99   : > { %923 = vmatprep.subr.bf16.mxu0 %v968_v0 }
  0x9f   : > { %914 = vmatmul.mubr.msk.bf16.vlgmr.msra.gmra.mrb[12].mxu0 %vm219_vm1, %v957_v19 }
  0xa0   : > { %924 = vmatpush3.bf16.msra.mxu0 %v665_v20  ;;  %925 = vmatprep.mubr.msk.bf16.mxu0 %vm969_vm0, %v968_v0  ;;  %v718_v5 = vpop.permute.xlu0 %717  ;;  %v723_v9 = vpop.permute.xlu1 %722 }
  0xa7   : > { %926 = vmatmul.mubr.msk.bf16.vlgmr.msra.gmra.mrb[16].mxu0 %vm219_vm1, %v959_v21 }
  0xe9   : > { %v307_v22 = vpop.f32.mrb[0].mxu1 }
  0xea   : > { %v885_v23 = vpop.f32.mrb[1].mxu1 }
  0xeb   : > { %v310_v24 = vpop.f32.mrb[2].mxu1 }
  0xec   : > { %v886_v25 = vpop.f32.mrb[3].mxu1 }
 0x15a   : > { %v257_v26 = vpop.f32.mrb[0].mxu0  ;;  %v419_v27 = vpop.f32.mrb[4].mxu1 }
 0x15b   : > { %v308_v28 = vadd.f32 %v307_v22, %v257_v26  ;;  %v879_v29 = vpop.f32.mrb[1].mxu0  ;;  %v897_v30 = vpop.f32.mrb[5].mxu1 }
 0x15c   : > { %v260_v31 = vpop.f32.mrb[2].mxu0  ;;  %v422_v32 = vpop.f32.mrb[6].mxu1 }
 0x15d   : > { %v311_v33 = vadd.f32 %v310_v24, %v260_v31  ;;  %v880_v34 = vpop.f32.mrb[3].mxu0  ;;  %v898_v35 = vpop.f32.mrb[7].mxu1 }
 0x162   : > { %v362_v36 = vpop.f32.mrb[4].mxu0  ;;  %v533_v37 = vpop.f32.mrb[8].mxu1 }
 0x163   : > { %v369_v38 = vadd.f32 %v362_v36, %v308_v28  ;;  %v891_v39 = vpop.f32.mrb[5].mxu0  ;;  %v909_v40 = vpop.f32.mrb[9].mxu1 }
 0x164   : > { %v365_v41 = vpop.f32.mrb[6].mxu0  ;;  %v536_v42 = vpop.f32.mrb[10].mxu1 }
 0x165   : > { %v370_v43 = vadd.f32 %v365_v41, %v311_v33  ;;  %v426_v44 = vadd.f32 %v419_v27, %v369_v38  ;;  %v892_v45 = vpop.f32.mrb[7].mxu0  ;;  %v910_v46 = vpop.f32.mrb[11].mxu1 }
 0x167   : > { %v427_v47 = vadd.f32 %v422_v32, %v370_v43 }
 0x16a   : > { %v476_v48 = vpop.f32.mrb[8].mxu0  ;;  %v647_v49 = vpop.f32.mrb[12].mxu1 }
 0x16b   : > { %v483_v50 = vadd.f32 %v476_v48, %v426_v44  ;;  %v903_v51 = vpop.f32.mrb[9].mxu0  ;;  %v921_v52 = vpop.f32.mrb[13].mxu1 }
 0x16c   : > { %v479_v53 = vpop.f32.mrb[10].mxu0  ;;  %v650_v54 = vpop.f32.mrb[14].mxu1 }
 0x16d   : > { %v484_v55 = vadd.f32 %v479_v53, %v427_v47  ;;  %v540_v56 = vadd.f32 %v533_v37, %v483_v50  ;;  %v904_v57 = vpop.f32.mrb[11].mxu0  ;;  %v922_v58 = vpop.f32.mrb[15].mxu1 }
 0x16f   : > { %v541_v59 = vadd.f32 %v536_v42, %v484_v55 }
 0x172   : > { %v590_v60 = vpop.f32.mrb[12].mxu0 }
 0x173   : > { %v597_v61 = vadd.f32 %v590_v60, %v540_v56  ;;  %v915_v62 = vpop.f32.mrb[13].mxu0 }
 0x174   : > { %v593_v63 = vpop.f32.mrb[14].mxu0 }
 0x175   : > { %v598_v0 = vadd.f32 %v593_v63, %v541_v59  ;;  %v654_v1 = vadd.f32 %v647_v49, %v597_v61  ;;  %v916_v2 = vpop.f32.mrb[15].mxu0 }
 0x177   : > { %v655_v3 = vadd.f32 %v650_v54, %v598_v0 }
 0x17a   : > { %v704_v4 = vpop.f32.mrb[16].mxu0 }
 0x17b   : > { %v711_v6 = vadd.f32 %v704_v4, %v654_v1  ;;  %v927_v7 = vpop.f32.mrb[17].mxu0 }
 0x17c   : > { %v707_v8 = vpop.f32.mrb[18].mxu0 }
 0x17d   : > { %v712_v10 = vadd.f32 %v707_v8, %v655_v3  ;;  %v725_v11 = vadd.f32 %v718_v5, %v711_v6  ;;  %v928_v12 = vpop.f32.mrb[19].mxu0 }
 0x17f   : > { %v727_v14 = vmax.f32 %v725_v11, 0.0  ;;  %v726_v15 = vadd.f32 %v723_v9, %v712_v10 }
 0x181   : > { %v736_v16 = vmul.f32 %v848_v13, %v727_v14  ;;  %v728_v17 = vmax.f32 %v726_v15, 0.0 }
 0x183   : > { %v855_v18 = vpack.c.bf16 %v736_v16, %v736_v16  ;;  %v737_v19 = vmul.f32 %v848_v13, %v728_v17 }
 0x185   : > { %747 = vst.msk [vmem:[%s197_s6] sm:$0xf] %vm746_vm2, %v855_v18  ;;  %v856_v20 = vpack.c.bf16 %v737_v19, %v737_v19 }
 0x187   : > { %748 = vst.msk [vmem:[%s197_s6 + $0x4] sm:$0xf] %vm746_vm2, %v856_v20 }
 0x188 PF: > { %s14_s15 = sadd.s32 1, %s966_s15  }
 0x189   : > { %p11_p4 = scmp.ge.s32.totalorder %s14_s15, 4  }
 0x18b   :  { %13 = sbr.rel (!%p11_p4) target bundleno = 1 (0x1), region = 74 }

// kernel: superpoint_forward.10
= control target key start
LH: loop header
LB: loop body
LE: loop exit
PB: predicated region body
PF: predicated region fallthrough
CT: control target
= control target key end

     0   :  { %s2243_s24 = smov 0   ;;  %s2503_s0 = inlined_call_operand.vmem [shape: bf16[2,16,50], index: 0, kind: input, shape index: {}]   ;;  %s2504_s1 = inlined_call_operand.vmem [shape: bf16[9,64,16], index: 1, kind: input, shape index: {}]   ;;  %s2505_s2 = inlined_call_operand.vmem [shape: f32[64,1], index: 2, kind: input, shape index: {}]   ;;  %s2506_s3 = inlined_call_operand.vmem [shape: bf16[40,64], index: 3, kind: input, shape index: {}]   ;;  %s2507_s4 = inlined_call_operand.vmem [shape: f32[40,1], index: 4, kind: input, shape index: {}]   ;;  %s2508_s5 = inlined_call_operand.vmem [shape: f32[2,17,36], index: 5, kind: output, shape index: {0}]   ;;  %s2509_s6 = inlined_call_operand.vmem [shape: f32[2,16,36], index: 6, kind: output, shape index: {1}]   ;;  %s2510_s7 = inlined_call_operand.vmem [shape: f32[2,16,36], index: 7, kind: output, shape index: {2}]  }
   0x1 LB: > { %s1728_s25 = sadd.s32 4294967295, %s2190_s24   ;;  %p1732_p0 = scmp.ge.s32.totalorder %s2190_s24, 1  ;;  %s2190_s24 = sphi %s2243_s24, %s18_s24  }
   0x2   : > { %p242_p1 = scmp.lt.s32.totalorder %s2190_s24, 3 }
   0x4   : > { %p243_p2 = pnand %p1732_p0, %p242_p1 }
   0x5   : > { %p284_p3 = scmp.lt.s32.totalorder (!%p243_p2), %s1728_s25, 1  ;;  %vm352_vm0 = vcmask (!%p243_p2), 130048   ;;  %v2137_v0 = vld [vmem:[%s2504_s1 + $0x80] sm:$0xff] (!%p243_p2)   ;;  %s2192_s11 = smov (!%p243_p2), 121   ;;  %v1348_v3 = vld [vmem:[%s2505_s2 + $0x8] sm:$0xff] (!%p243_p2)  ;;  %v2200_v5 = vmov (!%p243_p2), 0  }
   0x6   : > { %246 = sbr.rel (%p243_p2) target bundleno = 723 (0x2d3), region = 40  ;;  %1982 = vmatprep.mubr.msk.bf16.mxu0 (!%p243_p2), %vm352_vm0, %v2137_v0  ;;  %v2139_v1 = vld [vmem:[%s2504_s1 + $0x20] sm:$0xff] (!%p243_p2)   ;;  %s2193_s12 = smov (!%p243_p2), 120   ;;  %2135 = vset.pattern.permute.xlu1 (!%p243_p2), %v2200_v5  ;;  %v1349_v6 = vld [vmem:[%s2505_s2 + $0x10] sm:$0xff] (!%p243_p2)  ;;  %v1350_v7 = vld [vmem:[%s2505_s2 + $0x18] sm:$0xff] (!%p243_p2)  ;;  %v2201_v59 = vmov (!%p243_p2), 0.0  }
   0x7   : > { %1942 = vmatprep.mubr.msk.bf16.mxu1 (!%p243_p2), %vm352_vm0, %v2139_v1  ;;  %s2194_s13 = smov (!%p243_p2), 127   ;;  %s2195_s14 = smov (!%p243_p2), 116   ;;  %v1347_v4 = vld [vmem:[%s2505_s2] sm:$0xff] (!%p243_p2)  ;;  %2134 = vset.pattern.permute.xlu0 (!%p243_p2), %v2200_v5  ;;  %v1352_v9 = vld [vmem:[%s2505_s2 + $0x28] sm:$0xff] (!%p243_p2)  ;;  %v1353_v10 = vld [vmem:[%s2505_s2 + $0x30] sm:$0xff] (!%p243_p2)  ;;  %vm2202_vm1 = vmmov (!%p243_p2), 0  }
   0x8   : > { %s2196_s15 = smov (!%p243_p2), 115   ;;  %s2197_s16 = smov (!%p243_p2), 126   ;;  %v1351_v8 = vld [vmem:[%s2505_s2 + $0x20] sm:$0xff] (!%p243_p2)  ;;  %v1354_v11 = vld [vmem:[%s2505_s2 + $0x38] sm:$0xff] (!%p243_p2)  ;;  %v1421_v13 = vld [vmem:[%s2507_s4 + $0x8] sm:$0xff] (!%p243_p2)  ;;  %vm1463_vm2 = vcmask (!%p243_p2), 523264  }
   0x9   : > { %s2198_s17 = smov (!%p243_p2), 114   ;;  %s2199_s18 = smov (!%p243_p2), 122   ;;  %v1420_v12 = vld [vmem:[%s2507_s4] sm:$0xff] (!%p243_p2)  ;;  %v1422_v14 = vld [vmem:[%s2507_s4 + $0x10] sm:$0xff] (!%p243_p2)  ;;  %v1423_v15 = vld [vmem:[%s2507_s4 + $0x18] sm:$0xff] (!%p243_p2)  ;;  %vm1545_vm3 = vcmask (!%p243_p2), 293888  }
   0xa   : > { %v1424_v16 = vld [vmem:[%s2507_s4 + $0x20] sm:$0xff] (!%p243_p2)  ;;  %v2138_v19 = vld [vmem:[%s2504_s1 + $0x88] sm:$0xff] (!%p243_p2)   ;;  %v2141_v20 = vld [vmem:[%s2504_s1 + $0x90] sm:$0xff] (!%p243_p2)   ;;  %vm1601_vm5 = vcmask (!%p243_p2), 286720  }
   0xb   : > { %v2140_v23 = vld [vmem:[%s2504_s1 + $0x28] sm:$0xff] (!%p243_p2)   ;;  %v2143_v24 = vld [vmem:[%s2504_s1 + $0x30] sm:$0xff] (!%p243_p2)   ;;  %v2142_v26 = vld [vmem:[%s2504_s1 + $0x98] sm:$0xff] (!%p243_p2)  }
   0xc   : > { %v2145_v27 = vld [vmem:[%s2504_s1 + $0xa0] sm:$0xff] (!%p243_p2)   ;;  %v2144_v28 = vld [vmem:[%s2504_s1 + $0x38] sm:$0xff] (!%p243_p2)   ;;  %v2146_v30 = vld [vmem:[%s2504_s1 + $0xa8] sm:$0xff] (!%p243_p2)  }
   0xd   : > { %s2512_s25 = smov (!%p284_p3, %s1728_s25), 1  ;;  %v2147_v29 = vld [vmem:[%s2504_s1] sm:$0xff]   ;;  %v2149_v31 = vld [vmem:[%s2504_s1 + $0xb0] sm:$0xff]   ;;  %v2148_v33 = vld [vmem:[%s2504_s1 + $0x8] sm:$0xff]  }
   0xe   : > { %s1885_s30 = sshll.u32 %s2512_s25, 3  ;;  %v2151_v34 = vld [vmem:[%s2504_s1 + $0x10] sm:$0xff]   ;;  %v2150_v36 = vld [vmem:[%s2504_s1 + $0xb8] sm:$0xff]   ;;  %v2153_v37 = vld [vmem:[%s2504_s1 + $0xc0] sm:$0xff]  }
   0xf   : > { %s288_s10 = scalar_lea.vmem %s2503_s0, %s1885_s30  ;;  %v2152_v38 = vld [vmem:[%s2504_s1 + $0x18] sm:$0xff]   ;;  %v2155_v39 = vld [vmem:[%s2504_s1 + $0x40] sm:$0xff]   ;;  %v2154_v40 = vld [vmem:[%s2504_s1 + $0xc8] sm:$0xff]  }
  0x10   : > { %v2265_v2 = vld [vmem:[%s288_s10] sm:$0xff]   ;;  %v2157_v41 = vld [vmem:[%s2504_s1 + $0xd0] sm:$0xff]   ;;  %v2156_v43 = vld [vmem:[%s2504_s1 + $0x48] sm:$0xff]  }
  0x11   : > { %791 = vrot.lane.b32.xlu0 %v2265_v2, %s2192_s11  ;;  %908 = vrot.lane.b32.xlu1 %v2265_v2, %s2193_s12  ;;  %v2159_v44 = vld [vmem:[%s2504_s1 + $0x50] sm:$0xff]   ;;  %v2158_v45 = vld [vmem:[%s2504_s1 + $0xd8] sm:$0xff]  }
  0x12   : > { %v2161_v46 = vld [vmem:[%s2504_s1 + $0xe0] sm:$0xff]   ;;  %v2160_v47 = vld [vmem:[%s2504_s1 + $0x58] sm:$0xff]   ;;  %v2162_v49 = vld [vmem:[%s2504_s1 + $0xe8] sm:$0xff]  }
  0x13   : > { %v2163_v48 = vld [vmem:[%s2504_s1 + $0x60] sm:$0xff]   ;;  %v2165_v50 = vld [vmem:[%s2504_s1 + $0xf0] sm:$0xff]   ;;  %v2164_v51 = vld [vmem:[%s2504_s1 + $0x68] sm:$0xff]  }
  0x14   : > { %v2167_v52 = vld [vmem:[%s2504_s1 + $0x70] sm:$0xff]   ;;  %v2166_v53 = vld [vmem:[%s2504_s1 + $0xf8] sm:$0xff]   ;;  %v2169_v54 = vld [vmem:[%s2504_s1 + $0x100] sm:$0xff]  }
  0x15   : > { %349 = vrot.lane.b32.xlu0 %v2265_v2, %s2194_s13  ;;  %1025 = vrot.lane.b32.xlu1 %v2265_v2, %s2195_s14  ;;  %v2168_v55 = vld [vmem:[%s2504_s1 + $0x78] sm:$0xff]   ;;  %v2170_v56 = vld [vmem:[%s2504_s1 + $0x108] sm:$0xff]   ;;  %s2114_s14 = smul.u32 24, %s2512_s25 }
  0x16   : > { %v2171_v57 = vld [vmem:[%s2504_s1 + $0x110] sm:$0xff]   ;;  %v2172_v58 = vld [vmem:[%s2504_s1 + $0x118] sm:$0xff]  }
  0x19   : > { %1142 = vrot.lane.b32.xlu1 %v2265_v2, %s2196_s15  ;;  %557 = vrot.lane.b32.xlu0 %v2265_v2, %s2197_s16 }
  0x1d   : > { %1259 = vrot.lane.b32.xlu1 %v2265_v2, %s2198_s17  ;;  %674 = vrot.lane.b32.xlu0 %v2265_v2, %s2199_s18  ;;  %s293_s17 = scalar_lea.vmem %s2508_s5, %s2114_s14  ;;  %s1886_s18 = sshll.u32 %s2512_s25, 4 }
  0x1e   : > { %s298_s21 = scalar_lea.vmem %s2509_s6, %s1886_s18  ;;  %s303_s26 = scalar_lea.vmem %s2510_s7, %s1886_s18 }
  0x21   : > { %1362 = vperm.xlu1 %2135, %v1348_v3   ;;  %1357 = vperm.xlu0 %2134, %v1347_v4  }
  0x25   : > { %1367 = vperm.xlu1 %2135, %v1349_v6   ;;  %1372 = vperm.xlu0 %2134, %v1350_v7  }
  0x29   : > { %1377 = vperm.xlu1 %2135, %v1351_v8   ;;  %1382 = vperm.xlu0 %2134, %v1352_v9  }
  0x2d   : > { %1387 = vperm.xlu1 %2135, %v1353_v10   ;;  %1392 = vperm.xlu0 %2134, %v1354_v11  }
  0x31   : > { %1427 = vperm.xlu1 %2135, %v1420_v12   ;;  %1432 = vperm.xlu0 %2134, %v1421_v13  }
  0x35   : > { %1437 = vperm.xlu1 %2135, %v1422_v14   ;;  %1442 = vperm.xlu0 %2134, %v1423_v15  }
  0x39   : > { %1447 = vperm.xlu1 %2135, %v1424_v16  }
  0x83   : > { %v792_v17 = vpop.permute.xlu0 %791  ;;  %v909_v18 = vpop.permute.xlu1 %908 }
  0x84   : > { %1980 = vmatprep.subr.bf16.mxu0 %v792_v17 }
  0x85   : > { %1981 = vmatpush3.bf16.msra.mxu0 %v792_v17 }
  0x86   : > { %1990 = vmatprep.subr.bf16.mxu0 %v909_v18 }
  0x87   : > { %v350_v21 = vpop.permute.xlu0 %349  ;;  %v1026_v22 = vpop.permute.xlu1 %1025 }
  0x88   : > { %1940 = vmatprep.subr.bf16.mxu1 %v350_v21  ;;  %1983 = vmatmul.mubr.msk.bf16.vlgmr.msra.gmra.mrb[0].mxu0 %vm352_vm0, %v2138_v19 }
  0x89   : > { %1941 = vmatpush3.bf16.msra.mxu1 %v350_v21  ;;  %1991 = vmatpush3.bf16.msra.mxu0 %v909_v18 }
  0x8a   : > { %1986 = vmatprep.mubr.msk.bf16.mxu0 %vm352_vm0, %v2141_v20  ;;  %2000 = vmatprep.subr.bf16.mxu0 %v1026_v22 }
  0x8b   : > { %1950 = vmatprep.subr.bf16.mxu1 %v2265_v2  ;;  %v558_v25 = vpop.permute.xlu0 %557  ;;  %v1143_v32 = vpop.permute.xlu1 %1142 }
  0x8c   : > { %1943 = vmatmul.mubr.msk.bf16.vlgmr.msra.gmra.mrb[0].mxu1 %vm352_vm0, %v2140_v23 }
  0x8d   : > { %1946 = vmatprep.mubr.msk.bf16.mxu1 %vm352_vm0, %v2143_v24  ;;  %1951 = vmatpush3.bf16.msra.mxu1 %v2265_v2 }
  0x8e   : > { %1960 = vmatprep.subr.bf16.mxu1 %v558_v25 }
  0x8f   : > { %v675_v35 = vpop.permute.xlu0 %674  ;;  %v1260_v42 = vpop.permute.xlu1 %1259 }
  0x90   : > { %1987 = vmatmul.mubr.msk.bf16.gmra.mrb[4].mxu0 %vm352_vm0, %v2142_v26 }
  0x91   : > { %1992 = vmatprep.mubr.msk.bf16.mxu0 %vm352_vm0, %v2145_v27 }
  0x94   : > { %1947 = vmatmul.mubr.msk.bf16.gmra.mrb[4].mxu1 %vm352_vm0, %v2144_v28 }
  0x95   : > { %1952 = vmatprep.mubr.msk.bf16.mxu1 %vm352_vm0, %v2147_v29 }
  0x98   : > { %1993 = vmatmul.mubr.msk.bf16.vlgmr.msra.gmra.mrb[0].mxu0 %vm352_vm0, %v2146_v30 }
  0x99   : > { %2001 = vmatpush3.bf16.msra.mxu0 %v1026_v22  ;;  %1996 = vmatprep.mubr.msk.bf16.mxu0 %vm352_vm0, %v2149_v31 }
  0x9a   : > { %2010 = vmatprep.subr.bf16.mxu0 %v1143_v32 }
  0x9c   : > { %1953 = vmatmul.mubr.msk.bf16.vlgmr.msra.gmra.mrb[0].mxu1 %vm352_vm0, %v2148_v33 }
  0x9d   : > { %1956 = vmatprep.mubr.msk.bf16.mxu1 %vm352_vm0, %v2151_v34  ;;  %1961 = vmatpush3.bf16.msra.mxu1 %v558_v25 }
  0x9e   : > { %1970 = vmatprep.subr.bf16.mxu1 %v675_v35 }
  0xa0   : > { %1997 = vmatmul.mubr.msk.bf16.gmra.mrb[4].mxu0 %vm352_vm0, %v2150_v36  ;;  %v1363_v0 = vpop.permute.xlu1 %1362  ;;  %v1358_v1 = vpop.permute.xlu0 %1357 }
  0xa1   : > { %2002 = vmatprep.mubr.msk.bf16.mxu0 %vm352_vm0, %v2153_v37 }
  0xa4   : > { %1957 = vmatmul.mubr.msk.bf16.gmra.mrb[4].mxu1 %vm352_vm0, %v2152_v38  ;;  %v1368_v4 = vpop.permute.xlu1 %1367  ;;  %v1373_v7 = vpop.permute.xlu0 %1372 }
  0xa5   : > { %1962 = vmatprep.mubr.msk.bf16.mxu1 %vm352_vm0, %v2155_v39 }
  0xa8   : > { %2003 = vmatmul.mubr.msk.bf16.vlgmr.msra.gmra.mrb[0].mxu0 %vm352_vm0, %v2154_v40  ;;  %v1378_v16 = vpop.permute.xlu1 %1377  ;;  %v1383_v20 = vpop.permute.xlu0 %1382 }
  0xa9   : > { %2011 = vmatpush3.bf16.msra.mxu0 %v1143_v32  ;;  %2006 = vmatprep.mubr.msk.bf16.mxu0 %vm352_vm0, %v2157_v41 }
  0xaa   : > { %2020 = vmatprep.subr.bf16.mxu0 %v1260_v42 }
  0xac   : > { %1963 = vmatmul.mubr.msk.bf16.vlgmr.msra.gmra.mrb[0].mxu1 %vm352_vm0, %v2156_v43  ;;  %v1388_v30 = vpop.permute.xlu1 %1387  ;;  %v1393_v37 = vpop.permute.xlu0 %1392 }
  0xad   : > { %1966 = vmatprep.mubr.msk.bf16.mxu1 %vm352_vm0, %v2159_v44  ;;  %1971 = vmatpush3.bf16.msra.mxu1 %v675_v35 }
  0xae   : > { %2030 = vmatprep.subr.bf16.mxu1 %v2201_v59 }
  0xb0   : > { %2007 = vmatmul.mubr.msk.bf16.gmra.mrb[4].mxu0 %vm352_vm0, %v2158_v45 }
  0xb1   : > { %2012 = vmatprep.mubr.msk.bf16.mxu0 %vm352_vm0, %v2161_v46 }
  0xb4   : > { %1967 = vmatmul.mubr.msk.bf16.gmra.mrb[4].mxu1 %vm352_vm0, %v2160_v47 }
  0xb5   : > { %1972 = vmatprep.mubr.msk.bf16.mxu1 %vm352_vm0, %v2163_v48  ;;  %v2173_v48 = vld [vmem:[%s2506_s3] sm:$0xff]  }
  0xb8   : > { %2013 = vmatmul.mubr.msk.bf16.vlgmr.msra.gmra.mrb[0].mxu0 %vm352_vm0, %v2162_v49  ;;  %v2174_v49 = vld [vmem:[%s2506_s3 + $0x8] sm:$0xff]  }
  0xb9   : > { %2021 = vmatpush3.bf16.msra.mxu0 %v1260_v42  ;;  %2016 = vmatprep.mubr.msk.bf16.mxu0 %vm352_vm0, %v2165_v50  ;;  %v2175_v50 = vld [vmem:[%s2506_s3 + $0x10] ss:$0 sps:$4 sm:$0xff]  }
  0xbc   : > { %1973 = vmatmul.mubr.msk.bf16.vlgmr.msra.gmra.mrb[0].mxu1 %vm352_vm0, %v2164_v51  ;;  %v1529_v51 = vlaneseq }
  0xbd   : > { %1976 = vmatprep.mubr.msk.bf16.mxu1 %vm352_vm0, %v2167_v52  ;;  %v1428_v52 = vpop.permute.xlu1 %1427 }
  0xc0   : > { %2017 = vmatmul.mubr.msk.bf16.gmra.mrb[4].mxu0 %vm352_vm0, %v2166_v53 }
  0xc1   : > { %2022 = vmatprep.mubr.msk.bf16.mxu0 %vm352_vm0, %v2169_v54  ;;  %v1530_v54 = vshrl.u32 %v1529_v51, 7 }
  0xc4   : > { %1977 = vmatmul.mubr.msk.bf16.gmra.mrb[4].mxu1 %vm352_vm0, %v2168_v55 }
  0xc5   : > { %2038 = vmatprep.mubr.msk.bf16.mxu1 %vm2202_vm1, %v2201_v59 }
  0xc8   : > { %2023 = vmatmul.mubr.msk.bf16.vlgmr.msra.gmra.mrb[0].mxu0 %vm352_vm0, %v2170_v56 }
  0xc9   : > { %2026 = vmatprep.mubr.msk.bf16.mxu0 %vm352_vm0, %v2171_v57  ;;  %v1433_v57 = vpop.permute.xlu0 %1432 }
  0xd0   : > { %2027 = vmatmul.mubr.msk.bf16.gmra.mrb[4].mxu0 %vm352_vm0, %v2172_v58 }
 0x18f   : > { %v1974_v60 = vpop.f32.mrb[0].mxu1 }
 0x190   : > { %v723_v61 = vpop.f32.mrb[1].mxu1 }
 0x191   : > { %v1975_v62 = vpop.f32.mrb[2].mxu1 }
 0x192   : > { %v726_v63 = vpop.f32.mrb[3].mxu1 }
 0x197   : > { %v1978_v2 = vpop.f32.mrb[4].mxu1 }
 0x198   : > { %v739_v3 = vpop.f32.mrb[5].mxu1 }
 0x199   : > { %v1979_v5 = vpop.f32.mrb[6].mxu1 }
 0x19a   : > { %v742_v6 = vpop.f32.mrb[7].mxu1 }
 0x19b   : > { %v2024_v8 = vpop.f32.mrb[0].mxu0 }
 0x19c   : > { %v2050_v9 = vadd.f32 %v2024_v8, %v1974_v60  ;;  %v1308_v10 = vpop.f32.mrb[1].mxu0 }
 0x19d   : > { %v2051_v11 = vadd.f32 %v1308_v10, %v723_v61  ;;  %v2025_v12 = vpop.f32.mrb[2].mxu0  ;;  %v1532_v61 = vadd.s32 16, %v1530_v54 }
 0x19e   : > { %v1397_v13 = vadd.f32 %v2050_v9, %v1368_v4  ;;  %v2052_v14 = vadd.f32 %v2025_v12, %v1975_v62  ;;  %v1311_v15 = vpop.f32.mrb[3].mxu0 }
 0x19f   : > { %v1395_v17 = vadd.f32 %v2051_v11, %v1358_v1  ;;  %v2053_v18 = vadd.f32 %v1311_v15, %v726_v63  ;;  %v1438_v1 = vpop.permute.xlu1 %1437  ;;  %vm1537_vm4 = vcmp.lt.s32.totalorder %v1532_v61, 17 }
 0x1a0   : > { %v1398_v19 = vadd.f32 %v2052_v14, %v1373_v7  ;;  %v1405_v22 = vmax.f32 %v1397_v13, 0.0 }
 0x1a1   : > { %v1396_v21 = vadd.f32 %v2053_v18, %v1363_v0  ;;  %v1403_v24 = vmax.f32 %v1395_v17, 0.0 }
 0x1a2   : > { %v1406_v23 = vmax.f32 %v1398_v19, 0.0 }
 0x1a3   : > { %v1404_v25 = vmax.f32 %v1396_v21, 0.0  ;;  %v2028_v26 = vpop.f32.mrb[4].mxu0  ;;  %v1448_v13 = vpop.permute.xlu1 %1447 }
 0x1a4   : > { %v1412_v27 = vpack.c.bf16 %v1406_v23, %v1405_v22  ;;  %v2054_v28 = vadd.f32 %v2028_v26, %v1978_v2  ;;  %v1324_v29 = vpop.f32.mrb[5].mxu0 }
 0x1a5   : > { %v1411_v31 = vpack.c.bf16 %v1404_v25, %v1403_v24  ;;  %v2055_v32 = vadd.f32 %v1324_v29, %v739_v3  ;;  %v2029_v33 = vpop.f32.mrb[6].mxu0 }
 0x1a6   : > { %v1401_v34 = vadd.f32 %v2054_v28, %v1388_v30  ;;  %v2056_v35 = vadd.f32 %v2029_v33, %v1979_v5  ;;  %v1327_v36 = vpop.f32.mrb[7].mxu0  ;;  %v1443_v5 = vpop.permute.xlu0 %1442 }
 0x1a7   : > { %v1399_v38 = vadd.f32 %v2055_v32, %v1378_v16  ;;  %v2057_v39 = vadd.f32 %v1327_v36, %v742_v6  ;;  %2031 = vmatpush3.bf16.msra.mxu1 %v1411_v31 }
 0x1a8   : > { %v1402_v40 = vadd.f32 %v2056_v35, %v1393_v37  ;;  %2032 = vmatprep.subr.bf16.mxu1 %v2201_v59  ;;  %v1409_v42 = vmax.f32 %v1401_v34, 0.0 }
 0x1a9   : > { %v1400_v41 = vadd.f32 %v2057_v39, %v1383_v20  ;;  %v1407_v44 = vmax.f32 %v1399_v38, 0.0 }
 0x1aa   : > { %v1410_v43 = vmax.f32 %v1402_v40, 0.0 }
 0x1ab   : > { %v1408_v45 = vmax.f32 %v1400_v41, 0.0  ;;  %2033 = vmatpush3.bf16.msra.mxu1 %v1412_v27 }
 0x1ac   : > { %v1414_v46 = vpack.c.bf16 %v1410_v43, %v1409_v42  ;;  %2034 = vmatprep.subr.bf16.mxu1 %v2201_v59 }
 0x1ad   : > { %v1413_v47 = vpack.c.bf16 %v1408_v45, %v1407_v44 }
 0x1af   : > { %2035 = vmatpush3.bf16.msra.mxu1 %v1413_v47 }
 0x1b0   : > { %2036 = vmatprep.subr.bf16.mxu1 %v2201_v59 }
 0x1b3   : > { %2037 = vmatpush3.bf16.msra.mxu1 %v1414_v46 }
 0x1b6   : > { %2039 = vmatmul.mubr.msk.bf16.vlgmr.msra.gmra.mrb[8].mxu1 %vm1463_vm2, %v2173_v48 }
 0x1b7   : > { %2042 = vmatprep.mubr.msk.bf16.mxu1 %vm2202_vm1, %v2201_v59 }
 0x1be   : > { %2043 = vmatmul.mubr.msk.bf16.gmra.mrb[12].mxu1 %vm1463_vm2, %v2174_v49 }
 0x1bf   : > { %2046 = vmatprep.mubr.msk.bf16.mxu1 %vm2202_vm1, %v2201_v59 }
 0x1c6   : > { %2047 = vmatmul.mubr.msk.bf16.gmra.mrb[16].mxu1 %vm1463_vm2, %v2175_v50 }
 0x289   : > { %v1507_v53 = vpop.f32.mrb[8].mxu1 }
 0x28a   : > { %v1508_v55 = vadd.f32 %v1507_v53, %v1428_v52  ;;  %v2040_v56 = vpop.f32.mrb[9].mxu1 }
 0x28b   : > { %v1510_v58 = vpop.f32.mrb[10].mxu1 }
 0x28c   : > { %1599 = vst.msk [vmem:[%s293_s17] sm:$0xff] %vm1545_vm3, %v1508_v55  ;;  %v1511_v59 = vadd.f32 %v1510_v58, %v1433_v57  ;;  %v2041_v60 = vpop.f32.mrb[11].mxu1  ;;  %v1546_v62 = vsel %vm1545_vm3, %v1508_v55, -inf }
 0x28e   : > { %v1547_v63 = vsel %vm1545_vm3, %v1511_v59, -inf  ;;  %1600 = vst.msk [vmem:[%s293_s17 + $0x8] sm:$0xff] %vm1545_vm3, %v1511_v59 }
 0x28f   : > { %v1552_v0 = vmax.f32 %v1546_v62, %v1547_v63 }
 0x291   : > { %v1515_v2 = vpop.f32.mrb[12].mxu1 }
 0x292   : > { %v1516_v3 = vadd.f32 %v1515_v2, %v1438_v1  ;;  %v2044_v4 = vpop.f32.mrb[13].mxu1 }
 0x293   : > { %v1518_v6 = vpop.f32.mrb[14].mxu1 }
 0x294   : > { %v1542_v7 = vsel %vm1537_vm4, %v1516_v3, -inf  ;;  %1602 = vst.msk [vmem:[%s293_s17 + $0x10] sm:$0x1] %vm1601_vm5, %v1516_v3  ;;  %v1519_v8 = vadd.f32 %v1518_v6, %v1443_v5  ;;  %v2045_v9 = vpop.f32.mrb[15].mxu1 }
 0x295   : > { %v1548_v10 = vsel %vm1545_vm3, %v1542_v7, -inf }
 0x296   : > { %v1554_v11 = vmax.f32 %v1552_v0, %v1548_v10  ;;  %1603 = vst.msk [vmem:[%s298_s21] sm:$0xff] %vm1545_vm3, %v1519_v8 }
 0x298   : > { %v1555_v12 = vrot.slane %v1554_v11, 4 }
 0x299   : > { %v1523_v14 = vpop.f32.mrb[16].mxu1 }
 0x29a   : > { %v1556_v15 = vmax.f32 %v1554_v11, %v1555_v12  ;;  %v1524_v16 = vadd.f32 %v1523_v14, %v1448_v13  ;;  %v2048_v17 = vpop.f32.mrb[17].mxu1 }
 0x29b   : > { %v1526_v18 = vpop.f32.mrb[18].mxu1 }
 0x29c   : > { %v1557_v19 = vrot.slane %v1556_v15, 2  ;;  %1604 = vst.msk [vmem:[%s298_s21 + $0x8] sm:$0xff] %vm1545_vm3, %v1524_v16  ;;  %v2049_v20 = vpop.f32.mrb[19].mxu1 }
 0x29e   : > { %v1558_v21 = vmax.f32 %v1556_v15, %v1557_v19 }
 0x2a0   : > { %v1559_v22 = vrot.slane %v1558_v21, 1 }
 0x2a2   : > { %v1560_v23 = vmax.f32 %v1558_v21, %v1559_v22 }
 0x2a4   : > { %v1561_v24 = vsub.f32 %v1508_v55, %v1560_v23  ;;  %v1562_v25 = vsub.f32 %v1511_v59, %v1560_v23  ;;  %v1563_v26 = vsub.f32 %v1542_v7, %v1560_v23 }
 0x2a6   : > { %v1566_v27 = vmul.f32 1.442695, %v1561_v24  ;;  %v1568_v28 = vmul.f32 1.442695, %v1562_v25  ;;  %v1570_v29 = vmul.f32 1.442695, %v1563_v26 }
 0x2a8   : > { %2176 = vpow2.f32 %v1566_v27 }
 0x2a9   : > { %2178 = vpow2.f32 %v1568_v28 }
 0x2aa   : > { %2180 = vpow2.f32 %v1570_v29 }
 0x2b2   : > { %v2177_v30 = vpop.eup %2176 }
 0x2b3   : > { %v2179_v31 = vpop.eup %2178  ;;  %v1581_v32 = vsel %vm1545_vm3, %v2177_v30, 0.0 }
 0x2b4   : > { %v2181_v33 = vpop.eup %2180  ;;  %v1582_v34 = vsel %vm1545_vm3, %v2179_v31, 0.0 }
 0x2b5   : > { %v1578_v35 = vsel %vm1537_vm4, %v2181_v33, 0.0  ;;  %v1583_v36 = vadd.f32 %v1582_v34, %v1581_v32 }
 0x2b6   : > { %v1584_v37 = vsel %vm1545_vm3, %v1578_v35, 0.0 }
 0x2b7   : > { %v1585_v38 = vadd.f32 %v1584_v37, %v1583_v36 }
 0x2b9   : > { %v1590_v39 = vrot.slane %v1585_v38, 4 }
 0x2bb   : > { %v1591_v40 = vadd.f32 %v1590_v39, %v1585_v38 }
 0x2bd   : > { %v1592_v41 = vrot.slane %v1591_v40, 2 }
 0x2bf   : > { %v1593_v42 = vadd.f32 %v1592_v41, %v1591_v40 }
 0x2c1   : > { %v1594_v43 = vrot.slane %v1593_v42, 1 }
 0x2c3   : > { %v1595_v44 = vadd.f32 %v1594_v43, %v1593_v42 }
 0x2c5   : > { %2182 = vrcp.f32 %v1595_v44 }
 0x2cf   : > { %v2183_v45 = vpop.eup %2182 }
 0x2d0   : > { %v1597_v46 = vmul.f32 %v2183_v45, %v2177_v30  ;;  %v1598_v47 = vmul.f32 %v2183_v45, %v2179_v31 }
 0x2d2   : > { %1605 = vst.msk [vmem:[%s303_s26] sm:$0xff] %vm1545_vm3, %v1597_v46  ;;  %1606 = vst.msk [vmem:[%s303_s26 + $0x8] sm:$0xff] %vm1545_vm3, %v1598_v47 }
 0x2d3 PF: > { %s18_s24 = sadd.s32 1, %s2190_s24  }
 0x2d4   : > { %p15_p4 = scmp.ge.s32.totalorder %s18_s24, 4  }
 0x2d6   :  { %17 = sbr.rel (!%p15_p4) target bundleno = 1 (0x1), region = 102 }

// kernel: superpoint_forward.11
= control target key start
LH: loop header
LB: loop body
LE: loop exit
PB: predicated region body
PF: predicated region fallthrough
CT: control target
= control target key end

     0   :  { %8 = vsyncpa [#allocation4], 0  ;;  %s4049_s0 = inlined_call_operand.vmem [shape: f32[2,16,8,8], index: 0, kind: input, shape index: {}]   ;;  %s4050_s1 = inlined_call_operand.vmem [shape: f32[16,8], index: 1, kind: input, shape index: {}]   ;;  %s4051_s2 = inlined_call_operand.vmem [shape: f32[8,16], index: 2, kind: input, shape index: {}]   ;;  %s4052_s3 = inlined_call_operand.hbm [shape: f32[2,16,16,16], index: 3, kind: output, shape index: {}]  }
   0x1   :  { %10 = vsyncpa [#allocation4 + $0x1], 0  ;;  %s3484_s12 = smov 0   ;;  %s3486_s13 = smov 0  }
   0x2   :  { %s3488_s14 = smov 0   ;;  %s3490_s15 = smov 0  }
   0x3 LB: > { %s3505_s16 = sadd.s32 4294967295, %s3457_s15   ;;  %s3031_s17 = sadd.s32 4294967294, %s3457_s15   ;;  %s3457_s15 = sphi %s3490_s15, %s4058_s15   ;;  %s3453_s14 = sphi %s3488_s14, %s4057_s14   ;;  %s3449_s13 = sphi %s3486_s13, %s4056_s13   ;;  %s3445_s12 = sphi %s3484_s12, %s4055_s12  }
   0x4   : > { %s3509_s18 = sadd.s32 1, %s3457_s15   ;;  %s91_s19 = sadd.s32 1, %s3453_s14 }
   0x5   : > { %s88_s20 = ssub.s32 %s3457_s15, %s3509_s18  ;;  %p101_p0 = scmp.ne.s32.totalorder %s3453_s14, %s3449_s13 }
   0x6   : > { %p89_p1 = scmp.eq.s32.totalorder %s88_s20, 0  ;;  %p102_p2 = scmp.eq.s32.totalorder %s3505_s16, 1 }
   0x7   : > { %p107_p3 = scmp.ne.s32.totalorder %s3449_s13, %s3445_s12  ;;  %p108_p4 = scmp.eq.s32.totalorder %s3031_s17, 1 }
   0x8   : > { %s3520_s21 = scalar_select %p89_p1, %s3453_s14, %s91_s19  }
   0x9   : > { %p3522_p5 = por %p102_p2, %p101_p0  ;;  %p3526_p6 = por %p108_p4, %p107_p3 }
   0xa   : > { %p3034_p7 = scmp.ge.s32.totalorder %s3457_s15, 1  ;;  %p140_p8 = scmp.lt.s32.totalorder %s3457_s15, 3 }
   0xc   : > { %p141_p9 = pnand %p3034_p7, %p140_p8 }
   0xd   : > { %v3535_v0 = vld [vmem:[%s4051_s2] sm:$0xff] (!%p141_p9)  ;;  %p164_p10 = scmp.lt.s32.totalorder (!%p141_p9), %s3505_s16, 1  ;;  %v3459_v1 = vmov (!%p141_p9), 0.0   ;;  %vm3460_vm0 = vmmov (!%p141_p9), 0   ;;  %vm171_vm1 = vcmask (!%p141_p9), 64512   ;;  %v3650_v20 = vld [vmem:[%s4050_s1 + $0x8] sm:$0xff] (!%p141_p9) }
   0xe   : > { %144 = sbr.rel (%p141_p9) target bundleno = 571 (0x23b), region = 32  ;;  %3188 = vmatprep.subr.mxu0 (!%p141_p9), %v3459_v1  ;;  %3190 = vmatprep.mubr.msk.f32.mxu0 (!%p141_p9), %vm3460_vm0, %v3459_v1  ;;  %v3643_v18 = vld [vmem:[%s4050_s1] sm:$0xff] (!%p141_p9)  ;;  %vm328_vm2 = vcmask (!%p141_p9), 130048   ;;  %s161_s8 = sand.u32 (!%p141_p9), 1, %s3449_s13  }
   0xf   : > { %3189 = vmatpush3.msra.mxu0 (!%p141_p9), %v3535_v0  ;;  %3195 = vmatprep.mubr.msk.f32.mxu1 (!%p141_p9), %vm171_vm1, %v3643_v18  ;;  %s3035_s9 = sshll.u32 (!%p141_p9), %s161_s8, 8  ;;  %s3107_s11 = sshll.u32 (!%p141_p9), %s3505_s16, 12 }
  0x10   : > { %3198 = vmatprep.subr.mxu0 (!%p141_p9), %v3459_v1  ;;  %s3907_s10 = scalar_lea.vmem (!%p141_p9), [#allocation3], %s3035_s9  ;;  %s3974_s20 = scalar_lea.hbm (!%p141_p9), %s4052_s3, %s3107_s11 }
  0x11   : > { %s2969_s17 = sshll.u32 (!%p141_p9), %s3907_s10, 4  ;;  %s4008_s24 = scalar_lea.sflag (!%p141_p9), [#allocation4], %s161_s8  ;;  %s3976_s17 = int_to_ptr.vmem [resolvable:$true] %s2969_s17 }
  0x12   : > { %s3395_s25 = scalar_lea.vmem (!%p141_p9), %s3976_s17, 4096 }
  0x13   : > { %p3396_p11 = scmp.ne.s32.totalorder (!%p141_p9), %s3976_s17, %s3395_s25 }
  0x15   : > { %s165_s26 = scalar_select %p164_p10, %s3505_s16, 1 }
  0x16   : > { %p3397_p12 = pnand %p3396_p11, %p3522_p5 }
  0x17   : > { %s3106_s27 = sshll.u32 %s165_s26, 7  ;;  %s3461_s26 = smov [#allocation3]  }
  0x18   : > { %s3547_s30 = scalar_lea.vmem %s4049_s0, %s3106_s27  ;;  %p3398_p13 = pneg %p3397_p12 }
  0x19   : > { %v169_v2 = vld [vmem:[%s3547_s30] sm:$0xff]  ;;  %v3041_v3 = vld [vmem:[%s3547_s30 + $0x8] sm:$0xff]  ;;  %v3045_v4 = vld [vmem:[%s3547_s30 + $0x10] sm:$0xff]  ;;  %s3399_s27 = sshll.u32 %s3461_s26, 4  ;;  %s3400_s27 = int_to_ptr.vmem [resolvable:$false] %s3399_s27 }
  0x1a   : > { %3191 = vmatmul.mubr.msk.f32.vlgmr.msra.gmra.mrb[0].mxu0 %vm171_vm1, %v169_v2  ;;  %v3049_v5 = vld [vmem:[%s3547_s30 + $0x18] sm:$0xff]  ;;  %v3053_v6 = vld [vmem:[%s3547_s30 + $0x20] sm:$0xff]  ;;  %v3057_v7 = vld [vmem:[%s3547_s30 + $0x28] sm:$0xff]  ;;  %s3401_s28 = scalar_lea.vmem %s3400_s27, 8192  ;;  %p3402_p0 = scmp.lt.s32.totalorder %s3976_s17, %s3400_s27 }
  0x1b   : > { %3199 = vmatpush3.msra.mxu0 %v3535_v0  ;;  %3200 = vmatprep.mubr.msk.f32.mxu0 %vm3460_vm0, %v3459_v1  ;;  %v3061_v8 = vld [vmem:[%s3547_s30 + $0x30] sm:$0xff]  ;;  %v3065_v9 = vld [vmem:[%s3547_s30 + $0x38] sm:$0xff]  ;;  %v3069_v10 = vld [vmem:[%s3547_s30 + $0x40] sm:$0xff]  ;;  %p3403_p1 = scmp.lt.s32.totalorder %s3401_s28, %s3395_s25 }
  0x1c   : > { %3208 = vmatprep.subr.mxu0 %v3459_v1  ;;  %v3073_v11 = vld [vmem:[%s3547_s30 + $0x48] sm:$0xff]  ;;  %v3077_v12 = vld [vmem:[%s3547_s30 + $0x50] sm:$0xff]  ;;  %v3081_v13 = vld [vmem:[%s3547_s30 + $0x58] sm:$0xff] }
  0x1d   : > { %v3085_v14 = vld [vmem:[%s3547_s30 + $0x60] sm:$0xff]  ;;  %v3089_v15 = vld [vmem:[%s3547_s30 + $0x68] sm:$0xff]  ;;  %v3093_v16 = vld [vmem:[%s3547_s30 + $0x70] sm:$0xff]  ;;  %p3404_p2 = por %p3403_p1, %p3402_p0 }
  0x1e   : > { %3201 = vmatmul.mubr.msk.f32.vlgmr.msra.gmra.mrb[2].mxu0 %vm171_vm1, %v3041_v3  ;;  %v3097_v17 = vld [vmem:[%s3547_s30 + $0x78] sm:$0xff] }
  0x1f   : > { %3209 = vmatpush3.msra.mxu0 %v3535_v0  ;;  %3210 = vmatprep.mubr.msk.f32.mxu0 %vm3460_vm0, %v3459_v1  ;;  %p3405_p3 = pnand %p3404_p2, %p3398_p13 }
  0x20   : > { %3218 = vmatprep.subr.mxu0 %v3459_v1 }
  0x22   : > { %3211 = vmatmul.mubr.msk.f32.vlgmr.msra.gmra.mrb[4].mxu0 %vm171_vm1, %v3045_v4 }
  0x23   : > { %3219 = vmatpush3.msra.mxu0 %v3535_v0  ;;  %3220 = vmatprep.mubr.msk.f32.mxu0 %vm3460_vm0, %v3459_v1 }
  0x24   : > { %3228 = vmatprep.subr.mxu0 %v3459_v1 }
  0x26   : > { %3221 = vmatmul.mubr.msk.f32.vlgmr.msra.gmra.mrb[6].mxu0 %vm171_vm1, %v3049_v5 }
  0x27   : > { %3229 = vmatpush3.msra.mxu0 %v3535_v0  ;;  %3230 = vmatprep.mubr.msk.f32.mxu0 %vm3460_vm0, %v3459_v1 }
  0x28   : > { %3238 = vmatprep.subr.mxu0 %v3459_v1 }
  0x2a   : > { %3231 = vmatmul.mubr.msk.f32.vlgmr.msra.gmra.mrb[8].mxu0 %vm171_vm1, %v3053_v6 }
  0x2b   : > { %3239 = vmatpush3.msra.mxu0 %v3535_v0  ;;  %3240 = vmatprep.mubr.msk.f32.mxu0 %vm3460_vm0, %v3459_v1 }
  0x2c   : > { %3248 = vmatprep.subr.mxu0 %v3459_v1 }
  0x2e   : > { %3241 = vmatmul.mubr.msk.f32.vlgmr.msra.gmra.mrb[10].mxu0 %vm171_vm1, %v3057_v7 }
  0x2f   : > { %3249 = vmatpush3.msra.mxu0 %v3535_v0  ;;  %3250 = vmatprep.mubr.msk.f32.mxu0 %vm3460_vm0, %v3459_v1 }
  0x30   : > { %3258 = vmatprep.subr.mxu0 %v3459_v1 }
  0x32   : > { %3251 = vmatmul.mubr.msk.f32.vlgmr.msra.gmra.mrb[12].mxu0 %vm171_vm1, %v3061_v8 }
  0x33   : > { %3259 = vmatpush3.msra.mxu0 %v3535_v0  ;;  %3260 = vmatprep.mubr.msk.f32.mxu0 %vm3460_vm0, %v3459_v1 }
  0x34   : > { %3268 = vmatprep.subr.mxu0 %v3459_v1 }
  0x36   : > { %3261 = vmatmul.mubr.msk.f32.vlgmr.msra.gmra.mrb[14].mxu0 %vm171_vm1, %v3065_v9 }
  0x37   : > { %3269 = vmatpush3.msra.mxu0 %v3535_v0  ;;  %3270 = vmatprep.mubr.msk.f32.mxu0 %vm3460_vm0, %v3459_v1 }
  0x38   : > { %3278 = vmatprep.subr.mxu0 %v3459_v1 }
  0x3a   : > { %3271 = vmatmul.mubr.msk.f32.vlgmr.msra.gmra.mrb[16].mxu0 %vm171_vm1, %v3069_v10 }
  0x3b   : > { %3279 = vmatpush3.msra.mxu0 %v3535_v0  ;;  %3280 = vmatprep.mubr.msk.f32.mxu0 %vm3460_vm0, %v3459_v1 }
  0x3c   : > { %3288 = vmatprep.subr.mxu0 %v3459_v1 }
  0x3e   : > { %3281 = vmatmul.mubr.msk.f32.vlgmr.msra.gmra.mrb[18].mxu0 %vm171_vm1, %v3073_v11 }
  0x3f   : > { %3289 = vmatpush3.msra.mxu0 %v3535_v0  ;;  %3290 = vmatprep.mubr.msk.f32.mxu0 %vm3460_vm0, %v3459_v1 }
  0x40   : > { %3298 = vmatprep.subr.mxu0 %v3459_v1 }
  0x42   : > { %3291 = vmatmul.mubr.msk.f32.vlgmr.msra.gmra.mrb[20].mxu0 %vm171_vm1, %v3077_v12 }
  0x43   : > { %3299 = vmatpush3.msra.mxu0 %v3535_v0  ;;  %3300 = vmatprep.mubr.msk.f32.mxu0 %vm3460_vm0, %v3459_v1 }
  0x44   : > { %3308 = vmatprep.subr.mxu0 %v3459_v1 }
  0x46   : > { %3301 = vmatmul.mubr.msk.f32.vlgmr.msra.gmra.mrb[22].mxu0 %vm171_vm1, %v3081_v13 }
  0x47   : > { %3309 = vmatpush3.msra.mxu0 %v3535_v0  ;;  %3310 = vmatprep.mubr.msk.f32.mxu0 %vm3460_vm0, %v3459_v1 }
  0x48   : > { %3318 = vmatprep.subr.mxu0 %v3459_v1 }
  0x4a   : > { %3311 = vmatmul.mubr.msk.f32.vlgmr.msra.gmra.mrb[24].mxu0 %vm171_vm1, %v3085_v14 }
  0x4b   : > { %3319 = vmatpush3.msra.mxu0 %v3535_v0  ;;  %3320 = vmatprep.mubr.msk.f32.mxu0 %vm3460_vm0, %v3459_v1 }
  0x4c   : > { %3328 = vmatprep.subr.mxu0 %v3459_v1 }
  0x4e   : > { %3321 = vmatmul.mubr.msk.f32.vlgmr.msra.gmra.mrb[26].mxu0 %vm171_vm1, %v3089_v15 }
  0x4f   : > { %3329 = vmatpush3.msra.mxu0 %v3535_v0  ;;  %3330 = vmatprep.mubr.msk.f32.mxu0 %vm3460_vm0, %v3459_v1 }
  0x50   : > { %3338 = vmatprep.subr.mxu0 %v3459_v1 }
  0x52   : > { %3331 = vmatmul.mubr.msk.f32.vlgmr.msra.gmra.mrb[28].mxu0 %vm171_vm1, %v3093_v16 }
  0x53   : > { %3339 = vmatpush3.msra.mxu0 %v3535_v0  ;;  %3340 = vmatprep.mubr.msk.f32.mxu0 %vm3460_vm0, %v3459_v1 }
  0x56   : > { %3341 = vmatmul.mubr.msk.f32.vlgmr.msra.gmra.mrb[30].mxu0 %vm171_vm1, %v3097_v17 }
  0xed   : > { %v241_v19 = vpop.f32.mrb[0].mxu0 }
  0xee   : > { %v3192_v21 = vpop.f32.mrb[1].mxu0  ;;  %3193 = vmatprep.subr.mxu1 %v241_v19 }
  0xef   : > { %3194 = vmatpush3.msra.mxu1 %v241_v19 }
  0xf0   : > { %3196 = vmatmul.mubr.msk.f32.vlgmr.msra.gmra.mrb[0].mxu1 %vm171_vm1, %v3650_v20 }
  0xf1   : > { %v403_v22 = vpop.f32.mrb[2].mxu0  ;;  %3205 = vmatprep.mubr.msk.f32.mxu1 %vm171_vm1, %v3643_v18 }
  0xf2   : > { %v3202_v23 = vpop.f32.mrb[3].mxu0  ;;  %3203 = vmatprep.subr.mxu1 %v403_v22 }
  0xf3   : > { %3204 = vmatpush3.msra.mxu1 %v403_v22 }
  0xf4   : > { %3206 = vmatmul.mubr.msk.f32.vlgmr.msra.gmra.mrb[2].mxu1 %vm171_vm1, %v3650_v20 }
  0xf5   : > { %v565_v24 = vpop.f32.mrb[4].mxu0  ;;  %3215 = vmatprep.mubr.msk.f32.mxu1 %vm171_vm1, %v3643_v18 }
  0xf6   : > { %v3212_v25 = vpop.f32.mrb[5].mxu0  ;;  %3213 = vmatprep.subr.mxu1 %v565_v24 }
  0xf7   : > { %3214 = vmatpush3.msra.mxu1 %v565_v24 }
  0xf8   : > { %3216 = vmatmul.mubr.msk.f32.vlgmr.msra.gmra.mrb[4].mxu1 %vm171_vm1, %v3650_v20 }
  0xf9   : > { %v727_v26 = vpop.f32.mrb[6].mxu0  ;;  %3225 = vmatprep.mubr.msk.f32.mxu1 %vm171_vm1, %v3643_v18 }
  0xfa   : > { %v3222_v27 = vpop.f32.mrb[7].mxu0  ;;  %3223 = vmatprep.subr.mxu1 %v727_v26 }
  0xfb   : > { %3224 = vmatpush3.msra.mxu1 %v727_v26 }
  0xfc   : > { %3226 = vmatmul.mubr.msk.f32.vlgmr.msra.gmra.mrb[6].mxu1 %vm171_vm1, %v3650_v20 }
  0xfd   : > { %v889_v28 = vpop.f32.mrb[8].mxu0  ;;  %3235 = vmatprep.mubr.msk.f32.mxu1 %vm171_vm1, %v3643_v18 }
  0xfe   : > { %v3232_v29 = vpop.f32.mrb[9].mxu0  ;;  %3233 = vmatprep.subr.mxu1 %v889_v28 }
  0xff   : > { %3234 = vmatpush3.msra.mxu1 %v889_v28 }
 0x100   : > { %3236 = vmatmul.mubr.msk.f32.vlgmr.msra.gmra.mrb[8].mxu1 %vm171_vm1, %v3650_v20 }
 0x101   : > { %v1051_v30 = vpop.f32.mrb[10].mxu0  ;;  %3245 = vmatprep.mubr.msk.f32.mxu1 %vm171_vm1, %v3643_v18 }
 0x102   : > { %v3242_v31 = vpop.f32.mrb[11].mxu0  ;;  %3243 = vmatprep.subr.mxu1 %v1051_v30 }
 0x103   : > { %3244 = vmatpush3.msra.mxu1 %v1051_v30 }
 0x104   : > { %3246 = vmatmul.mubr.msk.f32.vlgmr.msra.gmra.mrb[10].mxu1 %vm171_vm1, %v3650_v20 }
 0x105   : > { %v1213_v32 = vpop.f32.mrb[12].mxu0  ;;  %3255 = vmatprep.mubr.msk.f32.mxu1 %vm171_vm1, %v3643_v18 }
 0x106   : > { %v3252_v33 = vpop.f32.mrb[13].mxu0  ;;  %3253 = vmatprep.subr.mxu1 %v1213_v32 }
 0x107   : > { %3254 = vmatpush3.msra.mxu1 %v1213_v32 }
 0x108   : > { %3256 = vmatmul.mubr.msk.f32.vlgmr.msra.gmra.mrb[12].mxu1 %vm171_vm1, %v3650_v20 }
 0x109   : > { %v1375_v34 = vpop.f32.mrb[14].mxu0  ;;  %3265 = vmatprep.mubr.msk.f32.mxu1 %vm171_vm1, %v3643_v18 }
 0x10a   : > { %v3262_v35 = vpop.f32.mrb[15].mxu0  ;;  %3263 = vmatprep.subr.mxu1 %v1375_v34 }
 0x10b   : > { %3264 = vmatpush3.msra.mxu1 %v1375_v34 }
 0x10c   : > { %3266 = vmatmul.mubr.msk.f32.vlgmr.msra.gmra.mrb[14].mxu1 %vm171_vm1, %v3650_v20 }
 0x10d   : > { %v1537_v36 = vpop.f32.mrb[16].mxu0  ;;  %3275 = vmatprep.mubr.msk.f32.mxu1 %vm171_vm1, %v3643_v18 }
 0x10e   : > { %v3272_v37 = vpop.f32.mrb[17].mxu0  ;;  %3273 = vmatprep.subr.mxu1 %v1537_v36 }
 0x10f   : > { %3274 = vmatpush3.msra.mxu1 %v1537_v36 }
 0x110   : > { %3276 = vmatmul.mubr.msk.f32.vlgmr.msra.gmra.mrb[16].mxu1 %vm171_vm1, %v3650_v20 }
 0x111   : > { %v1699_v38 = vpop.f32.mrb[18].mxu0  ;;  %3285 = vmatprep.mubr.msk.f32.mxu1 %vm171_vm1, %v3643_v18 }
 0x112   : > { %v3282_v39 = vpop.f32.mrb[19].mxu0  ;;  %3283 = vmatprep.subr.mxu1 %v1699_v38 }
 0x113   : > { %3284 = vmatpush3.msra.mxu1 %v1699_v38 }
 0x114   : > { %3286 = vmatmul.mubr.msk.f32.vlgmr.msra.gmra.mrb[18].mxu1 %vm171_vm1, %v3650_v20 }
 0x115   : > { %v1861_v40 = vpop.f32.mrb[20].mxu0  ;;  %3295 = vmatprep.mubr.msk.f32.mxu1 %vm171_vm1, %v3643_v18 }
 0x116   : > { %v3292_v41 = vpop.f32.mrb[21].mxu0  ;;  %3293 = vmatprep.subr.mxu1 %v1861_v40 }
 0x117   : > { %3294 = vmatpush3.msra.mxu1 %v1861_v40 }
 0x118   : > { %3296 = vmatmul.mubr.msk.f32.vlgmr.msra.gmra.mrb[20].mxu1 %vm171_vm1, %v3650_v20 }
 0x119   : > { %v2023_v42 = vpop.f32.mrb[22].mxu0  ;;  %3305 = vmatprep.mubr.msk.f32.mxu1 %vm171_vm1, %v3643_v18 }
 0x11a   : > { %v3302_v43 = vpop.f32.mrb[23].mxu0  ;;  %3303 = vmatprep.subr.mxu1 %v2023_v42 }
 0x11b   : > { %3304 = vmatpush3.msra.mxu1 %v2023_v42 }
 0x11c   : > { %3306 = vmatmul.mubr.msk.f32.vlgmr.msra.gmra.mrb[22].mxu1 %vm171_vm1, %v3650_v20 }
 0x11d   : > { %v2185_v44 = vpop.f32.mrb[24].mxu0  ;;  %3315 = vmatprep.mubr.msk.f32.mxu1 %vm171_vm1, %v3643_v18 }
 0x11e   : > { %v3312_v45 = vpop.f32.mrb[25].mxu0  ;;  %3313 = vmatprep.subr.mxu1 %v2185_v44 }
 0x11f   : > { %3314 = vmatpush3.msra.mxu1 %v2185_v44 }
 0x120   : > { %3316 = vmatmul.mubr.msk.f32.vlgmr.msra.gmra.mrb[24].mxu1 %vm171_vm1, %v3650_v20 }
 0x121   : > { %v2347_v46 = vpop.f32.mrb[26].mxu0  ;;  %3325 = vmatprep.mubr.msk.f32.mxu1 %vm171_vm1, %v3643_v18 }
 0x122   : > { %v3322_v47 = vpop.f32.mrb[27].mxu0  ;;  %3323 = vmatprep.subr.mxu1 %v2347_v46 }
 0x123   : > { %3324 = vmatpush3.msra.mxu1 %v2347_v46 }
 0x124   : > { %3326 = vmatmul.mubr.msk.f32.vlgmr.msra.gmra.mrb[26].mxu1 %vm171_vm1, %v3650_v20 }
 0x125   : > { %v2509_v48 = vpop.f32.mrb[28].mxu0  ;;  %3335 = vmatprep.mubr.msk.f32.mxu1 %vm171_vm1, %v3643_v18 }
 0x126   : > { %v3332_v49 = vpop.f32.mrb[29].mxu0  ;;  %3333 = vmatprep.subr.mxu1 %v2509_v48 }
 0x127   : > { %3334 = vmatpush3.msra.mxu1 %v2509_v48 }
 0x128   : > { %3336 = vmatmul.mubr.msk.f32.vlgmr.msra.gmra.mrb[28].mxu1 %vm171_vm1, %v3650_v20 }
 0x129   : > { %v2671_v50 = vpop.f32.mrb[30].mxu0  ;;  %3345 = vmatprep.mubr.msk.f32.mxu1 %vm171_vm1, %v3643_v18 }
 0x12a   : > { %v3342_v51 = vpop.f32.mrb[31].mxu0  ;;  %3343 = vmatprep.subr.mxu1 %v2671_v50 }
 0x12b   : > { %3344 = vmatpush3.msra.mxu1 %v2671_v50 }
 0x12c   : > { %3346 = vmatmul.mubr.msk.f32.vlgmr.msra.gmra.mrb[30].mxu1 %vm171_vm1, %v3650_v20 }
 0x1c3   : > { %v3197_v52 = vpop.f32.mrb[0].mxu1 }
 0x1c4   : > { %330 = vst.msk [vmem:[#allocation2 + $0x8] sm:$0xff] %vm328_vm2, %v3197_v52  ;;  %v319_v53 = vpop.f32.mrb[1].mxu1 }
 0x1c5   : > { %329 = vst.msk [vmem:[#allocation2] sm:$0xff] %vm328_vm2, %v319_v53 }
 0x1c7   : > { %v3207_v54 = vpop.f32.mrb[2].mxu1 }
 0x1c8   : > { %492 = vst.msk [vmem:[#allocation2 + $0x18] sm:$0xff] %vm328_vm2, %v3207_v54  ;;  %v481_v55 = vpop.f32.mrb[3].mxu1 }
 0x1c9   : > { %491 = vst.msk [vmem:[#allocation2 + $0x10] sm:$0xff] %vm328_vm2, %v481_v55 }
 0x1cb   : > { %v3217_v56 = vpop.f32.mrb[4].mxu1  ;;  %v3736_v8 = vld [vmem:[#allocation2 + $0x8] sm:$0xff] }
 0x1cc   : > { %654 = vst.msk [vmem:[#allocation2 + $0x28] sm:$0xff] %vm328_vm2, %v3217_v56  ;;  %v643_v57 = vpop.f32.mrb[5].mxu1  ;;  %v3740_v11 = vld [vmem:[#allocation2] sm:$0xff]  ;;  %v2794_v17 = vmul.f32 %v3736_v8, %v3736_v8 }
 0x1cd   : > { %653 = vst.msk [vmem:[#allocation2 + $0x20] sm:$0xff] %vm328_vm2, %v643_v57  ;;  %v2793_v20 = vmul.f32 %v3740_v11, %v3740_v11 }
 0x1ce   : > { %v2856_v31 = vsel %vm328_vm2, %v2794_v17, 0.0 }
 0x1cf   : > { %v3227_v58 = vpop.f32.mrb[6].mxu1  ;;  %v3731_v6 = vld [vmem:[#allocation2 + $0x18] sm:$0xff]  ;;  %v2825_v35 = vsel %vm328_vm2, %v2793_v20, 0.0 }
 0x1d0   : > { %816 = vst.msk [vmem:[#allocation2 + $0x38] sm:$0xff] %vm328_vm2, %v3227_v58  ;;  %v805_v59 = vpop.f32.mrb[7].mxu1  ;;  %v3734_v7 = vld [vmem:[#allocation2 + $0x10] sm:$0xff]  ;;  %v2796_v12 = vmul.f32 %v3731_v6, %v3731_v6 }
 0x1d1   : > { %815 = vst.msk [vmem:[#allocation2 + $0x30] sm:$0xff] %vm328_vm2, %v805_v59  ;;  %v2795_v15 = vmul.f32 %v3734_v7, %v3734_v7 }
 0x1d2   : > { %v2857_v24 = vsel %vm328_vm2, %v2796_v12, 0.0 }
 0x1d3   : > { %v3237_v60 = vpop.f32.mrb[8].mxu1  ;;  %v3738_v9 = vld [vmem:[#allocation2 + $0x28] sm:$0xff]  ;;  %v2826_v28 = vsel %vm328_vm2, %v2795_v15, 0.0  ;;  %v2858_v36 = vadd.f32 %v2857_v24, %v2856_v31 }
 0x1d4   : > { %978 = vst.msk [vmem:[#allocation2 + $0x48] sm:$0xff] %vm328_vm2, %v3237_v60  ;;  %v967_v61 = vpop.f32.mrb[9].mxu1  ;;  %v3744_v13 = vld [vmem:[#allocation2 + $0x20] sm:$0xff]  ;;  %v2798_v18 = vmul.f32 %v3738_v9, %v3738_v9  ;;  %v2827_v41 = vadd.f32 %v2826_v28, %v2825_v35 }
 0x1d5   : > { %977 = vst.msk [vmem:[#allocation2 + $0x40] sm:$0xff] %vm328_vm2, %v967_v61  ;;  %v2797_v21 = vmul.f32 %v3744_v13, %v3744_v13 }
 0x1d6   : > { %v2859_v32 = vsel %vm328_vm2, %v2798_v18, 0.0 }
 0x1d7   : > { %v3247_v62 = vpop.f32.mrb[10].mxu1  ;;  %v3749_v16 = vld [vmem:[#allocation2 + $0x38] sm:$0xff]  ;;  %v2828_v37 = vsel %vm328_vm2, %v2797_v21, 0.0  ;;  %v2860_v46 = vadd.f32 %v2859_v32, %v2858_v36 }
 0x1d8   : > { %1140 = vst.msk [vmem:[#allocation2 + $0x58] sm:$0xff] %vm328_vm2, %v3247_v62  ;;  %v1129_v63 = vpop.f32.mrb[11].mxu1  ;;  %v3756_v19 = vld [vmem:[#allocation2 + $0x30] sm:$0xff]  ;;  %v2800_v25 = vmul.f32 %v3749_v16, %v3749_v16  ;;  %v2829_v50 = vadd.f32 %v2828_v37, %v2827_v41 }
 0x1d9   : > { %1139 = vst.msk [vmem:[#allocation2 + $0x50] sm:$0xff] %vm328_vm2, %v1129_v63  ;;  %v2799_v29 = vmul.f32 %v3756_v19, %v3756_v19 }
 0x1da   : > { %v2861_v42 = vsel %vm328_vm2, %v2800_v25, 0.0 }
 0x1db   : > { %v3257_v0 = vpop.f32.mrb[12].mxu1  ;;  %v3762_v22 = vld [vmem:[#allocation2 + $0x48] sm:$0xff]  ;;  %v2830_v47 = vsel %vm328_vm2, %v2799_v29, 0.0  ;;  %v2862_v54 = vadd.f32 %v2861_v42, %v2860_v46 }
 0x1dc   : > { %1302 = vst.msk [vmem:[#allocation2 + $0x68] sm:$0xff] %vm328_vm2, %v3257_v0  ;;  %v1291_v1 = vpop.f32.mrb[13].mxu1  ;;  %v3767_v26 = vld [vmem:[#allocation2 + $0x40] sm:$0xff]  ;;  %v2802_v33 = vmul.f32 %v3762_v22, %v3762_v22  ;;  %v2831_v59 = vadd.f32 %v2830_v47, %v2829_v50 }
 0x1dd   : > { %1301 = vst.msk [vmem:[#allocation2 + $0x60] sm:$0xff] %vm328_vm2, %v1291_v1  ;;  %v2801_v38 = vmul.f32 %v3767_v26, %v3767_v26 }
 0x1de   : > { %v2863_v51 = vsel %vm328_vm2, %v2802_v33, 0.0 }
 0x1df   : > { %v3267_v2 = vpop.f32.mrb[14].mxu1  ;;  %v3773_v30 = vld [vmem:[#allocation2 + $0x58] sm:$0xff]  ;;  %v2832_v55 = vsel %vm328_vm2, %v2801_v38, 0.0  ;;  %v2864_v0 = vadd.f32 %v2863_v51, %v2862_v54 }
 0x1e0   : > { %1464 = vst.msk [vmem:[#allocation2 + $0x78] sm:$0xff] %vm328_vm2, %v3267_v2  ;;  %v1453_v3 = vpop.f32.mrb[15].mxu1  ;;  %v3780_v34 = vld [vmem:[#allocation2 + $0x50] sm:$0xff]  ;;  %v2804_v43 = vmul.f32 %v3773_v30, %v3773_v30 }
 0x1e1   : > { %1463 = vst.msk [vmem:[#allocation2 + $0x70] sm:$0xff] %vm328_vm2, %v1453_v3  ;;  %v2803_v48 = vmul.f32 %v3780_v34, %v3780_v34 }
 0x1e2   : > { %v2865_v60 = vsel %vm328_vm2, %v2804_v43, 0.0 }
 0x1e3   : > { %v3277_v4 = vpop.f32.mrb[16].mxu1  ;;  %v3786_v39 = vld [vmem:[#allocation2 + $0x68] sm:$0xff]  ;;  %v2834_v1 = vsel %vm328_vm2, %v2803_v48, 0.0 }
 0x1e4   : > { %1626 = vst.msk [vmem:[#allocation2 + $0x88] sm:$0xff] %vm328_vm2, %v3277_v4  ;;  %v1615_v5 = vpop.f32.mrb[17].mxu1  ;;  %v3791_v44 = vld [vmem:[#allocation2 + $0x60] sm:$0xff]  ;;  %v2806_v52 = vmul.f32 %v3786_v39, %v3786_v39  ;;  %v2833_v4 = vadd.f32 %v2832_v55, %v2831_v59 }
 0x1e5   : > { %1625 = vst.msk [vmem:[#allocation2 + $0x80] sm:$0xff] %vm328_vm2, %v1615_v5  ;;  %v2805_v56 = vmul.f32 %v3791_v44, %v3791_v44 }
 0x1e6   : > { %v2867_v5 = vsel %vm328_vm2, %v2806_v52, 0.0  ;;  %v2835_v21 = vadd.f32 %v2834_v1, %v2833_v4 }
 0x1e7   : > { %v3287_v10 = vpop.f32.mrb[18].mxu1  ;;  %v3797_v49 = vld [vmem:[#allocation2 + $0x78] sm:$0xff]  ;;  %v2836_v15 = vsel %vm328_vm2, %v2805_v56, 0.0 }
 0x1e8   : > { %1788 = vst.msk [vmem:[#allocation2 + $0x98] sm:$0xff] %vm328_vm2, %v3287_v10  ;;  %v1777_v14 = vpop.f32.mrb[19].mxu1  ;;  %v3803_v53 = vld [vmem:[#allocation2 + $0x70] sm:$0xff]  ;;  %v2808_v61 = vmul.f32 %v3797_v49, %v3797_v49  ;;  %v2837_v33 = vadd.f32 %v2836_v15, %v2835_v21 }
 0x1e9   : > { %1787 = vst.msk [vmem:[#allocation2 + $0x90] sm:$0xff] %vm328_vm2, %v1777_v14  ;;  %v2807_v2 = vmul.f32 %v3803_v53, %v3803_v53  ;;  %v2866_v14 = vadd.f32 %v2865_v60, %v2864_v0 }
 0x1eb   : > { %v3297_v23 = vpop.f32.mrb[20].mxu1  ;;  %v3808_v57 = vld [vmem:[#allocation2 + $0x88] sm:$0xff]  ;;  %v2868_v28 = vadd.f32 %v2867_v5, %v2866_v14  ;;  %v2838_v29 = vsel %vm328_vm2, %v2807_v2, 0.0 }
 0x1ec   : > { %1950 = vst.msk [vmem:[#allocation2 + $0xa8] sm:$0xff] %vm328_vm2, %v3297_v23  ;;  %v1939_v27 = vpop.f32.mrb[21].mxu1  ;;  %v3813_v62 = vld [vmem:[#allocation2 + $0x80] sm:$0xff]  ;;  %v2810_v10 = vmul.f32 %v3808_v57, %v3808_v57  ;;  %v2869_v23 = vsel %vm328_vm2, %v2808_v61, 0.0 }
 0x1ed   : > { %1949 = vst.msk [vmem:[#allocation2 + $0xa0] sm:$0xff] %vm328_vm2, %v1939_v27  ;;  %v2809_v17 = vmul.f32 %v3813_v62, %v3813_v62  ;;  %v2870_v38 = vadd.f32 %v2869_v23, %v2868_v28 }
 0x1ee   : > { %v2871_v35 = vsel %vm328_vm2, %v2810_v10, 0.0 }
 0x1ef   : > { %v3307_v40 = vpop.f32.mrb[22].mxu1  ;;  %v3819_v3 = vld [vmem:[#allocation2 + $0x98] sm:$0xff]  ;;  %v2872_v51 = vadd.f32 %v2871_v35, %v2870_v38 }
 0x1f0   : > { %2112 = vst.msk [vmem:[#allocation2 + $0xb8] sm:$0xff] %vm328_vm2, %v3307_v40  ;;  %v2101_v45 = vpop.f32.mrb[23].mxu1  ;;  %v3825_v12 = vld [vmem:[#allocation2 + $0x90] sm:$0xff]  ;;  %v2812_v24 = vmul.f32 %v3819_v3, %v3819_v3  ;;  %v2840_v40 = vsel %vm328_vm2, %v2809_v17, 0.0 }
 0x1f1   : > { %2111 = vst.msk [vmem:[#allocation2 + $0xb0] sm:$0xff] %vm328_vm2, %v2101_v45  ;;  %v2811_v31 = vmul.f32 %v3825_v12, %v3825_v12  ;;  %v2839_v45 = vadd.f32 %v2838_v29, %v2837_v33 }
 0x1f2   : > { %v2873_v46 = vsel %vm328_vm2, %v2812_v24, 0.0 }
 0x1f3   : > { %v3317_v58 = vpop.f32.mrb[24].mxu1  ;;  %v3830_v18 = vld [vmem:[#allocation2 + $0xa8] sm:$0xff]  ;;  %v2842_v52 = vsel %vm328_vm2, %v2811_v31, 0.0  ;;  %v2841_v55 = vadd.f32 %v2840_v40, %v2839_v45  ;;  %v2874_v59 = vadd.f32 %v2873_v46, %v2872_v51 }
 0x1f4   : > { %2274 = vst.msk [vmem:[#allocation2 + $0xc8] sm:$0xff] %vm328_vm2, %v3317_v58  ;;  %v2263_v63 = vpop.f32.mrb[25].mxu1  ;;  %v3835_v25 = vld [vmem:[#allocation2 + $0xa0] sm:$0xff]  ;;  %v2814_v36 = vmul.f32 %v3830_v18, %v3830_v18 }
 0x1f5   : > { %2273 = vst.msk [vmem:[#allocation2 + $0xc0] sm:$0xff] %vm328_vm2, %v2263_v63  ;;  %v2813_v41 = vmul.f32 %v3835_v25, %v3835_v25  ;;  %v2843_v1 = vadd.f32 %v2842_v52, %v2841_v55 }
 0x1f6   : > { %v2875_v56 = vsel %vm328_vm2, %v2814_v36, 0.0 }
 0x1f7   : > { %v3327_v20 = vpop.f32.mrb[26].mxu1  ;;  %v3841_v32 = vld [vmem:[#allocation2 + $0xb8] sm:$0xff]  ;;  %v2844_v60 = vsel %vm328_vm2, %v2813_v41, 0.0  ;;  %v2876_v14 = vadd.f32 %v2875_v56, %v2874_v59 }
 0x1f8   : > { %2436 = vst.msk [vmem:[#allocation2 + $0xd8] sm:$0xff] %vm328_vm2, %v3327_v20  ;;  %v2425_v27 = vpop.f32.mrb[27].mxu1  ;;  %v3847_v37 = vld [vmem:[#allocation2 + $0xb0] sm:$0xff]  ;;  %v2816_v47 = vmul.f32 %v3841_v32, %v3841_v32  ;;  %v2845_v20 = vadd.f32 %v2844_v60, %v2843_v1 }
 0x1f9   : > { %2435 = vst.msk [vmem:[#allocation2 + $0xd0] sm:$0xff] %vm328_vm2, %v2425_v27  ;;  %v2815_v54 = vmul.f32 %v3847_v37, %v3847_v37 }
 0x1fa   : > { %v2877_v2 = vsel %vm328_vm2, %v2816_v47, 0.0 }
 0x1fb   : > { %v3852_v42 = vld [vmem:[#allocation2 + $0xc8] sm:$0xff]  ;;  %v3337_v43 = vpop.f32.mrb[28].mxu1  ;;  %v2846_v15 = vsel %vm328_vm2, %v2815_v54, 0.0  ;;  %v2878_v23 = vadd.f32 %v2877_v2, %v2876_v14 }
 0x1fc   : > { %v3857_v48 = vld [vmem:[#allocation2 + $0xc0] sm:$0xff]  ;;  %2598 = vst.msk [vmem:[#allocation2 + $0xe8] sm:$0xff] %vm328_vm2, %v3337_v43  ;;  %v2587_v50 = vpop.f32.mrb[29].mxu1  ;;  %v2818_v58 = vmul.f32 %v3852_v42, %v3852_v42  ;;  %v2847_v28 = vadd.f32 %v2846_v15, %v2845_v20 }
 0x1fd   : > { %2597 = vst.msk [vmem:[#allocation2 + $0xe0] sm:$0xff] %vm328_vm2, %v2587_v50  ;;  %v2817_v61 = vmul.f32 %v3857_v48, %v3857_v48 }
 0x1fe   : > { %v2879_v21 = vsel %vm328_vm2, %v2818_v58, 0.0 }
 0x1ff   : > { %v3870_v63 = vld [vmem:[#allocation2 + $0xd8] sm:$0xff]  ;;  %v3347_v0 = vpop.f32.mrb[30].mxu1  ;;  %v2848_v24 = vsel %vm328_vm2, %v2817_v61, 0.0  ;;  %v2880_v35 = vadd.f32 %v2879_v21, %v2878_v23 }
 0x200   : > { %v2820_v4 = vmul.f32 %v3870_v63, %v3870_v63  ;;  %v3875_v5 = vld [vmem:[#allocation2 + $0xd0] sm:$0xff]  ;;  %2760 = vst.msk [vmem:[#allocation2 + $0xf8] sm:$0xff] %vm328_vm2, %v3347_v0  ;;  %v2749_v10 = vpop.f32.mrb[31].mxu1  ;;  %v2849_v40 = vadd.f32 %v2848_v24, %v2847_v28 }
 0x201   : > { %v2819_v17 = vmul.f32 %v3875_v5, %v3875_v5  ;;  %2759 = vst.msk [vmem:[#allocation2 + $0xf0] sm:$0xff] %vm328_vm2, %v2749_v10 }
 0x202   : > { %v2881_v29 = vsel %vm328_vm2, %v2820_v4, 0.0 }
 0x203   : > { %v3884_v27 = vld [vmem:[#allocation2 + $0xe8] sm:$0xff]  ;;  %v2850_v36 = vsel %vm328_vm2, %v2819_v17, 0.0  ;;  %v2882_v43 = vadd.f32 %v2881_v29, %v2880_v35 }
 0x204   : > { %v2822_v31 = vmul.f32 %v3884_v27, %v3884_v27  ;;  %v3889_v33 = vld [vmem:[#allocation2 + $0xe0] sm:$0xff]  ;;  %v2851_v47 = vadd.f32 %v2850_v36, %v2849_v40 }
 0x205   : > { %v2821_v38 = vmul.f32 %v3889_v33, %v3889_v33 }
 0x206   : > { %v2883_v41 = vsel %vm328_vm2, %v2822_v31, 0.0 }
 0x207   : > { %v2852_v45 = vsel %vm328_vm2, %v2821_v38, 0.0  ;;  %v2792_v46 = vld [vmem:[#allocation2 + $0xf8] sm:$0xff]  ;;  %v2884_v52 = vadd.f32 %v2883_v41, %v2882_v43 }
 0x208   : > { %v2824_v50 = vmul.f32 %v2792_v46, %v2792_v46  ;;  %v2791_v51 = vld [vmem:[#allocation2 + $0xf0] sm:$0xff]  ;;  %v2853_v55 = vadd.f32 %v2852_v45, %v2851_v47 }
 0x209   : > { %v2823_v54 = vmul.f32 %v2791_v51, %v2791_v51 }
 0x20a   : > { %v2885_v56 = vsel %vm328_vm2, %v2824_v50, 0.0 }
 0x20b   : > { %v2886_v58 = vadd.f32 %v2885_v56, %v2884_v52  ;;  %v2854_v59 = vsel %vm328_vm2, %v2823_v54, 0.0 }
 0x20c   : > { %v2855_v60 = vadd.f32 %v2854_v59, %v2853_v55 }
 0x20d   : > { %v2888_v61 = vmax.f32 %v2886_v58, 1e-24 }
 0x20e   : > { %v2887_v0 = vmax.f32 %v2855_v60, 1e-24 }
 0x20f   : > { %3391 = vrsqrt.f32 %v2888_v61 }
 0x210   : > { %3393 = vrsqrt.f32 %v2887_v0 }
 0x219   : > { %v3392_v1 = vpop.eup %3391 }
 0x21a   : > { %v3394_v2 = vpop.eup %3393  ;;  %v2922_v4 = vmul.f32 %v3392_v1, %v2792_v46  ;;  %v2892_v10 = vmul.f32 %v3392_v1, %v3736_v8  ;;  %v2894_v14 = vmul.f32 %v3392_v1, %v3731_v6  ;;  %v2896_v15 = vmul.f32 %v3392_v1, %v3738_v9 }
 0x21b   : > { %v2921_v17 = vmul.f32 %v3394_v2, %v2791_v51  ;;  %v2891_v20 = vmul.f32 %v3394_v2, %v3740_v11  ;;  %v2893_v21 = vmul.f32 %v3394_v2, %v3734_v7  ;;  %v2895_v23 = vmul.f32 %v3394_v2, %v3744_v13 }
 0x21c   : > { %2954 = vst.msk [vmem:[%s3907_s10 + $0xf8] sm:$0xff] %vm328_vm2, %v2922_v4  ;;  %v2897_v6 = vmul.f32 %v3394_v2, %v3756_v19  ;;  %v2898_v7 = vmul.f32 %v3392_v1, %v3749_v16  ;;  %v2899_v8 = vmul.f32 %v3394_v2, %v3767_v26  ;;  %v2900_v9 = vmul.f32 %v3392_v1, %v3762_v22 }
 0x21d   : > { %2924 = vst.msk [vmem:[%s3907_s10 + $0x8] sm:$0xff] %vm328_vm2, %v2892_v10  ;;  %2926 = vst.msk [vmem:[%s3907_s10 + $0x18] sm:$0xff] %vm328_vm2, %v2894_v14  ;;  %v2901_v11 = vmul.f32 %v3394_v2, %v3780_v34  ;;  %v2902_v13 = vmul.f32 %v3392_v1, %v3773_v30  ;;  %v2903_v16 = vmul.f32 %v3394_v2, %v3791_v44 }
 0x21e   : > { %2928 = vst.msk [vmem:[%s3907_s10 + $0x28] sm:$0xff] %vm328_vm2, %v2896_v15  ;;  %2953 = vst.msk [vmem:[%s3907_s10 + $0xf0] sm:$0xff] %vm328_vm2, %v2921_v17  ;;  %v2904_v19 = vmul.f32 %v3392_v1, %v3786_v39  ;;  %v2905_v22 = vmul.f32 %v3394_v2, %v3803_v53  ;;  %v2906_v26 = vmul.f32 %v3392_v1, %v3797_v49 }
 0x21f   : > { %2923 = vst.msk [vmem:[%s3907_s10] sm:$0xff] %vm328_vm2, %v2891_v20  ;;  %2925 = vst.msk [vmem:[%s3907_s10 + $0x10] sm:$0xff] %vm328_vm2, %v2893_v21  ;;  %v2907_v30 = vmul.f32 %v3394_v2, %v3813_v62  ;;  %v2908_v34 = vmul.f32 %v3392_v1, %v3808_v57  ;;  %v2909_v39 = vmul.f32 %v3394_v2, %v3825_v12 }
 0x220   : > { %2927 = vst.msk [vmem:[%s3907_s10 + $0x20] sm:$0xff] %vm328_vm2, %v2895_v23  ;;  %2929 = vst.msk [vmem:[%s3907_s10 + $0x30] sm:$0xff] %vm328_vm2, %v2897_v6  ;;  %v2910_v44 = vmul.f32 %v3392_v1, %v3819_v3  ;;  %v2911_v49 = vmul.f32 %v3394_v2, %v3835_v25  ;;  %v2912_v53 = vmul.f32 %v3392_v1, %v3830_v18 }
 0x221   : > { %2930 = vst.msk [vmem:[%s3907_s10 + $0x38] sm:$0xff] %vm328_vm2, %v2898_v7  ;;  %2931 = vst.msk [vmem:[%s3907_s10 + $0x40] sm:$0xff] %vm328_vm2, %v2899_v8  ;;  %v2913_v57 = vmul.f32 %v3394_v2, %v3847_v37  ;;  %v2914_v62 = vmul.f32 %v3392_v1, %v3841_v32  ;;  %v2915_v3 = vmul.f32 %v3394_v2, %v3857_v48 }
 0x222   : > { %2932 = vst.msk [vmem:[%s3907_s10 + $0x48] sm:$0xff] %vm328_vm2, %v2900_v9  ;;  %2933 = vst.msk [vmem:[%s3907_s10 + $0x50] sm:$0xff] %vm328_vm2, %v2901_v11  ;;  %v2916_v12 = vmul.f32 %v3392_v1, %v3852_v42  ;;  %v2917_v18 = vmul.f32 %v3394_v2, %v3875_v5  ;;  %v2918_v25 = vmul.f32 %v3392_v1, %v3870_v63 }
 0x223   : > { %2934 = vst.msk [vmem:[%s3907_s10 + $0x58] sm:$0xff] %vm328_vm2, %v2902_v13  ;;  %2935 = vst.msk [vmem:[%s3907_s10 + $0x60] sm:$0xff] %vm328_vm2, %v2903_v16  ;;  %v2919_v32 = vmul.f32 %v3394_v2, %v3889_v33  ;;  %v2920_v37 = vmul.f32 %v3392_v1, %v3884_v27 }
 0x224   : > { %2936 = vst.msk [vmem:[%s3907_s10 + $0x68] sm:$0xff] %vm328_vm2, %v2904_v19  ;;  %2937 = vst.msk [vmem:[%s3907_s10 + $0x70] sm:$0xff] %vm328_vm2, %v2905_v22 }
 0x225   : > { %2938 = vst.msk [vmem:[%s3907_s10 + $0x78] sm:$0xff] %vm328_vm2, %v2906_v26  ;;  %2939 = vst.msk [vmem:[%s3907_s10 + $0x80] sm:$0xff] %vm328_vm2, %v2907_v30 }
 0x226   : > { %2940 = vst.msk [vmem:[%s3907_s10 + $0x88] sm:$0xff] %vm328_vm2, %v2908_v34  ;;  %2941 = vst.msk [vmem:[%s3907_s10 + $0x90] sm:$0xff] %vm328_vm2, %v2909_v39 }
 0x227   : > { %2942 = vst.msk [vmem:[%s3907_s10 + $0x98] sm:$0xff] %vm328_vm2, %v2910_v44  ;;  %2943 = vst.msk [vmem:[%s3907_s10 + $0xa0] sm:$0xff] %vm328_vm2, %v2911_v49 }
 0x228   : > { %2944 = vst.msk [vmem:[%s3907_s10 + $0xa8] sm:$0xff] %vm328_vm2, %v2912_v53  ;;  %2945 = vst.msk [vmem:[%s3907_s10 + $0xb0] sm:$0xff] %vm328_vm2, %v2913_v57 }
 0x229   : > { %2946 = vst.msk [vmem:[%s3907_s10 + $0xb8] sm:$0xff] %vm328_vm2, %v2914_v62  ;;  %2947 = vst.msk [vmem:[%s3907_s10 + $0xc0] sm:$0xff] %vm328_vm2, %v2915_v3 }
 0x22a   : > { %2948 = vst.msk [vmem:[%s3907_s10 + $0xc8] sm:$0xff] %vm328_vm2, %v2916_v12  ;;  %2949 = vst.msk [vmem:[%s3907_s10 + $0xd0] sm:$0xff] %vm328_vm2, %v2917_v18 }
 0x22b   : > { %2950 = vst.msk [vmem:[%s3907_s10 + $0xd8] sm:$0xff] %vm328_vm2, %v2918_v25  ;;  %2951 = vst.msk [vmem:[%s3907_s10 + $0xe0] sm:$0xff] %vm328_vm2, %v2919_v32 }
 0x22c   : > { %2952 = vst.msk [vmem:[%s3907_s10 + $0xe8] sm:$0xff] %vm328_vm2, %v2920_v37 }
 0x22d   : > { %3408 = shalt.err (!%p3405_p3)
}
 0x22e   : > { %s3409_s29 = scalar_lea.hbm %s3974_s20, 4096  ;;  %s3413_s5 = scalar_lea.hbm %s4052_s3, 8192 }
 0x22f   : > { %p3410_p4 = scmp.ne.s32.totalorder %s3974_s20, %s3409_s29  ;;  %p3414_p9 = scmp.lt.u32.totalorder %s3974_s20, %s4052_s3 }
 0x230   : > { %p3415_p10 = scmp.lt.u32.totalorder %s3413_s5, %s3409_s29  ;;  %p3417_p12 = scmp.lt.u32.totalorder %s3409_s29, %s3974_s20 }
 0x231   : > { %p3411_p7 = pnand %p3410_p4, %p3522_p5 }
 0x232   : > { %p3416_p11 = por %p3415_p10, %p3414_p9 }
 0x233   : > { %p3412_p8 = pneg %p3411_p7 }
 0x234   : > { %p3418_p13 = por %p3417_p12, %p3416_p11 }
 0x236   : > { %p3419_p0 = pnand %p3418_p13, %p3412_p8 }
 0x238   : > { %3422 = shalt.err (!%p3419_p0)
}
 0x239   : > { %s3462_s8 = smov 128   ;;  %s3463_s9 = smov 8  }
 0x23a   : > { %3348 = dma.vmem_to_hbm [thread:$0]  (%p3522_p5), %s3976_s17, 4096, %s3974_s20, %s4008_s24, %s3462_s8, %s3462_s8, %s3463_s9  }
 0x23b PF: > { %p3354_p1 = scmp.ge.s32.totalorder %s3457_s15, 2  ;;  %s2984_s10 = sand.u32 1, %s3445_s12  }
 0x23c   : > { %s2985_s11 = scalar_lea.sflag [#allocation4], %s2984_s10 }
 0x23d   : > { %p3351_p2 = pnand %p3354_p1, %p3526_p6 }
 0x23f   : > { %3440 = dma.done.wait (!%p3351_p2), %s2985_s11, 4096  }
 0x240   : > { %3442 = vsyncadd (!%p3351_p2), %s2985_s11, 4294963200  ;;  %p13_p3 = scmp.ge.s32.totalorder %s3509_s18, 4   ;;  %s4055_s12 = smov %s3449_s13 }
 0x241   : > { %s4056_s13 = smov %s3453_s14  ;;  %s4057_s14 = smov %s3520_s21 }
 0x242   : > { %s4058_s15 = smov %s3509_s18  ;;  %15 = sbr.rel (!%p13_p3) target bundleno = 3 (0x3), region = 97 }
 0x249   :  { %2990 = vsyncpa [#allocation4], 1 }
 0x24a   :  { %2992 = vsyncpa [#allocation4 + $0x1], 1 }

</bundles_post_ra>
